<compile_context>
chip_gen: v6e
topology: v6e:2x2x1
jax: 0.10.0
libtpu: 0.0.40
codegen_flags: <defaults>
</compile_context>

<pallas_src>
import math

import jax
import jax.numpy as jnp
from jax.experimental import pallas as pl
from jax.experimental.pallas import tpu as pltpu

# ---- model dims (fixed by the PyTorch module) ------------------------------
EMBED_DIM = 768
NUM_HEADS = 4
HEAD_DIM = EMBED_DIM // NUM_HEADS          # 192
MOE_HIDDEN = 512
MOE_OUT = 512
NUM_EXPERTS = 3
NUM_CLASSES = 1000
NUM_CLASSES_PAD = 1024                     # lane-dense (multiple of 128)

NUM_STAGES = NUM_HEADS + NUM_EXPERTS + 1   # 4 head stages + 3 expert stages + classifier

# ---- small example dims ----------------------------------------------------
BATCH = 2
SEQ = 8
IMG_C, IMG_H, IMG_W = 3, 16, 16
VOCAB = 64


def _deq(q_i8):
    """int8 -> bf16 (values |q| <= 127 are exactly representable in bf16)."""
    return q_i8.astype(jnp.float32).astype(jnp.bfloat16)


# =============================================================================
# Fused, staged kernel
#   stage s in [0, 4): attention head s   (accumulate into fused scratch)
#   stage s in [4, 7): expert s-4         (accumulate into moe scratch)
#   stage s == 7     : classifier         (write logits)
# =============================================================================
def _vqa_fused_kernel(
        vis_ref, text_ref,
        wq_ref, sq_ref, bq_ref,
        wk_ref, sk_ref, bk_ref,
        wv_ref, sv_ref, bv_ref,
        wo_ref, so_ref, bo_ref,
        wg_ref, bg_ref,
        w1_ref, s1_ref, b1_ref,
        w2_ref, s2_ref, b2_ref,
        wc_ref, sc_ref, bc_ref,
        out_ref,
        fused_ref, moe_ref):
    s = pl.program_id(0)
    B = vis_ref.shape[0]
    L = text_ref.shape[1]
    inv_sqrt_d = 1.0 / math.sqrt(HEAD_DIM)

    # ---- stage 0: zero the fused-features accumulator -----------------------
    @pl.when(s == 0)
    def _init_fused():
        fused_ref[...] = jnp.zeros_like(fused_ref)

    # ---- attention head stages: s in [0, NUM_HEADS) -------------------------
    @pl.when(s < NUM_HEADS)
    def _attn_stage():
        vis_bf = vis_ref[...]                                    # (B, D) bf16
        text2 = text_ref[...].reshape(B * L, EMBED_DIM)          # (B*L, D) bf16

        # per-head projections: int8 weights dequantized to bf16, scale folded
        # onto the f32 matmul output (exact), f32 bias add.
        qh = (jnp.dot(vis_bf, _deq(wq_ref[0]),
                      preferred_element_type=jnp.float32) * sq_ref[0]
              + bq_ref[0])                                       # (B, hd)
        kh = (jnp.dot(text2, _deq(wk_ref[0]),
                      preferred_element_type=jnp.float32) * sk_ref[0]
              + bk_ref[0]).reshape(B, L, HEAD_DIM)               # (B, L, hd)
        vh = (jnp.dot(text2, _deq(wv_ref[0]),
                      preferred_element_type=jnp.float32) * sv_ref[0]
              + bv_ref[0]).reshape(B, L, HEAD_DIM)               # (B, L, hd)

        # scores + softmax on the VPU (single query token, L=8 keys), f32 math
        scores = jnp.sum(qh[:, None, :] * kh, axis=-1) * inv_sqrt_d   # (B, L)
        scores = scores - jnp.max(scores, axis=-1, keepdims=True)
        p = jnp.exp(scores)
        p = p / jnp.sum(p, axis=-1, keepdims=True)               # exact normalization

        oh = jnp.sum(p[:, :, None] * vh, axis=1)                 # (B, hd) f32

        # out-projection contribution of this head (sum over heads == concat @ Wo^T)
        contrib = (jnp.dot(oh.astype(jnp.bfloat16), _deq(wo_ref[0]),
                           preferred_element_type=jnp.float32) * so_ref[0])
        fused_ref[...] = fused_ref[...] + contrib

    # ---- stage NUM_HEADS: finalize fused features, zero MoE accumulator -----
    @pl.when(s == NUM_HEADS)
    def _finalize_fused():
        fused_ref[...] = fused_ref[...] + bo_ref[...]
        moe_ref[...] = jnp.zeros_like(moe_ref)

    # ---- expert stages: s in [NUM_HEADS, NUM_HEADS + NUM_EXPERTS) -----------
    @pl.when((s >= NUM_HEADS) & (s < NUM_HEADS + NUM_EXPERTS))
    def _expert_stage():
        fused_bf = fused_ref[...].astype(jnp.bfloat16)           # (B, D)

        # gate softmax (768x3 — tiny, recomputed per expert stage; avoids
        # dynamic lane indexing into a stored gate vector)
        g = (jnp.dot(fused_bf, wg_ref[...],
                     preferred_element_type=jnp.float32) + bg_ref[...])   # (B, E)
        g = g - jnp.max(g, axis=-1, keepdims=True)
        g = jnp.exp(g)
        g = g / jnp.sum(g, axis=-1, keepdims=True)

        e = s - NUM_HEADS
        col = jax.lax.broadcasted_iota(jnp.int32, (B, NUM_EXPERTS), 1)
        ge = jnp.sum(jnp.where(col == e, g, 0.0), axis=-1, keepdims=True)  # (B, 1)

        hid = (jnp.dot(fused_bf, _deq(w1_ref[0]),
                       preferred_element_type=jnp.float32) * s1_ref[0] + b1_ref[0])
        hid = jnp.maximum(hid, 0.0)                              # ReLU in f32
        oe = (jnp.dot(hid.astype(jnp.bfloat16), _deq(w2_ref[0]),
                      preferred_element_type=jnp.float32) * s2_ref[0] + b2_ref[0])
        moe_ref[...] = moe_ref[...] + ge * oe

    # ---- classifier stage ----------------------------------------------------
    @pl.when(s == NUM_STAGES - 1)
    def _classifier_stage():
        logits = (jnp.dot(moe_ref[...].astype(jnp.bfloat16), _deq(wc_ref[...]),
                          preferred_element_type=jnp.float32)
                  * sc_ref[...] + bc_ref[...])
        out_ref[...] = logits


def vqa_fused(vis_feat, text_feat, p):
    B, D = vis_feat.shape
    L = text_feat.shape[1]

    # Per-stage weight selection: indices saturate so there is no OOB block and
    # no refetch once a slab stops changing between consecutive steps.
    head_map3 = lambda s: (jnp.minimum(s, NUM_HEADS - 1), 0, 0)
    expert_map3 = lambda s: (jnp.clip(s - NUM_HEADS, 0, NUM_EXPERTS - 1), 0, 0)
    const2 = lambda s: (0, 0)
    const3 = lambda s: (0, 0, 0)

    logits_padded = pl.pallas_call(
        _vqa_fused_kernel,
        out_shape=jax.ShapeDtypeStruct((B, NUM_CLASSES_PAD), jnp.float32),
        grid=(NUM_STAGES,),
        in_specs=[
            pl.BlockSpec((B, D), const2),                          # vis_feat   (bf16)
            pl.BlockSpec((B, L, D), const3),                       # text_feat  (bf16)
            pl.BlockSpec((1, D, HEAD_DIM), head_map3),             # Wq per head (int8)
            pl.BlockSpec((1, 1, HEAD_DIM), head_map3),             # Wq scales   (f32)
            pl.BlockSpec((1, 1, HEAD_DIM), head_map3),             # bq
            pl.BlockSpec((1, D, HEAD_DIM), head_map3),             # Wk per head (int8)
            pl.BlockSpec((1, 1, HEAD_DIM), head_map3),             # Wk scales
            pl.BlockSpec((1, 1, HEAD_DIM), head_map3),             # bk
            pl.BlockSpec((1, D, HEAD_DIM), head_map3),             # Wv per head (int8)
            pl.BlockSpec((1, 1, HEAD_DIM), head_map3),             # Wv scales
            pl.BlockSpec((1, 1, HEAD_DIM), head_map3),             # bv
            pl.BlockSpec((1, HEAD_DIM, D), head_map3),             # Wo per head (int8)
            pl.BlockSpec((1, 1, D), head_map3),                    # Wo scales
            pl.BlockSpec((1, D), const2),                          # bo
            pl.BlockSpec((D, NUM_EXPERTS), const2),                # gate W^T (bf16)
            pl.BlockSpec((1, NUM_EXPERTS), const2),                # gate b
            pl.BlockSpec((1, D, MOE_HIDDEN), expert_map3),         # expert fc1 W^T (int8)
            pl.BlockSpec((1, 1, MOE_HIDDEN), expert_map3),         # fc1 scales
            pl.BlockSpec((1, 1, MOE_HIDDEN), expert_map3),         # fc1 b
            pl.BlockSpec((1, MOE_HIDDEN, MOE_OUT), expert_map3),   # expert fc2 W^T (int8)
            pl.BlockSpec((1, 1, MOE_OUT), expert_map3),            # fc2 scales
            pl.BlockSpec((1, 1, MOE_OUT), expert_map3),            # fc2 b
            pl.BlockSpec((MOE_OUT, NUM_CLASSES_PAD), const2),      # classifier W^T (int8)
            pl.BlockSpec((1, NUM_CLASSES_PAD), const2),            # classifier scales
            pl.BlockSpec((1, NUM_CLASSES_PAD), const2),            # classifier b
        ],
        out_specs=pl.BlockSpec((B, NUM_CLASSES_PAD), const2),
        scratch_shapes=[
            pltpu.VMEM((B, EMBED_DIM), jnp.float32),   # fused-features accumulator
            pltpu.VMEM((B, MOE_OUT), jnp.float32),     # MoE output accumulator
        ],
        compiler_params=pltpu.CompilerParams(
            dimension_semantics=("arbitrary",),        # stages carry accumulator deps
            vmem_limit_bytes=32 * 1024 * 1024),
    )(vis_feat, text_feat,
      p["wq_q"], p["sq"], p["bq"],
      p["wk_q"], p["sk"], p["bk"],
      p["wv_q"], p["sv"], p["bv"],
      p["wo_q"], p["so"], p["bo"],
      p["wg"], p["bg"],
      p["w1_q"], p["s1"], p["b1"],
      p["w2_q"], p["s2"], p["b2"],
      p["wc_q"], p["sc"], p["bc"])
    return logits_padded[:, :NUM_CLASSES]


# =============================================================================
# Parameter init (deterministic) with int8 weight quantization, and forward
# =============================================================================
def _quantize_int8(w, reduce_axes):
    """Symmetric per-output-column int8 quantization. Returns (q_int8, f32 scale)."""
    amax = jnp.max(jnp.abs(w), axis=reduce_axes, keepdims=True)
    scale = jnp.maximum(amax, 1e-8) / 127.0
    q = jnp.clip(jnp.round(w / scale), -127.0, 127.0).astype(jnp.int8)
    return q, scale.astype(jnp.float32)


def init_params(key):
    ks = iter(jax.random.split(key, 32))
    std = 0.02
    n = lambda shape: jax.random.normal(next(ks), shape, jnp.float32) * std

    # MultiheadAttention weights, pre-split per head & pre-transposed (x @ W^T)
    wq, sq = _quantize_int8(n((NUM_HEADS, EMBED_DIM, HEAD_DIM)), 1)
    wk, sk = _quantize_int8(n((NUM_HEADS, EMBED_DIM, HEAD_DIM)), 1)
    wv, sv = _quantize_int8(n((NUM_HEADS, EMBED_DIM, HEAD_DIM)), 1)
    wo, so = _quantize_int8(n((NUM_HEADS, HEAD_DIM, EMBED_DIM)), 1)
    # MoE experts
    w1, s1 = _quantize_int8(n((NUM_EXPERTS, EMBED_DIM, MOE_HIDDEN)), 1)
    w2, s2 = _quantize_int8(n((NUM_EXPERTS, MOE_HIDDEN, MOE_OUT)), 1)
    # Classifier, lane-padded to 1024 output columns (zeros beyond 1000)
    wc = n((MOE_OUT, NUM_CLASSES))
    bc = n((1, NUM_CLASSES))
    wc_pad = jnp.zeros((MOE_OUT, NUM_CLASSES_PAD), jnp.float32).at[:, :NUM_CLASSES].set(wc)
    bc_pad = jnp.zeros((1, NUM_CLASSES_PAD), jnp.float32).at[:, :NUM_CLASSES].set(bc)
    wcq, sc = _quantize_int8(wc_pad, 0)

    return {
        # stand-in encoders (glue; see TODO at top) — kept in f32
        "vis_proj": n((IMG_C * IMG_H * IMG_W, EMBED_DIM)),
        "tok_emb": n((VOCAB, EMBED_DIM)),
        # attention
        "wq_q": wq, "sq": sq, "bq": n((NUM_HEADS, 1, HEAD_DIM)),
        "wk_q": wk, "sk": sk, "bk": n((NUM_HEADS, 1, HEAD_DIM)),
        "wv_q": wv, "sv": sv, "bv": n((NUM_HEADS, 1, HEAD_DIM)),
        "wo_q": wo, "so": so, "bo": n((1, EMBED_DIM)),
        # MoE decoder
        "wg": n((EMBED_DIM, NUM_EXPERTS)).astype(jnp.bfloat16), "bg": n((1, NUM_EXPERTS)),
        "w1_q": w1, "s1": s1, "b1": n((NUM_EXPERTS, 1, MOE_HIDDEN)),
        "w2_q": w2, "s2": s2, "b2": n((NUM_EXPERTS, 1, MOE_OUT)),
        # classifier
        "wc_q": wcq, "sc": sc, "bc": bc_pad,
    }


@jax.jit
def vqa_forward(image, question_input_ids, question_attention_mask, params):
    B = image.shape[0]
    # --- stand-in vision encoder: CLS-token feature [B, 768] (glue) ---------
    vis_feat = jnp.tanh(image.reshape(B, -1) @ params["vis_proj"])
    # --- stand-in text encoder: token embeddings [B, L, 768] (glue) ---------
    ids = question_input_ids[:, 0, :]                      # .squeeze(1)
    mask = question_attention_mask[:, 0, :].astype(jnp.float32)
    text_feat = params["tok_emb"][ids] * mask[..., None]
    # TODO(synk): in a real serving path, issue a cross-call weight-prefetch
    #             pallas_call (P10) here so the fused kernel's weight DMA hides
    #             behind the (much longer) real ViT/T5 encoders.
    # --- fused hot path in a single staged Pallas kernel ---------------------
    return vqa_fused(vis_feat.astype(jnp.bfloat16),
                     text_feat.astype(jnp.bfloat16), params)           # (B, 1000)


if __name__ == "__main__":
    key = jax.random.PRNGKey(0)
    kp, ki, kt = jax.random.split(key, 3)

    params = init_params(kp)
    image = jax.random.normal(ki, (BATCH, IMG_C, IMG_H, IMG_W), jnp.float32)
    question_input_ids = jax.random.randint(kt, (BATCH, 1, SEQ), 0, VOCAB, jnp.int32)
    question_attention_mask = jnp.ones((BATCH, 1, SEQ), jnp.int32)

    logits = vqa_forward(image, question_input_ids, question_attention_mask, params)
    jax.block_until_ready(logits)
    assert logits.shape == (BATCH, NUM_CLASSES) and logits.dtype == jnp.float32
    assert bool(jnp.all(jnp.isfinite(logits)))
    print("KERNEL_OK")
</pallas_src>

<mosaic_0001>
module attributes {stable_mosaic.version = 11 : i64} {
  func.func @_vqa_fused_kernel(%arg0: i32, %arg1: memref<2x768xbf16, #tpu.memory_space<vmem>>, %arg2: memref<2x8x768xbf16, #tpu.memory_space<vmem>>, %arg3: memref<1x768x192xi8, #tpu.memory_space<vmem>>, %arg4: memref<1x1x192xf32, #tpu.memory_space<vmem>>, %arg5: memref<1x1x192xf32, #tpu.memory_space<vmem>>, %arg6: memref<1x768x192xi8, #tpu.memory_space<vmem>>, %arg7: memref<1x1x192xf32, #tpu.memory_space<vmem>>, %arg8: memref<1x1x192xf32, #tpu.memory_space<vmem>>, %arg9: memref<1x768x192xi8, #tpu.memory_space<vmem>>, %arg10: memref<1x1x192xf32, #tpu.memory_space<vmem>>, %arg11: memref<1x1x192xf32, #tpu.memory_space<vmem>>, %arg12: memref<1x192x768xi8, #tpu.memory_space<vmem>>, %arg13: memref<1x1x768xf32, #tpu.memory_space<vmem>>, %arg14: memref<1x768xf32, #tpu.memory_space<vmem>>, %arg15: memref<768x3xbf16, #tpu.memory_space<vmem>>, %arg16: memref<1x3xf32, #tpu.memory_space<vmem>>, %arg17: memref<1x768x512xi8, #tpu.memory_space<vmem>>, %arg18: memref<1x1x512xf32, #tpu.memory_space<vmem>>, %arg19: memref<1x1x512xf32, #tpu.memory_space<vmem>>, %arg20: memref<1x512x512xi8, #tpu.memory_space<vmem>>, %arg21: memref<1x1x512xf32, #tpu.memory_space<vmem>>, %arg22: memref<1x1x512xf32, #tpu.memory_space<vmem>>, %arg23: memref<512x1024xi8, #tpu.memory_space<vmem>>, %arg24: memref<1x1024xf32, #tpu.memory_space<vmem>>, %arg25: memref<1x1024xf32, #tpu.memory_space<vmem>>, %arg26: memref<2x1024xf32, #tpu.memory_space<vmem>>, %arg27: memref<2x768xf32, #tpu.memory_space<vmem>>, %arg28: memref<2x512xf32, #tpu.memory_space<vmem>>) attributes {dimension_semantics = [#tpu.dimension_semantics<arbitrary>], iteration_bounds = array<i64: 8>, scalar_prefetch = 0 : i64, scratch_operands = 2 : i64, tpu.core_type = #tpu.core_type<tc>, window_params = [{pipeline_mode = #tpu.pipeline_mode<synchronous>, transform_indices = @transform_0, window_bounds = array<i64: 2, 768>}, {pipeline_mode = #tpu.pipeline_mode<synchronous>, transform_indices = @transform_1, window_bounds = array<i64: 2, 8, 768>}, {transform_indices = @transform_2, window_bounds = array<i64: 1, 768, 192>}, {transform_indices = @transform_3, window_bounds = array<i64: 1, 1, 192>}, {transform_indices = @transform_4, window_bounds = array<i64: 1, 1, 192>}, {transform_indices = @transform_5, window_bounds = array<i64: 1, 768, 192>}, {transform_indices = @transform_6, window_bounds = array<i64: 1, 1, 192>}, {transform_indices = @transform_7, window_bounds = array<i64: 1, 1, 192>}, {transform_indices = @transform_8, window_bounds = array<i64: 1, 768, 192>}, {transform_indices = @transform_9, window_bounds = array<i64: 1, 1, 192>}, {transform_indices = @transform_10, window_bounds = array<i64: 1, 1, 192>}, {transform_indices = @transform_11, window_bounds = array<i64: 1, 192, 768>}, {transform_indices = @transform_12, window_bounds = array<i64: 1, 1, 768>}, {pipeline_mode = #tpu.pipeline_mode<synchronous>, transform_indices = @transform_13, window_bounds = array<i64: 1, 768>}, {pipeline_mode = #tpu.pipeline_mode<synchronous>, transform_indices = @transform_14, window_bounds = array<i64: 768, 3>}, {pipeline_mode = #tpu.pipeline_mode<synchronous>, transform_indices = @transform_15, window_bounds = array<i64: 1, 3>}, {transform_indices = @transform_16, window_bounds = array<i64: 1, 768, 512>}, {transform_indices = @transform_17, window_bounds = array<i64: 1, 1, 512>}, {transform_indices = @transform_18, window_bounds = array<i64: 1, 1, 512>}, {transform_indices = @transform_19, window_bounds = array<i64: 1, 512, 512>}, {transform_indices = @transform_20, window_bounds = array<i64: 1, 1, 512>}, {transform_indices = @transform_21, window_bounds = array<i64: 1, 1, 512>}, {pipeline_mode = #tpu.pipeline_mode<synchronous>, transform_indices = @transform_22, window_bounds = array<i64: 512, 1024>}, {pipeline_mode = #tpu.pipeline_mode<synchronous>, transform_indices = @transform_23, window_bounds = array<i64: 1, 1024>}, {pipeline_mode = #tpu.pipeline_mode<synchronous>, transform_indices = @transform_24, window_bounds = array<i64: 1, 1024>}, {pipeline_mode = #tpu.pipeline_mode<synchronous>, transform_indices = @transform_25, window_bounds = array<i64: 2, 1024>}]} {
    %c0_i32 = arith.constant 0 : i32
    %0 = arith.cmpi eq, %arg0, %c0_i32 : i32
    %1 = arith.extui %0 : i1 to i32
    %c0_i32_0 = arith.constant 0 : i32
    %2 = arith.cmpi ne, %1, %c0_i32_0 : i32
    scf.if %2 {
      %cst = arith.constant 0.000000e+00 : f32
      %17 = vector.broadcast %cst : f32 to vector<2x768xf32>
      %c0 = arith.constant 0 : index
      %c0_8 = arith.constant 0 : index
      %18 = vector.load %arg27[%c0, %c0_8] : memref<2x768xf32, #tpu.memory_space<vmem>>, vector<2x768xf32>
      tpu.vector_store %arg27[%c0, %c0_8], %17 {strides = array<i32>} : memref<2x768xf32, #tpu.memory_space<vmem>>, vector<2x768xf32>,
    } else {
    }
    %c4_i32 = arith.constant 4 : i32
    %3 = arith.cmpi slt, %arg0, %c4_i32 : i32
    %4 = arith.extui %3 : i1 to i32
    %c0_i32_1 = arith.constant 0 : i32
    %5 = arith.cmpi ne, %4, %c0_i32_1 : i32
    scf.if %5 {
      %c0 = arith.constant 0 : index
      %c0_8 = arith.constant 0 : index
      %17 = vector.load %arg1[%c0, %c0_8] : memref<2x768xbf16, #tpu.memory_space<vmem>>, vector<2x768xbf16>
      %c0_9 = arith.constant 0 : index
      %c0_10 = arith.constant 0 : index
      %c0_11 = arith.constant 0 : index
      %18 = vector.load %arg2[%c0_9, %c0_10, %c0_11] : memref<2x8x768xbf16, #tpu.memory_space<vmem>>, vector<2x8x768xbf16>
      %19 = vector.shape_cast %18 : vector<2x8x768xbf16> to vector<16x768xbf16>
      %c0_12 = arith.constant 0 : index
      %c0_13 = arith.constant 0 : index
      %c0_14 = arith.constant 0 : index
      %20 = vector.load %arg3[%c0_12, %c0_13, %c0_14] : memref<1x768x192xi8, #tpu.memory_space<vmem>>, vector<1x768x192xi8>
      %21 = vector.shape_cast %20 : vector<1x768x192xi8> to vector<768x192xi8>
      %22 = arith.sitofp %21 : vector<768x192xi8> to vector<768x192xf32>
      %23 = arith.truncf %22 : vector<768x192xf32> to vector<768x192xbf16>
      %cst = arith.constant dense<0.000000e+00> : vector<2x192xf32>
      %24 = tpu.matmul %17, %23, %cst {dimension_numbers = #tpu.dot_dimension_numbers<[1], [0], [0], [1], [0, 0, 1, 1], [], []>} : vector<2x768xbf16>, vector<768x192xbf16>, vector<2x192xf32> -> vector<2x192xf32>
      %c0_15 = arith.constant 0 : index
      %c0_16 = arith.constant 0 : index
      %c0_17 = arith.constant 0 : index
      %25 = vector.load %arg4[%c0_15, %c0_16, %c0_17] : memref<1x1x192xf32, #tpu.memory_space<vmem>>, vector<1x1x192xf32>
      %26 = vector.shape_cast %25 : vector<1x1x192xf32> to vector<1x192xf32>
      %27 = vector.broadcast %26 : vector<1x192xf32> to vector<2x192xf32>
      %28 = arith.mulf %24, %27 : vector<2x192xf32>
      %c0_18 = arith.constant 0 : index
      %c0_19 = arith.constant 0 : index
      %c0_20 = arith.constant 0 : index
      %29 = vector.load %arg5[%c0_18, %c0_19, %c0_20] : memref<1x1x192xf32, #tpu.memory_space<vmem>>, vector<1x1x192xf32>
      %30 = vector.shape_cast %29 : vector<1x1x192xf32> to vector<1x192xf32>
      %31 = vector.broadcast %30 : vector<1x192xf32> to vector<2x192xf32>
      %32 = arith.addf %28, %31 : vector<2x192xf32>
      %c0_21 = arith.constant 0 : index
      %c0_22 = arith.constant 0 : index
      %c0_23 = arith.constant 0 : index
      %33 = vector.load %arg6[%c0_21, %c0_22, %c0_23] : memref<1x768x192xi8, #tpu.memory_space<vmem>>, vector<1x768x192xi8>
      %34 = vector.shape_cast %33 : vector<1x768x192xi8> to vector<768x192xi8>
      %35 = arith.sitofp %34 : vector<768x192xi8> to vector<768x192xf32>
      %36 = arith.truncf %35 : vector<768x192xf32> to vector<768x192xbf16>
      %cst_24 = arith.constant dense<0.000000e+00> : vector<16x192xf32>
      %37 = tpu.matmul %19, %36, %cst_24 {dimension_numbers = #tpu.dot_dimension_numbers<[1], [0], [0], [1], [0, 0, 1, 1], [], []>} : vector<16x768xbf16>, vector<768x192xbf16>, vector<16x192xf32> -> vector<16x192xf32>
      %c0_25 = arith.constant 0 : index
      %c0_26 = arith.constant 0 : index
      %c0_27 = arith.constant 0 : index
      %38 = vector.load %arg7[%c0_25, %c0_26, %c0_27] : memref<1x1x192xf32, #tpu.memory_space<vmem>>, vector<1x1x192xf32>
      %39 = vector.shape_cast %38 : vector<1x1x192xf32> to vector<1x192xf32>
      %40 = vector.broadcast %39 : vector<1x192xf32> to vector<16x192xf32>
      %41 = arith.mulf %37, %40 : vector<16x192xf32>
      %c0_28 = arith.constant 0 : index
      %c0_29 = arith.constant 0 : index
      %c0_30 = arith.constant 0 : index
      %42 = vector.load %arg8[%c0_28, %c0_29, %c0_30] : memref<1x1x192xf32, #tpu.memory_space<vmem>>, vector<1x1x192xf32>
      %43 = vector.shape_cast %42 : vector<1x1x192xf32> to vector<1x192xf32>
      %44 = vector.broadcast %43 : vector<1x192xf32> to vector<16x192xf32>
      %45 = arith.addf %41, %44 : vector<16x192xf32>
      %46 = vector.shape_cast %45 : vector<16x192xf32> to vector<2x8x192xf32>
      %c0_31 = arith.constant 0 : index
      %c0_32 = arith.constant 0 : index
      %c0_33 = arith.constant 0 : index
      %47 = vector.load %arg9[%c0_31, %c0_32, %c0_33] : memref<1x768x192xi8, #tpu.memory_space<vmem>>, vector<1x768x192xi8>
      %48 = vector.shape_cast %47 : vector<1x768x192xi8> to vector<768x192xi8>
      %49 = arith.sitofp %48 : vector<768x192xi8> to vector<768x192xf32>
      %50 = arith.truncf %49 : vector<768x192xf32> to vector<768x192xbf16>
      %cst_34 = arith.constant dense<0.000000e+00> : vector<16x192xf32>
      %51 = tpu.matmul %19, %50, %cst_34 {dimension_numbers = #tpu.dot_dimension_numbers<[1], [0], [0], [1], [0, 0, 1, 1], [], []>} : vector<16x768xbf16>, vector<768x192xbf16>, vector<16x192xf32> -> vector<16x192xf32>
      %c0_35 = arith.constant 0 : index
      %c0_36 = arith.constant 0 : index
      %c0_37 = arith.constant 0 : index
      %52 = vector.load %arg10[%c0_35, %c0_36, %c0_37] : memref<1x1x192xf32, #tpu.memory_space<vmem>>, vector<1x1x192xf32>
      %53 = vector.shape_cast %52 : vector<1x1x192xf32> to vector<1x192xf32>
      %54 = vector.broadcast %53 : vector<1x192xf32> to vector<16x192xf32>
      %55 = arith.mulf %51, %54 : vector<16x192xf32>
      %c0_38 = arith.constant 0 : index
      %c0_39 = arith.constant 0 : index
      %c0_40 = arith.constant 0 : index
      %56 = vector.load %arg11[%c0_38, %c0_39, %c0_40] : memref<1x1x192xf32, #tpu.memory_space<vmem>>, vector<1x1x192xf32>
      %57 = vector.shape_cast %56 : vector<1x1x192xf32> to vector<1x192xf32>
      %58 = vector.broadcast %57 : vector<1x192xf32> to vector<16x192xf32>
      %59 = arith.addf %55, %58 : vector<16x192xf32>
      %60 = vector.shape_cast %59 : vector<16x192xf32> to vector<2x8x192xf32>
      %61 = vector.shape_cast %32 : vector<2x192xf32> to vector<2x1x192xf32>
      %62 = vector.broadcast %61 : vector<2x1x192xf32> to vector<2x8x192xf32>
      %63 = arith.mulf %62, %46 : vector<2x8x192xf32>
      %cst_41 = arith.constant dense<0.000000e+00> : vector<2x8xf32>
      %64 = vector.multi_reduction <add>, %63, %cst_41 [2] : vector<2x8x192xf32> to vector<2x8xf32>
      %cst_42 = arith.constant 0.0721687824 : f32
      %65 = vector.broadcast %cst_42 : f32 to vector<2x8xf32>
      %66 = arith.mulf %64, %65 : vector<2x8xf32>
      %cst_43 = arith.constant dense<0xFF800000> : vector<2xf32>
      %67 = vector.multi_reduction <maximumf>, %66, %cst_43 [1] : vector<2x8xf32> to vector<2xf32>
      %68 = vector.shape_cast %67 : vector<2xf32> to vector<2x1xf32>
      %69 = vector.broadcast %68 : vector<2x1xf32> to vector<2x8xf32>
      %70 = arith.subf %66, %69 : vector<2x8xf32>
      %71 = math.exp %70 : vector<2x8xf32>
      %cst_44 = arith.constant dense<0.000000e+00> : vector<2xf32>
      %72 = vector.multi_reduction <add>, %71, %cst_44 [1] : vector<2x8xf32> to vector<2xf32>
      %73 = vector.shape_cast %72 : vector<2xf32> to vector<2x1xf32>
      %74 = vector.broadcast %73 : vector<2x1xf32> to vector<2x8xf32>
      %75 = arith.divf %71, %74 : vector<2x8xf32>
      %76 = vector.shape_cast %75 : vector<2x8xf32> to vector<2x8x1xf32>
      %77 = vector.broadcast %76 : vector<2x8x1xf32> to vector<2x8x192xf32>
      %78 = arith.mulf %77, %60 : vector<2x8x192xf32>
      %cst_45 = arith.constant dense<0.000000e+00> : vector<2x192xf32>
      %79 = vector.multi_reduction <add>, %78, %cst_45 [1] : vector<2x8x192xf32> to vector<2x192xf32>
      %80 = arith.truncf %79 : vector<2x192xf32> to vector<2x192xbf16>
      %c0_46 = arith.constant 0 : index
      %c0_47 = arith.constant 0 : index
      %c0_48 = arith.constant 0 : index
      %81 = vector.load %arg12[%c0_46, %c0_47, %c0_48] : memref<1x192x768xi8, #tpu.memory_space<vmem>>, vector<1x192x768xi8>
      %82 = vector.shape_cast %81 : vector<1x192x768xi8> to vector<192x768xi8>
      %83 = arith.sitofp %82 : vector<192x768xi8> to vector<192x768xf32>
      %84 = arith.truncf %83 : vector<192x768xf32> to vector<192x768xbf16>
      %cst_49 = arith.constant dense<0.000000e+00> : vector<2x768xf32>
      %85 = tpu.matmul %80, %84, %cst_49 {dimension_numbers = #tpu.dot_dimension_numbers<[1], [0], [0], [1], [0, 0, 1, 1], [], []>} : vector<2x192xbf16>, vector<192x768xbf16>, vector<2x768xf32> -> vector<2x768xf32>
      %c0_50 = arith.constant 0 : index
      %c0_51 = arith.constant 0 : index
      %c0_52 = arith.constant 0 : index
      %86 = vector.load %arg13[%c0_50, %c0_51, %c0_52] : memref<1x1x768xf32, #tpu.memory_space<vmem>>, vector<1x1x768xf32>
      %87 = vector.shape_cast %86 : vector<1x1x768xf32> to vector<1x768xf32>
      %88 = vector.broadcast %87 : vector<1x768xf32> to vector<2x768xf32>
      %89 = arith.mulf %85, %88 : vector<2x768xf32>
      %c0_53 = arith.constant 0 : index
      %c0_54 = arith.constant 0 : index
      %90 = vector.load %arg27[%c0_53, %c0_54] : memref<2x768xf32, #tpu.memory_space<vmem>>, vector<2x768xf32>
      %91 = arith.addf %90, %89 : vector<2x768xf32>
      %c0_55 = arith.constant 0 : index
      %c0_56 = arith.constant 0 : index
      %92 = vector.load %arg27[%c0_55, %c0_56] : memref<2x768xf32, #tpu.memory_space<vmem>>, vector<2x768xf32>
      tpu.vector_store %arg27[%c0_55, %c0_56], %91 {strides = array<i32>} : memref<2x768xf32, #tpu.memory_space<vmem>>, vector<2x768xf32>,
    } else {
    }
    %c4_i32_2 = arith.constant 4 : i32
    %6 = arith.cmpi eq, %arg0, %c4_i32_2 : i32
    %7 = arith.extui %6 : i1 to i32
    %c0_i32_3 = arith.constant 0 : i32
    %8 = arith.cmpi ne, %7, %c0_i32_3 : i32
    scf.if %8 {
      %c0 = arith.constant 0 : index
      %c0_8 = arith.constant 0 : index
      %17 = vector.load %arg27[%c0, %c0_8] : memref<2x768xf32, #tpu.memory_space<vmem>>, vector<2x768xf32>
      %c0_9 = arith.constant 0 : index
      %c0_10 = arith.constant 0 : index
      %18 = vector.load %arg14[%c0_9, %c0_10] : memref<1x768xf32, #tpu.memory_space<vmem>>, vector<1x768xf32>
      %19 = vector.broadcast %18 : vector<1x768xf32> to vector<2x768xf32>
      %20 = arith.addf %17, %19 : vector<2x768xf32>
      %c0_11 = arith.constant 0 : index
      %c0_12 = arith.constant 0 : index
      %21 = vector.load %arg27[%c0_11, %c0_12] : memref<2x768xf32, #tpu.memory_space<vmem>>, vector<2x768xf32>
      tpu.vector_store %arg27[%c0_11, %c0_12], %20 {strides = array<i32>} : memref<2x768xf32, #tpu.memory_space<vmem>>, vector<2x768xf32>,
      %cst = arith.constant 0.000000e+00 : f32
      %22 = vector.broadcast %cst : f32 to vector<2x512xf32>
      %c0_13 = arith.constant 0 : index
      %c0_14 = arith.constant 0 : index
      %23 = vector.load %arg28[%c0_13, %c0_14] : memref<2x512xf32, #tpu.memory_space<vmem>>, vector<2x512xf32>
      tpu.vector_store %arg28[%c0_13, %c0_14], %22 {strides = array<i32>} : memref<2x512xf32, #tpu.memory_space<vmem>>, vector<2x512xf32>,
    } else {
    }
    %c4_i32_4 = arith.constant 4 : i32
    %9 = arith.cmpi sge, %arg0, %c4_i32_4 : i32
    %c7_i32 = arith.constant 7 : i32
    %10 = arith.cmpi slt, %arg0, %c7_i32 : i32
    %11 = arith.andi %9, %10 : i1
    %12 = arith.extui %11 : i1 to i32
    %c0_i32_5 = arith.constant 0 : i32
    %13 = arith.cmpi ne, %12, %c0_i32_5 : i32
    scf.if %13 {
      %c0 = arith.constant 0 : index
      %c0_8 = arith.constant 0 : index
      %17 = vector.load %arg27[%c0, %c0_8] : memref<2x768xf32, #tpu.memory_space<vmem>>, vector<2x768xf32>
      %18 = arith.truncf %17 : vector<2x768xf32> to vector<2x768xbf16>
      %c0_9 = arith.constant 0 : index
      %c0_10 = arith.constant 0 : index
      %19 = vector.load %arg15[%c0_9, %c0_10] : memref<768x3xbf16, #tpu.memory_space<vmem>>, vector<768x3xbf16>
      %cst = arith.constant dense<0.000000e+00> : vector<2x3xf32>
      %20 = tpu.matmul %18, %19, %cst {dimension_numbers = #tpu.dot_dimension_numbers<[1], [0], [0], [1], [0, 0, 1, 1], [], []>} : vector<2x768xbf16>, vector<768x3xbf16>, vector<2x3xf32> -> vector<2x3xf32>
      %c0_11 = arith.constant 0 : index
      %c0_12 = arith.constant 0 : index
      %21 = vector.load %arg16[%c0_11, %c0_12] : memref<1x3xf32, #tpu.memory_space<vmem>>, vector<1x3xf32>
      %22 = vector.broadcast %21 : vector<1x3xf32> to vector<2x3xf32>
      %23 = arith.addf %20, %22 : vector<2x3xf32>
      %cst_13 = arith.constant dense<0xFF800000> : vector<2xf32>
      %24 = vector.multi_reduction <maximumf>, %23, %cst_13 [1] : vector<2x3xf32> to vector<2xf32>
      %25 = vector.shape_cast %24 : vector<2xf32> to vector<2x1xf32>
      %26 = vector.broadcast %25 : vector<2x1xf32> to vector<2x3xf32>
      %27 = arith.subf %23, %26 : vector<2x3xf32>
      %28 = math.exp %27 : vector<2x3xf32>
      %cst_14 = arith.constant dense<0.000000e+00> : vector<2xf32>
      %29 = vector.multi_reduction <add>, %28, %cst_14 [1] : vector<2x3xf32> to vector<2xf32>
      %30 = vector.shape_cast %29 : vector<2xf32> to vector<2x1xf32>
      %31 = vector.broadcast %30 : vector<2x1xf32> to vector<2x3xf32>
      %32 = arith.divf %28, %31 : vector<2x3xf32>
      %c4_i32_15 = arith.constant 4 : i32
      %33 = arith.subi %arg0, %c4_i32_15 : i32
      %34 = tpu.iota {dimensions = array<i32: 1>} : vector<2x3xi32>
      %35 = vector.broadcast %33 : i32 to vector<2x3xi32>
      %36 = arith.cmpi eq, %34, %35 : vector<2x3xi32>
      %cst_16 = arith.constant 0.000000e+00 : f32
      %37 = vector.broadcast %cst_16 : f32 to vector<2x3xf32>
      %38 = arith.select %36, %32, %37 : vector<2x3xi1>, vector<2x3xf32>
      %cst_17 = arith.constant dense<0.000000e+00> : vector<2xf32>
      %39 = vector.multi_reduction <add>, %38, %cst_17 [1] : vector<2x3xf32> to vector<2xf32>
      %40 = vector.shape_cast %39 : vector<2xf32> to vector<2x1xf32>
      %c0_18 = arith.constant 0 : index
      %c0_19 = arith.constant 0 : index
      %c0_20 = arith.constant 0 : index
      %41 = vector.load %arg17[%c0_18, %c0_19, %c0_20] : memref<1x768x512xi8, #tpu.memory_space<vmem>>, vector<1x768x512xi8>
      %42 = vector.shape_cast %41 : vector<1x768x512xi8> to vector<768x512xi8>
      %43 = arith.sitofp %42 : vector<768x512xi8> to vector<768x512xf32>
      %44 = arith.truncf %43 : vector<768x512xf32> to vector<768x512xbf16>
      %cst_21 = arith.constant dense<0.000000e+00> : vector<2x512xf32>
      %45 = tpu.matmul %18, %44, %cst_21 {dimension_numbers = #tpu.dot_dimension_numbers<[1], [0], [0], [1], [0, 0, 1, 1], [], []>} : vector<2x768xbf16>, vector<768x512xbf16>, vector<2x512xf32> -> vector<2x512xf32>
      %c0_22 = arith.constant 0 : index
      %c0_23 = arith.constant 0 : index
      %c0_24 = arith.constant 0 : index
      %46 = vector.load %arg18[%c0_22, %c0_23, %c0_24] : memref<1x1x512xf32, #tpu.memory_space<vmem>>, vector<1x1x512xf32>
      %47 = vector.shape_cast %46 : vector<1x1x512xf32> to vector<1x512xf32>
      %48 = vector.broadcast %47 : vector<1x512xf32> to vector<2x512xf32>
      %49 = arith.mulf %45, %48 : vector<2x512xf32>
      %c0_25 = arith.constant 0 : index
      %c0_26 = arith.constant 0 : index
      %c0_27 = arith.constant 0 : index
      %50 = vector.load %arg19[%c0_25, %c0_26, %c0_27] : memref<1x1x512xf32, #tpu.memory_space<vmem>>, vector<1x1x512xf32>
      %51 = vector.shape_cast %50 : vector<1x1x512xf32> to vector<1x512xf32>
      %52 = vector.broadcast %51 : vector<1x512xf32> to vector<2x512xf32>
      %53 = arith.addf %49, %52 : vector<2x512xf32>
      %cst_28 = arith.constant 0.000000e+00 : f32
      %54 = vector.broadcast %cst_28 : f32 to vector<2x512xf32>
      %55 = arith.maximumf %53, %54 : vector<2x512xf32>
      %56 = arith.truncf %55 : vector<2x512xf32> to vector<2x512xbf16>
      %c0_29 = arith.constant 0 : index
      %c0_30 = arith.constant 0 : index
      %c0_31 = arith.constant 0 : index
      %57 = vector.load %arg20[%c0_29, %c0_30, %c0_31] : memref<1x512x512xi8, #tpu.memory_space<vmem>>, vector<1x512x512xi8>
      %58 = vector.shape_cast %57 : vector<1x512x512xi8> to vector<512x512xi8>
      %59 = arith.sitofp %58 : vector<512x512xi8> to vector<512x512xf32>
      %60 = arith.truncf %59 : vector<512x512xf32> to vector<512x512xbf16>
      %cst_32 = arith.constant dense<0.000000e+00> : vector<2x512xf32>
      %61 = tpu.matmul %56, %60, %cst_32 {dimension_numbers = #tpu.dot_dimension_numbers<[1], [0], [0], [1], [0, 0, 1, 1], [], []>} : vector<2x512xbf16>, vector<512x512xbf16>, vector<2x512xf32> -> vector<2x512xf32>
      %c0_33 = arith.constant 0 : index
      %c0_34 = arith.constant 0 : index
      %c0_35 = arith.constant 0 : index
      %62 = vector.load %arg21[%c0_33, %c0_34, %c0_35] : memref<1x1x512xf32, #tpu.memory_space<vmem>>, vector<1x1x512xf32>
      %63 = vector.shape_cast %62 : vector<1x1x512xf32> to vector<1x512xf32>
      %64 = vector.broadcast %63 : vector<1x512xf32> to vector<2x512xf32>
      %65 = arith.mulf %61, %64 : vector<2x512xf32>
      %c0_36 = arith.constant 0 : index
      %c0_37 = arith.constant 0 : index
      %c0_38 = arith.constant 0 : index
      %66 = vector.load %arg22[%c0_36, %c0_37, %c0_38] : memref<1x1x512xf32, #tpu.memory_space<vmem>>, vector<1x1x512xf32>
      %67 = vector.shape_cast %66 : vector<1x1x512xf32> to vector<1x512xf32>
      %68 = vector.broadcast %67 : vector<1x512xf32> to vector<2x512xf32>
      %69 = arith.addf %65, %68 : vector<2x512xf32>
      %c0_39 = arith.constant 0 : index
      %c0_40 = arith.constant 0 : index
      %70 = vector.load %arg28[%c0_39, %c0_40] : memref<2x512xf32, #tpu.memory_space<vmem>>, vector<2x512xf32>
      %71 = vector.broadcast %40 : vector<2x1xf32> to vector<2x512xf32>
      %72 = arith.mulf %71, %69 : vector<2x512xf32>
      %73 = arith.addf %70, %72 : vector<2x512xf32>
      %c0_41 = arith.constant 0 : index
      %c0_42 = arith.constant 0 : index
      %74 = vector.load %arg28[%c0_41, %c0_42] : memref<2x512xf32, #tpu.memory_space<vmem>>, vector<2x512xf32>
      tpu.vector_store %arg28[%c0_41, %c0_42], %73 {strides = array<i32>} : memref<2x512xf32, #tpu.memory_space<vmem>>, vector<2x512xf32>,
    } else {
    }
    %c7_i32_6 = arith.constant 7 : i32
    %14 = arith.cmpi eq, %arg0, %c7_i32_6 : i32
    %15 = arith.extui %14 : i1 to i32
    %c0_i32_7 = arith.constant 0 : i32
    %16 = arith.cmpi ne, %15, %c0_i32_7 : i32
    scf.if %16 {
      %c0 = arith.constant 0 : index
      %c0_8 = arith.constant 0 : index
      %17 = vector.load %arg28[%c0, %c0_8] : memref<2x512xf32, #tpu.memory_space<vmem>>, vector<2x512xf32>
      %18 = arith.truncf %17 : vector<2x512xf32> to vector<2x512xbf16>
      %c0_9 = arith.constant 0 : index
      %c0_10 = arith.constant 0 : index
      %19 = vector.load %arg23[%c0_9, %c0_10] : memref<512x1024xi8, #tpu.memory_space<vmem>>, vector<512x1024xi8>
      %20 = arith.sitofp %19 : vector<512x1024xi8> to vector<512x1024xf32>
      %21 = arith.truncf %20 : vector<512x1024xf32> to vector<512x1024xbf16>
      %cst = arith.constant dense<0.000000e+00> : vector<2x1024xf32>
      %22 = tpu.matmul %18, %21, %cst {dimension_numbers = #tpu.dot_dimension_numbers<[1], [0], [0], [1], [0, 0, 1, 1], [], []>} : vector<2x512xbf16>, vector<512x1024xbf16>, vector<2x1024xf32> -> vector<2x1024xf32>
      %c0_11 = arith.constant 0 : index
      %c0_12 = arith.constant 0 : index
      %23 = vector.load %arg24[%c0_11, %c0_12] : memref<1x1024xf32, #tpu.memory_space<vmem>>, vector<1x1024xf32>
      %24 = vector.broadcast %23 : vector<1x1024xf32> to vector<2x1024xf32>
      %25 = arith.mulf %22, %24 : vector<2x1024xf32>
      %c0_13 = arith.constant 0 : index
      %c0_14 = arith.constant 0 : index
      %26 = vector.load %arg25[%c0_13, %c0_14] : memref<1x1024xf32, #tpu.memory_space<vmem>>, vector<1x1024xf32>
      %27 = vector.broadcast %26 : vector<1x1024xf32> to vector<2x1024xf32>
      %28 = arith.addf %25, %27 : vector<2x1024xf32>
      %c0_15 = arith.constant 0 : index
      %c0_16 = arith.constant 0 : index
      %29 = vector.load %arg26[%c0_15, %c0_16] : memref<2x1024xf32, #tpu.memory_space<vmem>>, vector<2x1024xf32>
      tpu.vector_store %arg26[%c0_15, %c0_16], %28 {strides = array<i32>} : memref<2x1024xf32, #tpu.memory_space<vmem>>, vector<2x1024xf32>,
    } else {
    }
    return
  }
  func.func @transform_0(%arg0: i32) -> (i32, i32) {
    %c0_i32 = arith.constant 0 : i32
    %c0_i32_0 = arith.constant 0 : i32
    %c0_i32_1 = arith.constant 0 : i32
    return %c0_i32, %c0_i32_0 : i32, i32
  }
  func.func @transform_1(%arg0: i32) -> (i32, i32, i32) {
    %c0_i32 = arith.constant 0 : i32
    %c0_i32_0 = arith.constant 0 : i32
    %c0_i32_1 = arith.constant 0 : i32
    %c0_i32_2 = arith.constant 0 : i32
    return %c0_i32, %c0_i32_0, %c0_i32_1 : i32, i32, i32
  }
  func.func @transform_2(%arg0: i32) -> (i32, i32, i32) {
    %c3_i32 = arith.constant 3 : i32
    %0 = arith.minsi %arg0, %c3_i32 : i32
    %c0_i32 = arith.constant 0 : i32
    %c0_i32_0 = arith.constant 0 : i32
    %c0_i32_1 = arith.constant 0 : i32
    return %0, %c0_i32, %c0_i32_0 : i32, i32, i32
  }
  func.func @transform_3(%arg0: i32) -> (i32, i32, i32) {
    %c3_i32 = arith.constant 3 : i32
    %0 = arith.minsi %arg0, %c3_i32 : i32
    %c0_i32 = arith.constant 0 : i32
    %c0_i32_0 = arith.constant 0 : i32
    %c0_i32_1 = arith.constant 0 : i32
    return %0, %c0_i32, %c0_i32_0 : i32, i32, i32
  }
  func.func @transform_4(%arg0: i32) -> (i32, i32, i32) {
    %c3_i32 = arith.constant 3 : i32
    %0 = arith.minsi %arg0, %c3_i32 : i32
    %c0_i32 = arith.constant 0 : i32
    %c0_i32_0 = arith.constant 0 : i32
    %c0_i32_1 = arith.constant 0 : i32
    return %0, %c0_i32, %c0_i32_0 : i32, i32, i32
  }
  func.func @transform_5(%arg0: i32) -> (i32, i32, i32) {
    %c3_i32 = arith.constant 3 : i32
    %0 = arith.minsi %arg0, %c3_i32 : i32
    %c0_i32 = arith.constant 0 : i32
    %c0_i32_0 = arith.constant 0 : i32
    %c0_i32_1 = arith.constant 0 : i32
    return %0, %c0_i32, %c0_i32_0 : i32, i32, i32
  }
  func.func @transform_6(%arg0: i32) -> (i32, i32, i32) {
    %c3_i32 = arith.constant 3 : i32
    %0 = arith.minsi %arg0, %c3_i32 : i32
    %c0_i32 = arith.constant 0 : i32
    %c0_i32_0 = arith.constant 0 : i32
    %c0_i32_1 = arith.constant 0 : i32
    return %0, %c0_i32, %c0_i32_0 : i32, i32, i32
  }
  func.func @transform_7(%arg0: i32) -> (i32, i32, i32) {
    %c3_i32 = arith.constant 3 : i32
    %0 = arith.minsi %arg0, %c3_i32 : i32
    %c0_i32 = arith.constant 0 : i32
    %c0_i32_0 = arith.constant 0 : i32
    %c0_i32_1 = arith.constant 0 : i32
    return %0, %c0_i32, %c0_i32_0 : i32, i32, i32
  }
  func.func @transform_8(%arg0: i32) -> (i32, i32, i32) {
    %c3_i32 = arith.constant 3 : i32
    %0 = arith.minsi %arg0, %c3_i32 : i32
    %c0_i32 = arith.constant 0 : i32
    %c0_i32_0 = arith.constant 0 : i32
    %c0_i32_1 = arith.constant 0 : i32
    return %0, %c0_i32, %c0_i32_0 : i32, i32, i32
  }
  func.func @transform_9(%arg0: i32) -> (i32, i32, i32) {
    %c3_i32 = arith.constant 3 : i32
    %0 = arith.minsi %arg0, %c3_i32 : i32
    %c0_i32 = arith.constant 0 : i32
    %c0_i32_0 = arith.constant 0 : i32
    %c0_i32_1 = arith.constant 0 : i32
    return %0, %c0_i32, %c0_i32_0 : i32, i32, i32
  }
  func.func @transform_10(%arg0: i32) -> (i32, i32, i32) {
    %c3_i32 = arith.constant 3 : i32
    %0 = arith.minsi %arg0, %c3_i32 : i32
    %c0_i32 = arith.constant 0 : i32
    %c0_i32_0 = arith.constant 0 : i32
    %c0_i32_1 = arith.constant 0 : i32
    return %0, %c0_i32, %c0_i32_0 : i32, i32, i32
  }
  func.func @transform_11(%arg0: i32) -> (i32, i32, i32) {
    %c3_i32 = arith.constant 3 : i32
    %0 = arith.minsi %arg0, %c3_i32 : i32
    %c0_i32 = arith.constant 0 : i32
    %c0_i32_0 = arith.constant 0 : i32
    %c0_i32_1 = arith.constant 0 : i32
    return %0, %c0_i32, %c0_i32_0 : i32, i32, i32
  }
  func.func @transform_12(%arg0: i32) -> (i32, i32, i32) {
    %c3_i32 = arith.constant 3 : i32
    %0 = arith.minsi %arg0, %c3_i32 : i32
    %c0_i32 = arith.constant 0 : i32
    %c0_i32_0 = arith.constant 0 : i32
    %c0_i32_1 = arith.constant 0 : i32
    return %0, %c0_i32, %c0_i32_0 : i32, i32, i32
  }
  func.func @transform_13(%arg0: i32) -> (i32, i32) {
    %c0_i32 = arith.constant 0 : i32
    %c0_i32_0 = arith.constant 0 : i32
    %c0_i32_1 = arith.constant 0 : i32
    return %c0_i32, %c0_i32_0 : i32, i32
  }
  func.func @transform_14(%arg0: i32) -> (i32, i32) {
    %c0_i32 = arith.constant 0 : i32
    %c0_i32_0 = arith.constant 0 : i32
    %c0_i32_1 = arith.constant 0 : i32
    return %c0_i32, %c0_i32_0 : i32, i32
  }
  func.func @transform_15(%arg0: i32) -> (i32, i32) {
    %c0_i32 = arith.constant 0 : i32
    %c0_i32_0 = arith.constant 0 : i32
    %c0_i32_1 = arith.constant 0 : i32
    return %c0_i32, %c0_i32_0 : i32, i32
  }
  func.func @transform_16(%arg0: i32) -> (i32, i32, i32) {
    %c4_i32 = arith.constant 4 : i32
    %0 = arith.subi %arg0, %c4_i32 : i32
    %c0_i32 = arith.constant 0 : i32
    %c2_i32 = arith.constant 2 : i32
    %1 = arith.maxsi %c0_i32, %0 : i32
    %2 = arith.minsi %c2_i32, %1 : i32
    %c0_i32_0 = arith.constant 0 : i32
    %c0_i32_1 = arith.constant 0 : i32
    %c0_i32_2 = arith.constant 0 : i32
    return %2, %c0_i32_0, %c0_i32_1 : i32, i32, i32
  }
  func.func @transform_17(%arg0: i32) -> (i32, i32, i32) {
    %c4_i32 = arith.constant 4 : i32
    %0 = arith.subi %arg0, %c4_i32 : i32
    %c0_i32 = arith.constant 0 : i32
    %c2_i32 = arith.constant 2 : i32
    %1 = arith.maxsi %c0_i32, %0 : i32
    %2 = arith.minsi %c2_i32, %1 : i32
    %c0_i32_0 = arith.constant 0 : i32
    %c0_i32_1 = arith.constant 0 : i32
    %c0_i32_2 = arith.constant 0 : i32
    return %2, %c0_i32_0, %c0_i32_1 : i32, i32, i32
  }
  func.func @transform_18(%arg0: i32) -> (i32, i32, i32) {
    %c4_i32 = arith.constant 4 : i32
    %0 = arith.subi %arg0, %c4_i32 : i32
    %c0_i32 = arith.constant 0 : i32
    %c2_i32 = arith.constant 2 : i32
    %1 = arith.maxsi %c0_i32, %0 : i32
    %2 = arith.minsi %c2_i32, %1 : i32
    %c0_i32_0 = arith.constant 0 : i32
    %c0_i32_1 = arith.constant 0 : i32
    %c0_i32_2 = arith.constant 0 : i32
    return %2, %c0_i32_0, %c0_i32_1 : i32, i32, i32
  }
  func.func @transform_19(%arg0: i32) -> (i32, i32, i32) {
    %c4_i32 = arith.constant 4 : i32
    %0 = arith.subi %arg0, %c4_i32 : i32
    %c0_i32 = arith.constant 0 : i32
    %c2_i32 = arith.constant 2 : i32
    %1 = arith.maxsi %c0_i32, %0 : i32
    %2 = arith.minsi %c2_i32, %1 : i32
    %c0_i32_0 = arith.constant 0 : i32
    %c0_i32_1 = arith.constant 0 : i32
    %c0_i32_2 = arith.constant 0 : i32
    return %2, %c0_i32_0, %c0_i32_1 : i32, i32, i32
  }
  func.func @transform_20(%arg0: i32) -> (i32, i32, i32) {
    %c4_i32 = arith.constant 4 : i32
    %0 = arith.subi %arg0, %c4_i32 : i32
    %c0_i32 = arith.constant 0 : i32
    %c2_i32 = arith.constant 2 : i32
    %1 = arith.maxsi %c0_i32, %0 : i32
    %2 = arith.minsi %c2_i32, %1 : i32
    %c0_i32_0 = arith.constant 0 : i32
    %c0_i32_1 = arith.constant 0 : i32
    %c0_i32_2 = arith.constant 0 : i32
    return %2, %c0_i32_0, %c0_i32_1 : i32, i32, i32
  }
  func.func @transform_21(%arg0: i32) -> (i32, i32, i32) {
    %c4_i32 = arith.constant 4 : i32
    %0 = arith.subi %arg0, %c4_i32 : i32
    %c0_i32 = arith.constant 0 : i32
    %c2_i32 = arith.constant 2 : i32
    %1 = arith.maxsi %c0_i32, %0 : i32
    %2 = arith.minsi %c2_i32, %1 : i32
    %c0_i32_0 = arith.constant 0 : i32
    %c0_i32_1 = arith.constant 0 : i32
    %c0_i32_2 = arith.constant 0 : i32
    return %2, %c0_i32_0, %c0_i32_1 : i32, i32, i32
  }
  func.func @transform_22(%arg0: i32) -> (i32, i32) {
    %c0_i32 = arith.constant 0 : i32
    %c0_i32_0 = arith.constant 0 : i32
    %c0_i32_1 = arith.constant 0 : i32
    return %c0_i32, %c0_i32_0 : i32, i32
  }
  func.func @transform_23(%arg0: i32) -> (i32, i32) {
    %c0_i32 = arith.constant 0 : i32
    %c0_i32_0 = arith.constant 0 : i32
    %c0_i32_1 = arith.constant 0 : i32
    return %c0_i32, %c0_i32_0 : i32, i32
  }
  func.func @transform_24(%arg0: i32) -> (i32, i32) {
    %c0_i32 = arith.constant 0 : i32
    %c0_i32_0 = arith.constant 0 : i32
    %c0_i32_1 = arith.constant 0 : i32
    return %c0_i32, %c0_i32_0 : i32, i32
  }
  func.func @transform_25(%arg0: i32) -> (i32, i32) {
    %c0_i32 = arith.constant 0 : i32
    %c0_i32_0 = arith.constant 0 : i32
    %c0_i32_1 = arith.constant 0 : i32
    return %c0_i32, %c0_i32_0 : i32, i32
  }
}

</mosaic_0001>

<bundles_post_ra>
// kernel: vqa_forward.1
= control target key start
LH: loop header
LB: loop body
LE: loop exit
PB: predicated region body
PF: predicated region fallthrough
CT: control target
= control target key end

     0   :  { %s7736_s0 = inlined_call_operand.vmem [shape: bf16[2,768], index: 0, kind: input, shape index: {}]   ;;  %s7737_s1 = inlined_call_operand.vmem [shape: bf16[2,8,768], index: 1, kind: input, shape index: {}]   ;;  %s7738_s2 = inlined_call_operand.vmem [shape: s8[4,768,192], index: 2, kind: input, shape index: {}]   ;;  %s7739_s3 = inlined_call_operand.vmem [shape: f32[4,1,192], index: 3, kind: input, shape index: {}]   ;;  %s7740_s4 = inlined_call_operand.vmem [shape: f32[4,1,192], index: 4, kind: input, shape index: {}]   ;;  %s7741_s5 = inlined_call_operand.vmem [shape: s8[4,768,192], index: 5, kind: input, shape index: {}]   ;;  %s7742_s6 = inlined_call_operand.vmem [shape: f32[4,1,192], index: 6, kind: input, shape index: {}]   ;;  %s7743_s7 = inlined_call_operand.vmem [shape: f32[4,1,192], index: 7, kind: input, shape index: {}]   ;;  %s7744_s8 = inlined_call_operand.vmem [shape: s8[4,768,192], index: 8, kind: input, shape index: {}]   ;;  %s7745_s9 = inlined_call_operand.vmem [shape: f32[4,1,192], index: 9, kind: input, shape index: {}]   ;;  %s7746_s10 = inlined_call_operand.vmem [shape: f32[4,1,192], index: 10, kind: input, shape index: {}]   ;;  %s7747_s11 = inlined_call_operand.vmem [shape: s8[4,192,768], index: 11, kind: input, shape index: {}]   ;;  %s7748_s12 = inlined_call_operand.vmem [shape: f32[4,1,768], index: 12, kind: input, shape index: {}]   ;;  %s7749_s13 = inlined_call_operand.vmem [shape: f32[1,768], index: 13, kind: input, shape index: {}]   ;;  %s7750_s14 = inlined_call_operand.vmem [shape: bf16[768,3], index: 14, kind: input, shape index: {}]   ;;  %s7751_s15 = inlined_call_operand.vmem [shape: f32[1,3], index: 15, kind: input, shape index: {}]   ;;  %s7752_s16 = inlined_call_operand.vmem [shape: s8[3,768,512], index: 16, kind: input, shape index: {}]   ;;  %s7753_s17 = inlined_call_operand.vmem [shape: f32[3,1,512], index: 17, kind: input, shape index: {}]   ;;  %s7754_s18 = inlined_call_operand.vmem [shape: f32[3,1,512], index: 18, kind: input, shape index: {}]   ;;  %s7755_s19 = inlined_call_operand.vmem [shape: s8[3,512,512], index: 19, kind: input, shape index: {}]   ;;  %s7756_s20 = inlined_call_operand.vmem [shape: f32[3,1,512], index: 20, kind: input, shape index: {}]   ;;  %s7757_s21 = inlined_call_operand.vmem [shape: f32[3,1,512], index: 21, kind: input, shape index: {}]   ;;  %s7758_s22 = inlined_call_operand.vmem [shape: s8[512,1024], index: 22, kind: input, shape index: {}]   ;;  %s7759_s23 = inlined_call_operand.vmem [shape: f32[1,1024], index: 23, kind: input, shape index: {}]   ;;  %s7760_s24 = inlined_call_operand.vmem [shape: f32[1,1024], index: 24, kind: input, shape index: {}]   ;;  %s7761_s25 = inlined_call_operand.hbm [shape: f32[2,1024], index: 25, kind: output, shape index: {}]  }
   0x1   :  { %7773 = sst [smem:[#allocation12_spill]] %s7736_s0 }
   0x2   :  { %7774 = sst [smem:[#allocation13_spill]] %s7737_s1 }
   0x3   :  { %7775 = sst [smem:[#allocation14_spill]] %s7738_s2 }
   0x4   :  { %7776 = sst [smem:[#allocation15_spill]] %s7739_s3 }
   0x5   :  { %7777 = sst [smem:[#allocation16_spill]] %s7740_s4 }
   0x6   :  { %7778 = sst [smem:[#allocation17_spill]] %s7741_s5 }
   0x7   :  { %7779 = sst [smem:[#allocation18_spill]] %s7742_s6 }
   0x8   :  { %7780 = sst [smem:[#allocation19_spill]] %s7743_s7 }
   0x9   :  { %7781 = sst [smem:[#allocation20_spill]] %s7744_s8 }
   0xa   :  { %7782 = sst [smem:[#allocation21_spill]] %s7745_s9 }
   0xb   :  { %7783 = sst [smem:[#allocation22_spill]] %s7749_s13 }
   0xc   :  { %7784 = sst [smem:[#allocation23_spill]] %s7750_s14 }
   0xd   :  { %7785 = sst [smem:[#allocation24_spill]] %s7751_s15 }
   0xe   :  { %7786 = sst [smem:[#allocation25_spill]] %s7756_s20 }
   0xf   :  { %7787 = sst [smem:[#allocation26_spill]] %s7757_s21 }
  0x10   :  { %7788 = sst [smem:[#allocation27_spill]] %s7758_s22 }
  0x11   :  { %7789 = sst [smem:[#allocation28_spill]] %s7759_s23 }
  0x12   :  { %7790 = sst [smem:[#allocation29_spill]] %s7760_s24 }
  0x13   :  { %7791 = sst [smem:[#allocation30_spill]] %s7761_s25 }
  0x14   :  { %30 = vsyncpa [#allocation5], 0  ;;  %s6319_s29 = smov 0  }
  0x15 LB: > { %7792 = sst [smem:[#allocation7_spill]] %s6178_s29  ;;  %s6325_s2 = sadd.s32 4294967295, %s6178_s29   ;;  %s6178_s29 = sphi %s6319_s29, %s36_s29  }
  0x16   : > { %7793 = sst [smem:[#allocation8_spill]] %s6325_s2  ;;  %p5785_p0 = scmp.ge.s32.totalorder %s6178_s29, 1 }
  0x17   : > { %p1040_p1 = scmp.lt.s32.totalorder %s6178_s29, 9 }
  0x19   : > { %p1041_p2 = pnand %p5785_p0, %p1040_p1 }
  0x1b   : > { %1044 = sbr.rel (%p1041_p2) target bundleno = 2768 (0xad0), region = 120 }
  0x20   : > { %p1224_p3 = scmp.lt.s32.totalorder %s6325_s2, 3  ;;  %s6331_s6 = sadd.s32 4294967292, %s6325_s2 }
  0x21   : > { %7794 = sst [smem:[#allocation9_spill]] %s6331_s6  ;;  %p1317_p4 = scmp.gt.s32.totalorder %s6331_s6, 0 }
  0x22   : > { %p5830_p5 = scmp.lt.s32.totalorder %s6331_s6, 2  ;;  %s7797_s24 = sld [smem:[#allocation14_spill]] }
  0x23   : > { %s1225_s30 = scalar_select %p1224_p3, %s6325_s2, 3 }
  0x24   : > { %s1318_s7 = scalar_select %p1317_p4, %s6331_s6, 0 }
  0x25   : > { %s7841_s30 = smov (!%p1224_p3, %s1225_s30), 3  ;;  %s7799_s15 = sld [smem:[#allocation17_spill]] }
  0x26   : > { %s7843_s7 = smov (!%p5830_p5, %s1318_s7), 2  ;;  %s6043_s3 = smul.u32 384, %s7841_s30 }
  0x27   : > { %s6337_s26 = sshll.u32 %s7841_s30, 1  ;;  %s7803_s5 = sld [smem:[#allocation20_spill]] }
  0x28   : > { %s6350_s23 = scalar_lea.vmem %s7797_s24, %s6043_s3  ;;  %s6045_s1 = smul.u32 6, %s7841_s30 }
  0x29   : > { %7798 = sst [smem:[#allocation10_spill]] %s6350_s23  ;;  %p1321_p6 = scmp.lt.s32.totalorder %s7843_s7, 2 }
  0x2a   : > { %s7805_s6 = sld [smem:[#allocation25_spill]] }
  0x2b   : > { %s6355_s14 = scalar_lea.vmem %s7799_s15, %s6043_s3  ;;  %s7845_s7 = smov (!%p1321_p6, %s7843_s7), 2 }
  0x2c   : > { %7800 = sst [smem:[#allocation11_spill]] %s6355_s14  ;;  %s6044_s14 = smul.u32 288, %s7841_s30 }
  0x2d   : > { %s6368_s0 = scalar_lea.vmem %s7803_s5, %s6043_s3  ;;  %s6386_s3 = scalar_lea.vmem %s7748_s12, %s6045_s1 }
  0x2e   : > { %s6381_s21 = scalar_lea.vmem %s7747_s11, %s6044_s14  ;;  %s6046_s28 = smul.u32 768, %s7845_s7 }
  0x2f   : > { %s6388_s9 = sshll.u32 %s7845_s7, 2  ;;  %s5972_s13 = sshll.u32 %s7845_s7, 9 }
  0x30   : > { %s1353_s29 = scalar_lea.vmem %s7754_s18, %s6388_s9  ;;  %s6401_s1 = scalar_lea.vmem %s7752_s16, %s6046_s28 }
  0x31   : > { %s6406_s27 = scalar_lea.vmem %s7755_s19, %s5972_s13  ;;  %s1382_s23 = scalar_lea.vmem %s7805_s6, %s6388_s9 }
  0x32   : > { %s7806_s2 = sld [smem:[#allocation26_spill]] }
  0x33   : > { %s7807_s14 = sld [smem:[#allocation8_spill]] }
  0x38   : > { %s1396_s25 = scalar_lea.vmem %s7806_s2, %s6388_s9 }
  0x39   : > { %p5872_p7 = scmp.ne.s32.totalorder %s7807_s14, 0 }
  0x3b   : > { %1406 = sbr.rel (%p5872_p7) target bundleno = 66 (0x42), region = 124 }
  0x40   : > { %v6180_v0 = vmov 0.0  }
  0x41   : > { %1407 = vst [vmem:[#allocation2] sm:$0xff] %v6180_v0  ;;  %1408 = vst [vmem:[#allocation2 + $0x8] sm:$0xf] %v6180_v0 }
  0x42 PF: > { %s7808_s7 = sld [smem:[#allocation8_spill]] }
  0x48   : > { %p5873_p8 = scmp.ge.s32.totalorder %s7808_s7, 4 }
  0x49   : > { %s7809_s28 = sld [smem:[#allocation10_spill]] (!%p5873_p8)  ;;  %s7823_s7 = scalar_lea.vmem (!%p5873_p8), %s7746_s10, %s6337_s26 }
  0x4a   : > { %1412 = sbr.rel (%p5873_p8) target bundleno = 1478 (0x5c6), region = 128  ;;  %s7810_s6 = sld [smem:[#allocation12_spill]] (!%p5873_p8) }
  0x4b   : > { %s7811_s30 = sld [smem:[#allocation11_spill]] (!%p5873_p8) }
  0x4c   : > { %s7812_s13 = sld [smem:[#allocation13_spill]] (!%p5873_p8) }
  0x4d   : > { %s7813_s15 = sld [smem:[#allocation15_spill]] (!%p5873_p8) }
  0x4e   : > { %s7815_s24 = sld [smem:[#allocation16_spill]] (!%p5873_p8) }
  0x4f   : > { %v1427_v1 = vld [vmem:[%s7809_s28 + $0x38] sm:$0xff]  ;;  %v1426_v3 = vld [vmem:[%s7809_s28 + $0x30] sm:$0xff]  ;;  %v1425_v11 = vld [vmem:[%s7809_s28 + $0x28] sm:$0xff]  ;;  %v1569_v31 = vlaneseq  ;;  %v6181_v36 = vmov 1966171168   ;;  %s7817_s20 = sld [smem:[#allocation18_spill]] }
  0x50   : > { %v1443_v2 = vld [vmem:[%s7809_s28 + $0xb8] sm:$0xff]  ;;  %v1481_v4 = vunpack.c.l.s8.bf16 %v1427_v1  ;;  %v1483_v5 = vunpack.c.h.s8.bf16 %v1427_v1  ;;  %v1442_v8 = vld [vmem:[%s7809_s28 + $0xb0] sm:$0xff]  ;;  %v1482_v9 = vunpack.c.h.s8.bf16 %v1426_v3  ;;  %v1441_v12 = vld [vmem:[%s7809_s28 + $0xa8] sm:$0xff]  ;;  %v1480_v13 = vunpack.c.l.s8.bf16 %v1426_v3  ;;  %s7819_s22 = sld [smem:[#allocation19_spill]] }
  0x51   : > { %v1513_v6 = vunpack.c.l.s8.bf16 %v1443_v2  ;;  %v1515_v7 = vunpack.c.h.s8.bf16 %v1443_v2  ;;  %v1514_v10 = vunpack.c.h.s8.bf16 %v1442_v8  ;;  %v1512_v14 = vunpack.c.l.s8.bf16 %v1442_v8  ;;  %v1424_v17 = vld [vmem:[%s7809_s28 + $0x20] sm:$0xff]  ;;  %v1423_v23 = vld [vmem:[%s7809_s28 + $0x18] sm:$0xff]  ;;  %v1422_v29 = vld [vmem:[%s7809_s28 + $0x10] sm:$0xff]  ;;  %s7821_s4 = sld [smem:[#allocation21_spill]] }
  0x52   : > { %1618 = vmatprep.subr.bf16.mxu0 %v1483_v5  ;;  %v1479_v15 = vunpack.c.h.s8.bf16 %v1425_v11  ;;  %v1511_v16 = vunpack.c.h.s8.bf16 %v1441_v12  ;;  %v1440_v18 = vld [vmem:[%s7809_s28 + $0xa0] sm:$0xff]  ;;  %v1478_v19 = vunpack.c.h.s8.bf16 %v1424_v17  ;;  %v1477_v21 = vunpack.c.l.s8.bf16 %v1425_v11  ;;  %v1439_v24 = vld [vmem:[%s7809_s28 + $0x98] sm:$0xff]  ;;  %v1438_v30 = vld [vmem:[%s7809_s28 + $0x90] sm:$0xff] }
  0x53   : > { %1659 = vmatprep.subr.bf16.mxu1 %v1515_v7  ;;  %1619 = vmatpush1.bf16.msra.mxu0 %v1482_v9  ;;  %v1510_v20 = vunpack.c.h.s8.bf16 %v1440_v18  ;;  %v1509_v22 = vunpack.c.l.s8.bf16 %v1441_v12  ;;  %v1476_v25 = vunpack.c.l.s8.bf16 %v1424_v17  ;;  %v1508_v26 = vunpack.c.l.s8.bf16 %v1440_v18  ;;  %v1421_v39 = vld [vmem:[%s7809_s28 + $0x8] sm:$0xff]  ;;  %v6440_v44 = vld [vmem:[%s7810_s6] sm:$0x3f]  ;;  %v1435_v56 = vld [vmem:[%s7809_s28 + $0x78] sm:$0xff]  ;;  %s7814_s8 = scalar_lea.vmem %s7813_s15, %s6337_s26 }
  0x54   : > { %1660 = vmatpush1.bf16.msra.mxu1 %v1514_v10  ;;  %1620 = vmatprep.subr.bf16.mxu0 %v1481_v4  ;;  %v1475_v27 = vunpack.c.h.s8.bf16 %v1423_v23  ;;  %v1507_v28 = vunpack.c.h.s8.bf16 %v1439_v24  ;;  %v1474_v32 = vunpack.c.h.s8.bf16 %v1422_v29  ;;  %v1506_v33 = vunpack.c.h.s8.bf16 %v1438_v30  ;;  %v1437_v40 = vld [vmem:[%s7809_s28 + $0x88] sm:$0xff]  ;;  %v1420_v47 = vld [vmem:[%s7809_s28] sm:$0xff]  ;;  %v1451_v57 = vld [vmem:[%s7809_s28 + $0xf8] sm:$0xff]  ;;  %s7816_s14 = scalar_lea.vmem %s7815_s24, %s6337_s26 }
  0x55   : > { %1661 = vmatprep.subr.bf16.mxu1 %v1513_v6  ;;  %v1473_v34 = vunpack.c.l.s8.bf16 %v1423_v23  ;;  %v1505_v35 = vunpack.c.l.s8.bf16 %v1439_v24  ;;  %v1567_v37 = vunpack.c.l.s4 %v6181_v36  ;;  %v6433_v38 = vshrl.u32 %v1569_v31, 7  ;;  %v1436_v48 = vld [vmem:[%s7809_s28 + $0x80] sm:$0xff]  ;;  %v1434_v61 = vld [vmem:[%s7809_s28 + $0x70] sm:$0xff]  ;;  %v1433_v6 = vld [vmem:[%s7809_s28 + $0x68] sm:$0xff]  ;;  %s7818_s2 = scalar_lea.vmem %s7817_s20, %s6337_s26 }
  0x56   : > { %v1472_v42 = vunpack.c.l.s8.bf16 %v1422_v29  ;;  %v1504_v43 = vunpack.c.l.s8.bf16 %v1438_v30  ;;  %v1471_v45 = vunpack.c.h.s8.bf16 %v1421_v39  ;;  %v1503_v46 = vunpack.c.h.s8.bf16 %v1437_v40  ;;  %v1450_v0 = vld [vmem:[%s7809_s28 + $0xf0] sm:$0xff]  ;;  %v1449_v7 = vld [vmem:[%s7809_s28 + $0xe8] sm:$0xff]  ;;  %v1432_v12 = vld [vmem:[%s7809_s28 + $0x60] sm:$0xff]  ;;  %s7820_s15 = scalar_lea.vmem %s7819_s22, %s6337_s26 }
  0x57   : > { %1621 = vmatpush1.bf16.msra.mxu0 %v1480_v13  ;;  %v1568_v41 = vunpack.c.0.s8 %v1567_v37  ;;  %v1470_v51 = vunpack.c.h.s8.bf16 %v1420_v47  ;;  %v1502_v52 = vunpack.c.h.s8.bf16 %v1436_v48  ;;  %v1469_v53 = vunpack.c.l.s8.bf16 %v1421_v39  ;;  %v1448_v13 = vld [vmem:[%s7809_s28 + $0xe0] sm:$0xff]  ;;  %v1431_v18 = vld [vmem:[%s7809_s28 + $0x58] sm:$0xff]  ;;  %v1430_v24 = vld [vmem:[%s7809_s28 + $0x50] sm:$0xff]  ;;  %s7822_s5 = scalar_lea.vmem %s7821_s4, %s6337_s26 }
  0x58   : > { %1662 = vmatpush1.bf16.msra.mxu1 %v1512_v14  ;;  %1622 = vmatprep.subr.bf16.mxu0 %v1479_v15  ;;  %v1501_v54 = vunpack.c.l.s8.bf16 %v1437_v40  ;;  %v1468_v59 = vunpack.c.l.s8.bf16 %v1420_v47  ;;  %v1500_v60 = vunpack.c.l.s8.bf16 %v1436_v48  ;;  %v1499_v62 = vunpack.c.h.s8.bf16 %v1435_v56  ;;  %v1429_v30 = vld [vmem:[%s7809_s28 + $0x48] sm:$0xff]  ;;  %v1428_v37 = vld [vmem:[%s7809_s28 + $0x40] sm:$0xff]  ;;  %v1776_v47 = vld [vmem:[%s7811_s30 + $0x38] sm:$0xff] }
  0x59   : > { %1663 = vmatprep.subr.bf16.mxu1 %v1511_v16  ;;  %v6445_v49 = vsub.s32 %v1568_v41, %v6433_v38  ;;  %v1531_v63 = vunpack.c.h.s8.bf16 %v1451_v57  ;;  %v1498_v2 = vunpack.c.h.s8.bf16 %v1434_v61  ;;  %v1530_v3 = vunpack.c.h.s8.bf16 %v1450_v0  ;;  %v1444_v39 = vld [vmem:[%s7809_s28 + $0xc0] sm:$0xff] }
  0x5a   : > { %v1497_v4 = vunpack.c.l.s8.bf16 %v1435_v56  ;;  %v1529_v5 = vunpack.c.l.s8.bf16 %v1451_v57  ;;  %v1496_v8 = vunpack.c.l.s8.bf16 %v1434_v61  ;;  %v1528_v9 = vunpack.c.l.s8.bf16 %v1450_v0  ;;  %v1775_v56 = vld [vmem:[%s7811_s30 + $0x30] sm:$0xff] }
  0x5b   : > { %1623 = vmatpush1.bf16.msra.mxu0 %v1478_v19  ;;  %v6449_v50 = vrot.slane %v6440_v44, %v6445_v49  ;;  %v1495_v10 = vunpack.c.h.s8.bf16 %v1433_v6  ;;  %v1527_v11 = vunpack.c.h.s8.bf16 %v1449_v7  ;;  %v1494_v14 = vunpack.c.h.s8.bf16 %v1432_v12  ;;  %v1447_v19 = vld [vmem:[%s7809_s28 + $0xd8] sm:$0xff] }
  0x5c   : > { %1664 = vmatpush1.bf16.msra.mxu1 %v1510_v20  ;;  %1624 = vmatprep.subr.bf16.mxu0 %v1477_v21  ;;  %v1526_v15 = vunpack.c.h.s8.bf16 %v1448_v13  ;;  %v1493_v16 = vunpack.c.l.s8.bf16 %v1433_v6  ;;  %v1525_v17 = vunpack.c.l.s8.bf16 %v1449_v7  ;;  %v1492_v20 = vunpack.c.l.s8.bf16 %v1432_v12  ;;  %v1456_v6 = vld [vmem:[%s7809_s28 + $0x120] sm:$0xff]  ;;  %v1455_v12 = vld [vmem:[%s7809_s28 + $0x118] sm:$0xff] }
  0x5d   : > { %1665 = vmatprep.subr.bf16.mxu1 %v1509_v22  ;;  %v1580_v55 = vcombine.high %v6449_v50, %v6449_v50  ;;  %v1524_v21 = vunpack.c.l.s8.bf16 %v1448_v13  ;;  %v1491_v22 = vunpack.c.h.s8.bf16 %v1431_v18  ;;  %v1523_v23 = vunpack.c.h.s8.bf16 %v1447_v19  ;;  %v1773_v7 = vld [vmem:[%s7811_s30 + $0x20] sm:$0xff]  ;;  %v1772_v13 = vld [vmem:[%s7811_s30 + $0x18] sm:$0xff] }
  0x5e   : > { %v1521_v29 = vunpack.c.l.s8.bf16 %v1447_v19  ;;  %v1565_v40 = vcombine.high %v6440_v44, %v6440_v44  ;;  %v1486_v41 = vunpack.c.h.s8.bf16 %v1428_v37  ;;  %v1484_v44 = vunpack.c.l.s8.bf16 %v1428_v37  ;;  %v1771_v19 = vld [vmem:[%s7811_s30 + $0x10] sm:$0xff]  ;;  %v1467_v37 = vld [vmem:[%s7809_s28 + $0x178] sm:$0xff] }
  0x5f   : > { %1625 = vmatpush1.bf16.msra.mxu0 %v1476_v25  ;;  %v1602_v58 = vrot.slane %v1580_v55, %v6445_v49  ;;  %v1446_v25 = vld [vmem:[%s7809_s28 + $0xd0] sm:$0xff]  ;;  %v1830_v61 = vunpack.c.l.s8.bf16 %v1776_v47  ;;  %vm2458_vm0 = vcmask 523264   ;;  %vm2481_vm1 = vcmask 1041409  }
  0x60   : > { %1666 = vmatpush1.bf16.msra.mxu1 %v1508_v26  ;;  %1626 = vmatprep.subr.bf16.mxu0 %v1475_v27  ;;  %v1490_v26 = vunpack.c.h.s8.bf16 %v1430_v24  ;;  %v1522_v27 = vunpack.c.h.s8.bf16 %v1446_v25  ;;  %v6475_v48 = vrot.slane %v1565_v40, %v6445_v49  ;;  %v1458_v55 = vld [vmem:[%s7809_s28 + $0x130] sm:$0xff]  ;;  %vm2484_vm2 = vcmask 58368  }
  0x61   : > { %1667 = vmatprep.subr.bf16.mxu1 %v1507_v28  ;;  %v1611_v1 = vcombine.high %v1602_v58, %v1602_v58  ;;  %1650 = vmatprep.mubr.bf16.mxu0 %v1602_v58  ;;  %v1489_v28 = vunpack.c.l.s8.bf16 %v1431_v18  ;;  %v1454_v18 = vld [vmem:[%s7809_s28 + $0x110] sm:$0xff] }
  0x62   : > { %v1581_v57 = vcombine.high %v6475_v48, %v6475_v48 }
  0x63   : > { %1627 = vmatpush1.bf16.msra.mxu0 %v1474_v32  ;;  %1691 = vmatprep.mubr.bf16.mxu1 %v1611_v1  ;;  %v1445_v32 = vld [vmem:[%s7809_s28 + $0xc8] sm:$0xff]  ;;  %v6489_v1 = vld [vmem:[%s7812_s13 + $0x4] ss:$24 sps:$4 sm:$0xff]  }
  0x64   : > { %1668 = vmatpush1.bf16.msra.mxu1 %v1506_v33  ;;  %1628 = vmatprep.subr.bf16.mxu0 %v1473_v34  ;;  %v1488_v33 = vunpack.c.l.s8.bf16 %v1430_v24  ;;  %v1520_v34 = vunpack.c.l.s8.bf16 %v1446_v25  ;;  %v1519_v36 = vunpack.c.h.s8.bf16 %v1445_v32  ;;  %v1609_v0 = vrot.slane %v1581_v57, %v6445_v49  ;;  %v1453_v24 = vld [vmem:[%s7809_s28 + $0x108] sm:$0xff] }
  0x65   : > { %1669 = vmatprep.subr.bf16.mxu1 %v1505_v35  ;;  %v1487_v35 = vunpack.c.h.s8.bf16 %v1429_v30  ;;  %v1770_v25 = vld [vmem:[%s7811_s30 + $0x8] sm:$0xff] }
  0x67   : > { %1629 = vmatpush1.bf16.msra.mxu0 %v1472_v42  ;;  %v1518_v42 = vunpack.c.h.s8.bf16 %v1444_v39 }
  0x68   : > { %1670 = vmatpush1.bf16.msra.mxu1 %v1504_v43  ;;  %1630 = vmatprep.subr.bf16.mxu0 %v1471_v45  ;;  %v1485_v43 = vunpack.c.l.s8.bf16 %v1429_v30  ;;  %v1517_v45 = vunpack.c.l.s8.bf16 %v1445_v32  ;;  %v1452_v30 = vld [vmem:[%s7809_s28 + $0x100] sm:$0xff] }
  0x69   : > { %1671 = vmatprep.subr.bf16.mxu1 %v1503_v46  ;;  %v1459_v46 = vld [vmem:[%s7809_s28 + $0x138] sm:$0xff]  ;;  %v1769_v32 = vld [vmem:[%s7811_s30] sm:$0xff]  ;;  %v1532_v40 = vunpack.c.l.s8.bf16 %v1452_v30 }
  0x6b   : > { %1631 = vmatpush1.bf16.msra.mxu0 %v1470_v51  ;;  %v1588_v51 = vrot.slane %v6449_v50, %v6445_v49  ;;  %v1831_v50 = vunpack.c.h.s8.bf16 %v1775_v56 }
  0x6c   : > { %1672 = vmatpush1.bf16.msra.mxu1 %v1502_v52  ;;  %1632 = vmatprep.subr.bf16.mxu0 %v1469_v53  ;;  %v1516_v52 = vunpack.c.l.s8.bf16 %v1444_v39  ;;  %v1547_v53 = vunpack.c.h.s8.bf16 %v1459_v46  ;;  %v1784_v39 = vld [vmem:[%s7811_s30 + $0x78] sm:$0xff] }
  0x6d   : > { %1673 = vmatprep.subr.bf16.mxu1 %v1501_v54  ;;  %v1832_v54 = vunpack.c.h.s8.bf16 %v1776_v47  ;;  %v1610_v58 = vcombine.high %v1588_v51, %v1588_v51 }
  0x6f   : > { %1633 = vmatpush1.bf16.msra.mxu0 %v1468_v59  ;;  %v1546_v59 = vunpack.c.h.s8.bf16 %v1458_v55 }
  0x70   : > { %1674 = vmatpush1.bf16.msra.mxu1 %v1500_v60  ;;  %1634 = vmatprep.subr.bf16.mxu0 %v1499_v62  ;;  %v1545_v60 = vunpack.c.l.s8.bf16 %v1459_v46  ;;  %v1457_v62 = vld [vmem:[%s7809_s28 + $0x128] sm:$0xff]  ;;  %v1783_v46 = vld [vmem:[%s7811_s30 + $0x70] sm:$0xff] }
  0x71   : > { %1675 = vmatprep.subr.bf16.mxu1 %v1531_v63  ;;  %v1774_v63 = vld [vmem:[%s7811_s30 + $0x28] sm:$0xff] }
  0x73   : > { %1635 = vmatpush2.bf16.msra.mxu0 %v1498_v2  ;;  %v1544_v2 = vunpack.c.l.s8.bf16 %v1458_v55 }
  0x74   : > { %1676 = vmatpush2.bf16.msra.mxu1 %v1530_v3  ;;  %1636 = vmatprep.subr.bf16.mxu0 %v1497_v4  ;;  %v1829_v3 = vunpack.c.l.s8.bf16 %v1775_v56  ;;  %v1543_v4 = vunpack.c.h.s8.bf16 %v1457_v62  ;;  %v1845_v56 = vunpack.c.l.s8.bf16 %v1783_v46 }
  0x75   : > { %1677 = vmatprep.subr.bf16.mxu1 %v1529_v5  ;;  %v1828_v5 = vunpack.c.h.s8.bf16 %v1774_v63 }
  0x77   : > { %1637 = vmatpush2.bf16.msra.mxu0 %v1496_v8  ;;  %v1542_v8 = vunpack.c.h.s8.bf16 %v1456_v6 }
  0x78   : > { %1678 = vmatpush2.bf16.msra.mxu1 %v1528_v9  ;;  %1638 = vmatprep.subr.bf16.mxu0 %v1495_v10  ;;  %v1827_v9 = vunpack.c.h.s8.bf16 %v1773_v7  ;;  %v1541_v10 = vunpack.c.l.s8.bf16 %v1457_v62 }
  0x79   : > { %1679 = vmatprep.subr.bf16.mxu1 %v1527_v11  ;;  %v1826_v11 = vunpack.c.l.s8.bf16 %v1774_v63 }
  0x7b   : > { %1639 = vmatpush2.bf16.msra.mxu0 %v1494_v14  ;;  %v1540_v14 = vunpack.c.l.s8.bf16 %v1456_v6 }
  0x7c   : > { %1680 = vmatpush2.bf16.msra.mxu1 %v1526_v15  ;;  %1640 = vmatprep.subr.bf16.mxu0 %v1493_v16  ;;  %v1825_v15 = vunpack.c.l.s8.bf16 %v1773_v7  ;;  %v1539_v16 = vunpack.c.h.s8.bf16 %v1455_v12  ;;  %v1462_v7 = vld [vmem:[%s7809_s28 + $0x150] sm:$0xff] }
  0x7d   : > { %1681 = vmatprep.subr.bf16.mxu1 %v1525_v17  ;;  %v1824_v17 = vunpack.c.h.s8.bf16 %v1772_v13 }
  0x7f   : > { %1641 = vmatpush2.bf16.msra.mxu0 %v1492_v20  ;;  %v1538_v20 = vunpack.c.h.s8.bf16 %v1454_v18 }
  0x80   : > { %1682 = vmatpush2.bf16.msra.mxu1 %v1524_v21  ;;  %1642 = vmatprep.subr.bf16.mxu0 %v1491_v22  ;;  %v1823_v21 = vunpack.c.h.s8.bf16 %v1771_v19  ;;  %v1537_v22 = vunpack.c.l.s8.bf16 %v1455_v12 }
  0x81   : > { %1683 = vmatprep.subr.bf16.mxu1 %v1523_v23  ;;  %v1822_v23 = vunpack.c.l.s8.bf16 %v1772_v13  ;;  %v1461_v13 = vld [vmem:[%s7809_s28 + $0x148] sm:$0xff] }
  0x83   : > { %1643 = vmatpush2.bf16.msra.mxu0 %v1490_v26  ;;  %v1536_v26 = vunpack.c.l.s8.bf16 %v1454_v18 }
  0x84   : > { %1684 = vmatpush2.bf16.msra.mxu1 %v1522_v27  ;;  %1644 = vmatprep.subr.bf16.mxu0 %v1489_v28  ;;  %v1821_v27 = vunpack.c.l.s8.bf16 %v1771_v19  ;;  %v1535_v28 = vunpack.c.h.s8.bf16 %v1453_v24  ;;  %v1460_v19 = vld [vmem:[%s7809_s28 + $0x140] sm:$0xff] }
  0x85   : > { %1685 = vmatprep.subr.bf16.mxu1 %v1521_v29  ;;  %v1820_v29 = vunpack.c.h.s8.bf16 %v1770_v25 }
  0x87   : > { %1645 = vmatpush2.bf16.msra.mxu0 %v1488_v33  ;;  %v1534_v33 = vunpack.c.h.s8.bf16 %v1452_v30 }
  0x88   : > { %1686 = vmatpush2.bf16.msra.mxu1 %v1520_v34  ;;  %1646 = vmatprep.subr.bf16.mxu0 %v1487_v35  ;;  %v1819_v34 = vunpack.c.h.s8.bf16 %v1769_v32  ;;  %v1533_v35 = vunpack.c.l.s8.bf16 %v1453_v24 }
  0x89   : > { %1687 = vmatprep.subr.bf16.mxu1 %v1519_v36  ;;  %v1818_v36 = vunpack.c.l.s8.bf16 %v1770_v25  ;;  %v1792_v25 = vld [vmem:[%s7811_s30 + $0xb8] sm:$0xff] }
  0x8b   : > { %1647 = vmatpush2.bf16.msra.mxu0 %v1486_v41  ;;  %v1817_v41 = vunpack.c.l.s8.bf16 %v1769_v32  ;;  %v1791_v32 = vld [vmem:[%s7811_s30 + $0xb0] sm:$0xff] }
  0x8c   : > { %1688 = vmatpush2.bf16.msra.mxu1 %v1518_v42  ;;  %1648 = vmatprep.subr.bf16.mxu0 %v1485_v43  ;;  %v1563_v42 = vunpack.c.h.s8.bf16 %v1467_v37  ;;  %v1848_v43 = vunpack.c.h.s8.bf16 %v1784_v39 }
  0x8d   : > { %1689 = vmatprep.subr.bf16.mxu1 %v1517_v45  ;;  %v1466_v45 = vld [vmem:[%s7809_s28 + $0x170] sm:$0xff] }
  0x8e   : > { %v1562_v47 = vunpack.c.h.s8.bf16 %v1466_v45  ;;  %v1560_v55 = vunpack.c.l.s8.bf16 %v1466_v45  ;;  %v1861_v45 = vunpack.c.l.s8.bf16 %v1791_v32 }
  0x8f   : > { %1649 = vmatpush2.bf16.msra.mxu0 %v1484_v44  ;;  %v1561_v44 = vunpack.c.l.s8.bf16 %v1467_v37 }
  0x90   : > { %1690 = vmatpush2.bf16.msra.mxu1 %v1516_v52  ;;  %1700 = vmatprep.subr.bf16.mxu0 %v1547_v53  ;;  %v1846_v52 = vunpack.c.l.s8.bf16 %v1784_v39  ;;  %v1465_v53 = vld [vmem:[%s7809_s28 + $0x168] sm:$0xff]  ;;  %v1862_v39 = vunpack.c.l.s8.bf16 %v1792_v25 }
  0x91   : > { %1943 = vmatprep.subr.bf16.mxu1 %v1832_v54  ;;  %v1782_v54 = vld [vmem:[%s7811_s30 + $0x68] sm:$0xff]  ;;  %v1559_v57 = vunpack.c.h.s8.bf16 %v1465_v53  ;;  %v1557_v62 = vunpack.c.l.s8.bf16 %v1465_v53 }
  0x92   : > { %1651 = vmatmul.mubr.bf16.vlgmr.msra.gmra.mxu0 %v1588_v51  ;;  %v1847_v51 = vunpack.c.h.s8.bf16 %v1783_v46  ;;  %v1842_v63 = vunpack.c.l.s8.bf16 %v1782_v54 }
  0x93   : > { %1692 = vmatmul.mubr.bf16.vlgmr.msra.gmra.mxu1 %v1610_v58  ;;  %1701 = vmatpush1.bf16.msra.mxu0 %v1546_v59  ;;  %v1844_v58 = vunpack.c.h.s8.bf16 %v1782_v54  ;;  %v1464_v59 = vld [vmem:[%s7809_s28 + $0x160] sm:$0xff] }
  0x94   : > { %1944 = vmatpush1.bf16.msra.mxu1 %v1831_v50  ;;  %1702 = vmatprep.subr.bf16.mxu0 %v1545_v60  ;;  %v1781_v50 = vld [vmem:[%s7811_s30 + $0x60] sm:$0xff]  ;;  %v1558_v60 = vunpack.c.h.s8.bf16 %v1464_v59 }
  0x95   : > { %1945 = vmatprep.subr.bf16.mxu1 %v1830_v61  ;;  %1732 = vmatprep.mubr.bf16.mxu0 %v1609_v0  ;;  %v1843_v61 = vunpack.c.h.s8.bf16 %v1781_v50  ;;  %v1463_v0 = vld [vmem:[%s7809_s28 + $0x158] sm:$0xff] }
  0x96   : > { %1975 = vmatprep.mubr.bf16.mxu1 %v6489_v1 }
  0x97   : > { %1703 = vmatpush1.bf16.msra.mxu0 %v1544_v2  ;;  %v1780_v2 = vld [vmem:[%s7811_s30 + $0x58] sm:$0xff] }
  0x98   : > { %1946 = vmatpush1.bf16.msra.mxu1 %v1829_v3  ;;  %1704 = vmatprep.subr.bf16.mxu0 %v1543_v4  ;;  %v1556_v3 = vunpack.c.l.s8.bf16 %v1464_v59  ;;  %v1841_v4 = vunpack.c.l.s8.bf16 %v1781_v50  ;;  %v1840_v6 = vunpack.c.h.s8.bf16 %v1780_v2  ;;  %v1838_v12 = vunpack.c.l.s8.bf16 %v1780_v2 }
  0x99   : > { %1947 = vmatprep.subr.bf16.mxu1 %v1828_v5  ;;  %v1555_v5 = vunpack.c.h.s8.bf16 %v1463_v0 }
  0x9b   : > { %1705 = vmatpush1.bf16.msra.mxu0 %v1542_v8  ;;  %v1779_v8 = vld [vmem:[%s7811_s30 + $0x50] sm:$0xff] }
  0x9c   : > { %1948 = vmatpush1.bf16.msra.mxu1 %v1827_v9  ;;  %1706 = vmatprep.subr.bf16.mxu0 %v1541_v10  ;;  %v1554_v9 = vunpack.c.h.s8.bf16 %v1462_v7  ;;  %v1839_v10 = vunpack.c.h.s8.bf16 %v1779_v8 }
  0x9d   : > { %1949 = vmatprep.subr.bf16.mxu1 %v1826_v11  ;;  %v1553_v11 = vunpack.c.l.s8.bf16 %v1463_v0 }
  0x9f   : > { %1707 = vmatpush1.bf16.msra.mxu0 %v1540_v14  ;;  %v1778_v14 = vld [vmem:[%s7811_s30 + $0x48] sm:$0xff] }
  0xa0   : > { %1950 = vmatpush1.bf16.msra.mxu1 %v1825_v15  ;;  %1708 = vmatprep.subr.bf16.mxu0 %v1539_v16  ;;  %v1552_v15 = vunpack.c.l.s8.bf16 %v1462_v7  ;;  %v1837_v16 = vunpack.c.l.s8.bf16 %v1779_v8  ;;  %v1836_v18 = vunpack.c.h.s8.bf16 %v1778_v14  ;;  %v1834_v24 = vunpack.c.l.s8.bf16 %v1778_v14 }
  0xa1   : > { %1951 = vmatprep.subr.bf16.mxu1 %v1824_v17  ;;  %v1551_v17 = vunpack.c.h.s8.bf16 %v1461_v13 }
  0xa3   : > { %1709 = vmatpush1.bf16.msra.mxu0 %v1538_v20  ;;  %v1777_v20 = vld [vmem:[%s7811_s30 + $0x40] sm:$0xff] }
  0xa4   : > { %1952 = vmatpush1.bf16.msra.mxu1 %v1823_v21  ;;  %1710 = vmatprep.subr.bf16.mxu0 %v1537_v22  ;;  %v1550_v21 = vunpack.c.h.s8.bf16 %v1460_v19  ;;  %v1835_v22 = vunpack.c.h.s8.bf16 %v1777_v20 }
  0xa5   : > { %1953 = vmatprep.subr.bf16.mxu1 %v1822_v23  ;;  %v1549_v23 = vunpack.c.l.s8.bf16 %v1461_v13 }
  0xa7   : > { %1711 = vmatpush1.bf16.msra.mxu0 %v1536_v26  ;;  %v1808_v26 = vld [vmem:[%s7811_s30 + $0x138] sm:$0xff] }
  0xa8   : > { %1954 = vmatpush1.bf16.msra.mxu1 %v1821_v27  ;;  %1712 = vmatprep.subr.bf16.mxu0 %v1535_v28  ;;  %v1548_v27 = vunpack.c.l.s8.bf16 %v1460_v19  ;;  %v1833_v28 = vunpack.c.l.s8.bf16 %v1777_v20  ;;  %v1896_v30 = vunpack.c.h.s8.bf16 %v1808_v26 }
  0xa9   : > { %1955 = vmatprep.subr.bf16.mxu1 %v1820_v29  ;;  %v1864_v29 = vunpack.c.h.s8.bf16 %v1792_v25 }
  0xab   : > { %1713 = vmatpush1.bf16.msra.mxu0 %v1534_v33  ;;  %v1807_v33 = vld [vmem:[%s7811_s30 + $0x130] sm:$0xff] }
  0xac   : > { %1956 = vmatpush1.bf16.msra.mxu1 %v1819_v34  ;;  %1714 = vmatprep.subr.bf16.mxu0 %v1533_v35  ;;  %v6525_v34 = vld [vmem:[%s7812_s13] ss:$24 sps:$4 sm:$0xff]   ;;  %v1595_v35 = vrot.slane %v6475_v48, %v6445_v49  ;;  %v1895_v37 = vunpack.c.h.s8.bf16 %v1807_v33  ;;  %v6539_v48 = vld [vmem:[%s7812_s13 + $0x14] ss:$24 sps:$4 sm:$0xff]   ;;  %v1893_v46 = vunpack.c.l.s8.bf16 %v1807_v33 }
  0xad   : > { %1957 = vmatprep.subr.bf16.mxu1 %v1818_v36  ;;  %v1863_v36 = vunpack.c.h.s8.bf16 %v1791_v32 }
  0xaf   : > { %1715 = vmatpush1.bf16.msra.mxu0 %v1532_v40  ;;  %v1894_v40 = vunpack.c.l.s8.bf16 %v1808_v26 }
  0xb0   : > { %1958 = vmatpush1.bf16.msra.mxu1 %v1817_v41  ;;  %1716 = vmatprep.subr.bf16.mxu0 %v1563_v42  ;;  %v1790_v41 = vld [vmem:[%s7811_s30 + $0xa8] sm:$0xff] }
  0xb1   : > { %1959 = vmatprep.subr.bf16.mxu1 %v1848_v43  ;;  %v1806_v42 = vld [vmem:[%s7811_s30 + $0x128] sm:$0xff] }
  0xb2   : > { %v6534_v43 = vld [vmem:[%s7812_s13 + $0xc] ss:$24 sps:$4 sm:$0xff]  }
  0xb3   : > { %1717 = vmatpush2.bf16.msra.mxu0 %v1562_v47  ;;  %v1860_v47 = vunpack.c.h.s8.bf16 %v1790_v41 }
  0xb4   : > { %1960 = vmatpush2.bf16.msra.mxu1 %v1847_v51  ;;  %1718 = vmatprep.subr.bf16.mxu0 %v1561_v44  ;;  %v1892_v51 = vunpack.c.h.s8.bf16 %v1806_v42  ;;  %v1789_v44 = vld [vmem:[%s7811_s30 + $0xa0] sm:$0xff] }
  0xb5   : > { %1961 = vmatprep.subr.bf16.mxu1 %v1846_v52  ;;  %v1805_v52 = vld [vmem:[%s7811_s30 + $0x120] sm:$0xff]  ;;  %v1859_v53 = vunpack.c.h.s8.bf16 %v1789_v44  ;;  %v1857_v59 = vunpack.c.l.s8.bf16 %v1789_v44 }
  0xb6   : > { %v1891_v54 = vunpack.c.h.s8.bf16 %v1805_v52  ;;  %v1889_v50 = vunpack.c.l.s8.bf16 %v1805_v52 }
  0xb7   : > { %1719 = vmatpush2.bf16.msra.mxu0 %v1560_v55  ;;  %v1858_v55 = vunpack.c.l.s8.bf16 %v1790_v41 }
  0xb8   : > { %1962 = vmatpush2.bf16.msra.mxu1 %v1845_v56  ;;  %1720 = vmatprep.subr.bf16.mxu0 %v1559_v57  ;;  %v1890_v56 = vunpack.c.l.s8.bf16 %v1806_v42  ;;  %v1788_v57 = vld [vmem:[%s7811_s30 + $0x98] sm:$0xff] }
  0xb9   : > { %1963 = vmatprep.subr.bf16.mxu1 %v1844_v58  ;;  %v1804_v58 = vld [vmem:[%s7811_s30 + $0x118] sm:$0xff] }
  0xbb   : > { %1721 = vmatpush2.bf16.msra.mxu0 %v1558_v60  ;;  %v1856_v60 = vunpack.c.h.s8.bf16 %v1788_v57 }
  0xbc   : > { %1964 = vmatpush2.bf16.msra.mxu1 %v1843_v61  ;;  %1722 = vmatprep.subr.bf16.mxu0 %v1557_v62  ;;  %v1888_v61 = vunpack.c.h.s8.bf16 %v1804_v58  ;;  %v1787_v62 = vld [vmem:[%s7811_s30 + $0x90] sm:$0xff] }
  0xbd   : > { %1965 = vmatprep.subr.bf16.mxu1 %v1842_v63  ;;  %v1803_v63 = vld [vmem:[%s7811_s30 + $0x110] sm:$0xff]  ;;  %v1855_v0 = vunpack.c.h.s8.bf16 %v1787_v62  ;;  %v1853_v7 = vunpack.c.l.s8.bf16 %v1787_v62 }
  0xbe   : > { %v1887_v2 = vunpack.c.h.s8.bf16 %v1803_v63  ;;  %v1885_v8 = vunpack.c.l.s8.bf16 %v1803_v63 }
  0xbf   : > { %1723 = vmatpush2.bf16.msra.mxu0 %v1556_v3  ;;  %v1854_v3 = vunpack.c.l.s8.bf16 %v1788_v57 }
  0xc0   : > { %1966 = vmatpush2.bf16.msra.mxu1 %v1841_v4  ;;  %1724 = vmatprep.subr.bf16.mxu0 %v1555_v5  ;;  %v1886_v4 = vunpack.c.l.s8.bf16 %v1804_v58  ;;  %v1786_v5 = vld [vmem:[%s7811_s30 + $0x88] sm:$0xff] }
  0xc1   : > { %1967 = vmatprep.subr.bf16.mxu1 %v1840_v6  ;;  %v1802_v6 = vld [vmem:[%s7811_s30 + $0x108] sm:$0xff] }
  0xc3   : > { %1725 = vmatpush2.bf16.msra.mxu0 %v1554_v9  ;;  %v1852_v9 = vunpack.c.h.s8.bf16 %v1786_v5 }
  0xc4   : > { %1968 = vmatpush2.bf16.msra.mxu1 %v1839_v10  ;;  %1726 = vmatprep.subr.bf16.mxu0 %v1553_v11  ;;  %v1884_v10 = vunpack.c.h.s8.bf16 %v1802_v6  ;;  %v1785_v11 = vld [vmem:[%s7811_s30 + $0x80] sm:$0xff] }
  0xc5   : > { %1969 = vmatprep.subr.bf16.mxu1 %v1838_v12  ;;  %v1801_v12 = vld [vmem:[%s7811_s30 + $0x100] sm:$0xff]  ;;  %v1851_v13 = vunpack.c.h.s8.bf16 %v1785_v11  ;;  %v1849_v19 = vunpack.c.l.s8.bf16 %v1785_v11  ;;  %v6578_v11 = vld [vmem:[%s7812_s13 + $0x10] ss:$24 sps:$4 sm:$0xff]  }
  0xc6   : > { %v1883_v14 = vunpack.c.h.s8.bf16 %v1801_v12  ;;  %v1881_v20 = vunpack.c.l.s8.bf16 %v1801_v12 }
  0xc7   : > { %1727 = vmatpush2.bf16.msra.mxu0 %v1552_v15  ;;  %v1850_v15 = vunpack.c.l.s8.bf16 %v1786_v5 }
  0xc8   : > { %1970 = vmatpush2.bf16.msra.mxu1 %v1837_v16  ;;  %1728 = vmatprep.subr.bf16.mxu0 %v1551_v17  ;;  %v1882_v16 = vunpack.c.l.s8.bf16 %v1802_v6  ;;  %v1800_v17 = vld [vmem:[%s7811_s30 + $0xf8] sm:$0xff] }
  0xc9   : > { %1971 = vmatprep.subr.bf16.mxu1 %v1836_v18  ;;  %v1816_v18 = vld [vmem:[%s7811_s30 + $0x178] sm:$0xff] }
  0xcb   : > { %1729 = vmatpush2.bf16.msra.mxu0 %v1550_v21  ;;  %v1880_v21 = vunpack.c.h.s8.bf16 %v1800_v17 }
  0xcc   : > { %1972 = vmatpush2.bf16.msra.mxu1 %v1835_v22  ;;  %1730 = vmatprep.subr.bf16.mxu0 %v1549_v23  ;;  %v1912_v22 = vunpack.c.h.s8.bf16 %v1816_v18  ;;  %v1799_v23 = vld [vmem:[%s7811_s30 + $0xf0] sm:$0xff] }
  0xcd   : > { %1973 = vmatprep.subr.bf16.mxu1 %v1834_v24  ;;  %v1815_v24 = vld [vmem:[%s7811_s30 + $0x170] sm:$0xff]  ;;  %v1879_v25 = vunpack.c.h.s8.bf16 %v1799_v23  ;;  %v1877_v32 = vunpack.c.l.s8.bf16 %v1799_v23 }
  0xce   : > { %v1911_v26 = vunpack.c.h.s8.bf16 %v1815_v24  ;;  %v1909_v33 = vunpack.c.l.s8.bf16 %v1815_v24 }
  0xcf   : > { %1731 = vmatpush2.bf16.msra.mxu0 %v1548_v27  ;;  %v1878_v27 = vunpack.c.l.s8.bf16 %v1800_v17 }
  0xd0   : > { %1974 = vmatpush2.bf16.msra.mxu1 %v1833_v28  ;;  %1986 = vmatprep.subr.bf16.mxu0 %v1864_v29  ;;  %v1910_v28 = vunpack.c.l.s8.bf16 %v1816_v18  ;;  %v1798_v29 = vld [vmem:[%s7811_s30 + $0xe8] sm:$0xff] }
  0xd1   : > { %2029 = vmatprep.subr.bf16.mxu1 %v1896_v30  ;;  %v1814_v30 = vld [vmem:[%s7811_s30 + $0x168] sm:$0xff]  ;;  %v1874_v42 = vunpack.c.l.s8.bf16 %v1798_v29 }
  0xd2   : > { %1733 = vmatmul.mubr.bf16.vlgmr.msra.gmra.mxu0 %v1595_v35  ;;  %v1876_v35 = vunpack.c.h.s8.bf16 %v1798_v29 }
  0xd3   : > { %1976 = vmatmul.mubr.bf16.vlgmr.msra.gmra.mxu1 %v6525_v34  ;;  %1987 = vmatpush1.bf16.msra.mxu0 %v1863_v36  ;;  %v1908_v36 = vunpack.c.h.s8.bf16 %v1814_v30 }
  0xd4   : > { %2030 = vmatpush1.bf16.msra.mxu1 %v1895_v37  ;;  %1988 = vmatprep.subr.bf16.mxu0 %v1862_v39  ;;  %v1797_v37 = vld [vmem:[%s7811_s30 + $0xe0] sm:$0xff] }
  0xd5   : > { %2031 = vmatprep.subr.bf16.mxu1 %v1894_v40  ;;  %2018 = vmatprep.mubr.bf16.mxu0 %v6534_v43  ;;  %v1813_v39 = vld [vmem:[%s7811_s30 + $0x160] sm:$0xff]  ;;  %v1875_v40 = vunpack.c.h.s8.bf16 %v1797_v37 }
  0xd6   : > { %2061 = vmatprep.mubr.bf16.mxu1 %v6539_v48  ;;  %v1907_v41 = vunpack.c.h.s8.bf16 %v1813_v39  ;;  %v1905_v44 = vunpack.c.l.s8.bf16 %v1813_v39 }
  0xd7   : > { %1989 = vmatpush1.bf16.msra.mxu0 %v1861_v45  ;;  %v1906_v45 = vunpack.c.l.s8.bf16 %v1814_v30 }
  0xd8   : > { %2032 = vmatpush1.bf16.msra.mxu1 %v1893_v46  ;;  %1990 = vmatprep.subr.bf16.mxu0 %v1860_v47  ;;  %v1796_v46 = vld [vmem:[%s7811_s30 + $0xd8] sm:$0xff] }
  0xd9   : > { %2033 = vmatprep.subr.bf16.mxu1 %v1892_v51  ;;  %v1812_v47 = vld [vmem:[%s7811_s30 + $0x158] sm:$0xff]  ;;  %v1873_v51 = vunpack.c.l.s8.bf16 %v1797_v37  ;;  %v1872_v52 = vunpack.c.h.s8.bf16 %v1796_v46  ;;  %v1870_v58 = vunpack.c.l.s8.bf16 %v1796_v46 }
  0xdb   : > { %1991 = vmatpush1.bf16.msra.mxu0 %v1859_v53  ;;  %v1904_v53 = vunpack.c.h.s8.bf16 %v1812_v47 }
  0xdc   : > { %2034 = vmatpush1.bf16.msra.mxu1 %v1891_v54  ;;  %1992 = vmatprep.subr.bf16.mxu0 %v1858_v55  ;;  %v1795_v54 = vld [vmem:[%s7811_s30 + $0xd0] sm:$0xff] }
  0xdd   : > { %2035 = vmatprep.subr.bf16.mxu1 %v1890_v56  ;;  %v1811_v55 = vld [vmem:[%s7811_s30 + $0x150] sm:$0xff]  ;;  %v1871_v56 = vunpack.c.h.s8.bf16 %v1795_v54 }
  0xde   : > { %v1903_v57 = vunpack.c.h.s8.bf16 %v1811_v55  ;;  %v1901_v62 = vunpack.c.l.s8.bf16 %v1811_v55 }
  0xdf   : > { %1993 = vmatpush1.bf16.msra.mxu0 %v1857_v59  ;;  %v1902_v59 = vunpack.c.l.s8.bf16 %v1812_v47 }
  0xe0   : > { %2036 = vmatpush1.bf16.msra.mxu1 %v1889_v50  ;;  %1994 = vmatprep.subr.bf16.mxu0 %v1856_v60  ;;  %v1794_v50 = vld [vmem:[%s7811_s30 + $0xc8] sm:$0xff] }
  0xe1   : > { %2037 = vmatprep.subr.bf16.mxu1 %v1888_v61  ;;  %v1810_v60 = vld [vmem:[%s7811_s30 + $0x148] sm:$0xff]  ;;  %v1869_v61 = vunpack.c.l.s8.bf16 %v1795_v54  ;;  %v1868_v63 = vunpack.c.h.s8.bf16 %v1794_v50  ;;  %v1866_v6 = vunpack.c.l.s8.bf16 %v1794_v50 }
  0xe3   : > { %1995 = vmatpush1.bf16.msra.mxu0 %v1855_v0  ;;  %v1900_v0 = vunpack.c.h.s8.bf16 %v1810_v60 }
  0xe4   : > { %2038 = vmatpush1.bf16.msra.mxu1 %v1887_v2  ;;  %1996 = vmatprep.subr.bf16.mxu0 %v1854_v3  ;;  %v1793_v2 = vld [vmem:[%s7811_s30 + $0xc0] sm:$0xff] }
  0xe5   : > { %2039 = vmatprep.subr.bf16.mxu1 %v1886_v4  ;;  %v1809_v3 = vld [vmem:[%s7811_s30 + $0x140] sm:$0xff]  ;;  %v1867_v4 = vunpack.c.h.s8.bf16 %v1793_v2 }
  0xe6   : > { %v1899_v5 = vunpack.c.h.s8.bf16 %v1809_v3 }
  0xe7   : > { %1997 = vmatpush1.bf16.msra.mxu0 %v1853_v7  ;;  %v1898_v7 = vunpack.c.l.s8.bf16 %v1810_v60 }
  0xe8   : > { %2040 = vmatpush1.bf16.msra.mxu1 %v1885_v8  ;;  %1998 = vmatprep.subr.bf16.mxu0 %v1852_v9  ;;  %v1865_v8 = vunpack.c.l.s8.bf16 %v1793_v2  ;;  %v1897_v9 = vunpack.c.l.s8.bf16 %v1809_v3 }
  0xe9   : > { %2041 = vmatprep.subr.bf16.mxu1 %v1884_v10  ;;  %v6573_v10 = vld [vmem:[%s7812_s13 + $0x8] ss:$24 sps:$4 sm:$0xff]  }
  0xeb   : > { %1999 = vmatpush1.bf16.msra.mxu0 %v1851_v13 }
  0xec   : > { %2042 = vmatpush1.bf16.msra.mxu1 %v1883_v14  ;;  %2000 = vmatprep.subr.bf16.mxu0 %v1850_v15 }
  0xed   : > { %2043 = vmatprep.subr.bf16.mxu1 %v1882_v16 }
  0xef   : > { %2001 = vmatpush1.bf16.msra.mxu0 %v1849_v19 }
  0xf0   : > { %2044 = vmatpush1.bf16.msra.mxu1 %v1881_v20  ;;  %2002 = vmatprep.subr.bf16.mxu0 %v1880_v21 }
  0xf1   : > { %2045 = vmatprep.subr.bf16.mxu1 %v1912_v22  ;;  %v6585_v22 = vsub.s32 0, %v6433_v38 }
  0xf3   : > { %2003 = vmatpush2.bf16.msra.mxu0 %v1879_v25  ;;  %v1755_v25 = vld [vmem:[%s7816_s14] sm:$0x3] }
  0xf4   : > { %2046 = vmatpush2.bf16.msra.mxu1 %v1911_v26  ;;  %2004 = vmatprep.subr.bf16.mxu0 %v1878_v27  ;;  %v1760_v30 = vrot.slane %v1755_v25, %v6585_v22 }
  0xf5   : > { %2047 = vmatprep.subr.bf16.mxu1 %v1910_v28 }
  0xf7   : > { %2005 = vmatpush2.bf16.msra.mxu0 %v1877_v32 }
  0xf8   : > { %2048 = vmatpush2.bf16.msra.mxu1 %v1909_v33  ;;  %2006 = vmatprep.subr.bf16.mxu0 %v1876_v35 }
  0xf9   : > { %2049 = vmatprep.subr.bf16.mxu1 %v1908_v36 }
  0xfb   : > { %2007 = vmatpush2.bf16.msra.mxu0 %v1875_v40 }
  0xfc   : > { %2050 = vmatpush2.bf16.msra.mxu1 %v1907_v41  ;;  %2008 = vmatprep.subr.bf16.mxu0 %v1874_v42 }
  0xfd   : > { %2051 = vmatprep.subr.bf16.mxu1 %v1906_v45 }
  0xff   : > { %2009 = vmatpush2.bf16.msra.mxu0 %v1873_v51  ;;  %v2072_v51 = vld [vmem:[%s7818_s2] sm:$0x3] }
 0x100   : > { %2052 = vmatpush2.bf16.msra.mxu1 %v1905_v44  ;;  %2010 = vmatprep.subr.bf16.mxu0 %v1872_v52  ;;  %v2077_v55 = vrot.slane %v2072_v51, %v6585_v22 }
 0x101   : > { %2053 = vmatprep.subr.bf16.mxu1 %v1904_v53 }
 0x103   : > { %2011 = vmatpush2.bf16.msra.mxu0 %v1871_v56  ;;  %v2088_v56 = vld [vmem:[%s7820_s15] sm:$0x3] }
 0x104   : > { %2054 = vmatpush2.bf16.msra.mxu1 %v1903_v57  ;;  %2012 = vmatprep.subr.bf16.mxu0 %v1870_v58 }
 0x105   : > { %2055 = vmatprep.subr.bf16.mxu1 %v1902_v59 }
 0x107   : > { %2013 = vmatpush2.bf16.msra.mxu0 %v1869_v61 }
 0x108   : > { %2056 = vmatpush2.bf16.msra.mxu1 %v1901_v62  ;;  %2014 = vmatprep.subr.bf16.mxu0 %v1868_v63 }
 0x109   : > { %2057 = vmatprep.subr.bf16.mxu1 %v1900_v0  ;;  %v2093_v0 = vrot.slane %v2088_v56, %v6585_v22 }
 0x10b   : > { %2015 = vmatpush2.bf16.msra.mxu0 %v1867_v4 }
 0x10c   : > { %2058 = vmatpush2.bf16.msra.mxu1 %v1899_v5  ;;  %2016 = vmatprep.subr.bf16.mxu0 %v1866_v6 }
 0x10d   : > { %2059 = vmatprep.subr.bf16.mxu1 %v1898_v7 }
 0x10f   : > { %2017 = vmatpush2.bf16.msra.mxu0 %v1865_v8 }
 0x110   : > { %2060 = vmatpush2.bf16.msra.mxu1 %v1897_v9 }
 0x112   : > { %2019 = vmatmul.mubr.bf16.vlgmr.msra.gmra.mxu0 %v6573_v10 }
 0x113   : > { %2062 = vmatmul.mubr.bf16.vlgmr.msra.gmra.mxu1 %v6578_v11  ;;  %2280 = vmatprep.mubr.bf16.mxu0 %v6489_v1  ;;  %v1741_v1 = vld [vmem:[%s7814_s8] sm:$0x3] }
 0x114   : > { %2323 = vmatprep.mubr.bf16.mxu1 %v6534_v43  ;;  %v6593_v43 = vsub.s32 1, %v6433_v38  ;;  %v1746_v23 = vrot.slane %v1741_v1, %v6585_v22 }
 0x116   : > { %v1750_v27 = vrot.slane %v1741_v1, %v6593_v43  ;;  %v1764_v33 = vrot.slane %v1755_v25, %v6593_v43  ;;  %v2081_v60 = vrot.slane %v2072_v51, %v6593_v43  ;;  %v2097_v61 = vrot.slane %v2088_v56, %v6593_v43  ;;  %v2111_v51 = vld [vmem:[%s6368_s0 + $0x38] sm:$0xff] }
 0x152   : > { %v1652_v12 = vpop.f32.mrf.mxu0 }
 0x153   : > { %v1693_v13 = vpop.f32.mrf.mxu1 }
 0x154   : > { %v1694_v14 = vadd.f32 %v1693_v13, %v1652_v12  ;;  %v1654_v15 = vpop.f32.mrf.mxu0 }
 0x155   : > { %v1695_v16 = vpop.f32.mrf.mxu1 }
 0x156   : > { %v1696_v17 = vadd.f32 %v1695_v16, %v1654_v15  ;;  %v1656_v18 = vpop.f32.mrf.mxu0 }
 0x157   : > { %v1697_v19 = vpop.f32.mrf.mxu1 }
 0x158   : > { %v1657_v20 = vpop.f32.mrf.mxu0 }
 0x159   : > { %v1698_v21 = vpop.f32.mrf.mxu1 }
 0x192   : > { %v1734_v24 = vpop.f32.mrf.mxu0 }
 0x193   : > { %v1735_v26 = vadd.f32 %v1734_v24, %v1694_v14  ;;  %v1977_v42 = vpop.f32.mrf.mxu1 }
 0x194   : > { %v1736_v28 = vpop.f32.mrf.mxu0 }
 0x195   : > { %v1753_v29 = vmul.f32 %v1746_v23, %v1735_v26  ;;  %v1737_v32 = vadd.f32 %v1736_v28, %v1696_v17  ;;  %v1979_v45 = vpop.f32.mrf.mxu1 }
 0x196   : > { %v1738_v35 = vpop.f32.mrf.mxu0 }
 0x197   : > { %v1754_v36 = vmul.f32 %v1750_v27, %v1737_v32  ;;  %v1767_v39 = vadd.f32 %v1760_v30, %v1753_v29  ;;  %v1981_v46 = vpop.f32.mrf.mxu1  ;;  %v2472_v35 = vand.u32 127, %v1569_v31 }
 0x198   : > { %v1739_v37 = vpop.f32.mrf.mxu0 }
 0x199   : > { %v1768_v40 = vadd.f32 %v1764_v33, %v1754_v36  ;;  %v1983_v47 = vpop.f32.mrf.mxu1  ;;  %v6629_v37 = vsub.s32 %v2472_v35, %v6433_v38 }
 0x19b   : > { %v2411_v41 = vcombine.low %v1767_v39, %v1768_v40 }
 0x19d   : > { %v2418_v53 = vrot.slane %v2411_v41, %v6445_v49 }
 0x19f   : > { %v2426_v2 = vrot.slane %v2418_v53, %v6445_v49  ;;  %v2419_v6 = vcombine.high %v2418_v53, %v2418_v53 }
 0x1a1   : > { %v2441_v15 = vrot.slane %v2426_v2, %v6593_v43  ;;  %v2433_v19 = vrot.slane %v2419_v6, %v6445_v49  ;;  %v2437_v20 = vrot.slane %v2426_v2, %v6585_v22 }
 0x1a3   : > { %v2449_v27 = vrot.slane %v2433_v19, %v6593_v43  ;;  %v2445_v29 = vrot.slane %v2433_v19, %v6585_v22 }
 0x1d2   : > { %v2020_v44 = vpop.f32.mrf.mxu0 }
 0x1d3   : > { %v2063_v52 = vpop.f32.mrf.mxu1  ;;  %v2021_v54 = vadd.f32 %v2020_v44, %v1977_v42  ;;  %v2110_v44 = vld [vmem:[%s6368_s0 + $0x30] sm:$0xff] }
 0x1d4   : > { %v2022_v57 = vpop.f32.mrf.mxu0  ;;  %v2166_v53 = vunpack.c.h.s8.bf16 %v2110_v44  ;;  %v2164_v56 = vunpack.c.l.s8.bf16 %v2110_v44 }
 0x1d5   : > { %v2065_v58 = vpop.f32.mrf.mxu1  ;;  %v2064_v59 = vadd.f32 %v2063_v52, %v2021_v54  ;;  %v2023_v50 = vadd.f32 %v2022_v57, %v1979_v45  ;;  %v2167_v52 = vunpack.c.h.s8.bf16 %v2111_v51  ;;  %v2165_v54 = vunpack.c.l.s8.bf16 %v2111_v51 }
 0x1d6   : > { %v2024_v62 = vpop.f32.mrf.mxu0 }
 0x1d7   : > { %v2067_v63 = vpop.f32.mrf.mxu1  ;;  %v2084_v3 = vmul.f32 %v2077_v55, %v2064_v59  ;;  %v2066_v4 = vadd.f32 %v2065_v58, %v2023_v50  ;;  %v2025_v5 = vadd.f32 %v2024_v62, %v1981_v46  ;;  %2248 = vmatprep.subr.bf16.mxu0 %v2167_v52  ;;  %v2108_v58 = vld [vmem:[%s6368_s0 + $0x20] sm:$0xff]  ;;  %v2127_v59 = vld [vmem:[%s6368_s0 + $0xb8] sm:$0xff]  ;;  %v2126_v50 = vld [vmem:[%s6368_s0 + $0xb0] sm:$0xff] }
 0x1d8   : > { %v2026_v7 = vpop.f32.mrf.mxu0  ;;  %2249 = vmatpush1.bf16.msra.mxu0 %v2166_v53  ;;  %v2199_v62 = vunpack.c.h.s8.bf16 %v2127_v59  ;;  %v2197_v2 = vunpack.c.l.s8.bf16 %v2127_v59  ;;  %v2116_v53 = vld [vmem:[%s6368_s0 + $0x60] sm:$0xff] }
 0x1d9   : > { %v2085_v8 = vmul.f32 %v2081_v60, %v2066_v4  ;;  %v2068_v9 = vadd.f32 %v2067_v63, %v2025_v5  ;;  %v2027_v12 = vadd.f32 %v2026_v7, %v1983_v47  ;;  %v2069_v13 = vpop.f32.mrf.mxu1  ;;  %v2100_v14 = vadd.f32 %v2093_v0, %v2084_v3  ;;  %2250 = vmatprep.subr.bf16.mxu0 %v2165_v54  ;;  %v2125_v3 = vld [vmem:[%s6368_s0 + $0xa8] sm:$0xff]  ;;  %v2106_v7 = vld [vmem:[%s6368_s0 + $0x10] sm:$0xff] }
 0x1da   : > { %v6182_v47 = vmov 0   ;;  %v2198_v63 = vunpack.c.h.s8.bf16 %v2126_v50  ;;  %2291 = vmatprep.subr.bf16.mxu1 %v2199_v62  ;;  %v2160_v4 = vunpack.c.l.s8.bf16 %v2108_v58  ;;  %v2196_v5 = vunpack.c.l.s8.bf16 %v2126_v50  ;;  %v2115_v50 = vld [vmem:[%s6368_s0 + $0x58] sm:$0xff] }
 0x1db   : > { %v2101_v16 = vadd.f32 %v2097_v61, %v2085_v8  ;;  %v2086_v17 = vmul.f32 %v2077_v55, %v2068_v9  ;;  %v2070_v18 = vadd.f32 %v2069_v13, %v2027_v12  ;;  %v2454_v24 = vmul.f32 %v2437_v20, %v2100_v14  ;;  %6071 = vset.pattern.permute.xlu0 %v6182_v47  ;;  %v2109_v55 = vld [vmem:[%s6368_s0 + $0x28] sm:$0xff]  ;;  %v2124_v9 = vld [vmem:[%s6368_s0 + $0xa0] sm:$0xff] }
 0x1dc   : > { %6070 = vset.pattern.permute.xlu1 %v6182_v47  ;;  %v2163_v57 = vunpack.c.h.s8.bf16 %v2109_v55  ;;  %2251 = vmatpush1.bf16.msra.mxu0 %v2164_v56  ;;  %v2195_v8 = vunpack.c.h.s8.bf16 %v2125_v3  ;;  %v2158_v12 = vunpack.c.h.s8.bf16 %v2106_v7  ;;  %v2194_v13 = vunpack.c.h.s8.bf16 %v2124_v9  ;;  %v2135_v47 = vld [vmem:[%s6368_s0 + $0xf8] sm:$0xff] }
 0x1dd   : > { %v2087_v21 = vmul.f32 %v2081_v60, %v2070_v18  ;;  %v2455_v1 = vmul.f32 %v2441_v15, %v2101_v16  ;;  %v2102_v23 = vadd.f32 %v2093_v0, %v2086_v17  ;;  %v2162_v60 = vunpack.c.h.s8.bf16 %v2108_v58  ;;  %v2107_v0 = vld [vmem:[%s6368_s0 + $0x18] sm:$0xff]  ;;  %2292 = vmatpush1.bf16.msra.mxu1 %v2198_v63  ;;  %v2105_v16 = vld [vmem:[%s6368_s0 + $0x8] sm:$0xff] }
 0x1de   : > { %2252 = vmatprep.subr.bf16.mxu0 %v2163_v57  ;;  %v2159_v6 = vunpack.c.h.s8.bf16 %v2107_v0  ;;  %2293 = vmatprep.subr.bf16.mxu1 %v2197_v2  ;;  %v2157_v14 = vunpack.c.l.s8.bf16 %v2107_v0  ;;  %v2193_v15 = vunpack.c.l.s8.bf16 %v2125_v3  ;;  %v2123_v17 = vld [vmem:[%s6368_s0 + $0x98] sm:$0xff]  ;;  %v2156_v18 = vunpack.c.l.s8.bf16 %v2106_v7  ;;  %v2114_v0 = vld [vmem:[%s6368_s0 + $0x50] sm:$0xff]  ;;  %v2132_v3 = vld [vmem:[%s6368_s0 + $0xe0] sm:$0xff] }
 0x1df   : > { %v2103_v25 = vadd.f32 %v2097_v61, %v2087_v21  ;;  %v2459_v26 = vsel %vm2458_vm0, %v2455_v1, 0.0  ;;  %v2456_v32 = vmul.f32 %v2445_v29, %v2102_v23  ;;  %v2161_v61 = vunpack.c.l.s8.bf16 %v2109_v55  ;;  %v2104_v21 = vld [vmem:[%s6368_s0] sm:$0xff]  ;;  %v2122_v23 = vld [vmem:[%s6368_s0 + $0x90] sm:$0xff]  ;;  %v2121_v29 = vld [vmem:[%s6368_s0 + $0x88] sm:$0xff] }
 0x1e0   : > { %v2460_v28 = vadd.f32 %v2459_v26, %v2454_v24  ;;  %2253 = vmatpush1.bf16.msra.mxu0 %v2162_v60  ;;  %v2192_v19 = vunpack.c.l.s8.bf16 %v2124_v9  ;;  %v2155_v20 = vunpack.c.h.s8.bf16 %v2105_v16  ;;  %v2191_v1 = vunpack.c.h.s8.bf16 %v2123_v17  ;;  %v2134_v55 = vld [vmem:[%s6368_s0 + $0xf0] sm:$0xff]  ;;  %v2133_v60 = vld [vmem:[%s6368_s0 + $0xe8] sm:$0xff]  ;;  %v6669_v9 = vld [vmem:[%s6368_s0 + $0xd8] sm:$0xff] }
 0x1e1   : > { %v2457_v30 = vmul.f32 %v2449_v27, %v2103_v25  ;;  %2254 = vmatprep.subr.bf16.mxu0 %v2161_v61  ;;  %2294 = vmatpush1.bf16.msra.mxu1 %v2196_v5  ;;  %v2154_v24 = vunpack.c.h.s8.bf16 %v2104_v21  ;;  %v2190_v25 = vunpack.c.h.s8.bf16 %v2122_v23  ;;  %v2153_v26 = vunpack.c.l.s8.bf16 %v2105_v16 }
 0x1e2   : > { %2461 = vadd.xlane.f32.xlu0 %v2460_v28  ;;  %2295 = vmatprep.subr.bf16.mxu1 %v2195_v8  ;;  %v2189_v27 = vunpack.c.l.s8.bf16 %v2123_v17  ;;  %v2119_v28 = vld [vmem:[%s6368_s0 + $0x78] sm:$0xff]  ;;  %v2187_v35 = vunpack.c.h.s8.bf16 %v2121_v29  ;;  %v2215_v54 = vunpack.c.h.s8.bf16 %v2135_v47  ;;  %v2178_v56 = vunpack.c.h.s8.bf16 %v2116_v53  ;;  %v2113_v8 = vld [vmem:[%s6368_s0 + $0x48] sm:$0xff]  ;;  %v6674_v17 = vld [vmem:[%s6368_s0 + $0xd0] sm:$0xff] }
 0x1e3   : > { %v2463_v49 = vsel %vm2458_vm0, %v2457_v30, 0.0  ;;  %v2152_v30 = vunpack.c.l.s8.bf16 %v2104_v21  ;;  %v2214_v57 = vunpack.c.h.s8.bf16 %v2134_v55  ;;  %v2213_v59 = vunpack.c.l.s8.bf16 %v2135_v47  ;;  %v2143_v21 = vld [vmem:[%s6368_s0 + $0x138] sm:$0xff] }
 0x1e4   : > { %v2464_v33 = vadd.f32 %v2463_v49, %v2456_v32  ;;  %2255 = vmatpush1.bf16.msra.mxu0 %v2160_v4  ;;  %v2188_v32 = vunpack.c.l.s8.bf16 %v2122_v23  ;;  %v2183_v49 = vunpack.c.h.s8.bf16 %v2119_v28  ;;  %v2176_v61 = vunpack.c.l.s8.bf16 %v2116_v53 }
 0x1e5   : > { %2256 = vmatprep.subr.bf16.mxu0 %v2159_v6  ;;  %2296 = vmatpush1.bf16.msra.mxu1 %v2194_v13  ;;  %v2212_v62 = vunpack.c.l.s8.bf16 %v2134_v55  ;;  %v2175_v63 = vunpack.c.h.s8.bf16 %v2115_v50  ;;  %v2211_v2 = vunpack.c.h.s8.bf16 %v2133_v60  ;;  %v2174_v4 = vunpack.c.h.s8.bf16 %v2114_v0 }
 0x1e6   : > { %2465 = vadd.xlane.f32.xlu0 %v2464_v33  ;;  %2297 = vmatprep.subr.bf16.mxu1 %v2193_v15  ;;  %v2118_v33 = vld [vmem:[%s6368_s0 + $0x70] sm:$0xff]  ;;  %v2210_v5 = vunpack.c.h.s8.bf16 %v2132_v3  ;;  %v2173_v6 = vunpack.c.l.s8.bf16 %v2115_v50  ;;  %v2209_v7 = vunpack.c.l.s8.bf16 %v2133_v60  ;;  %v2208_v13 = vunpack.c.l.s8.bf16 %v2132_v3  ;;  %v2112_v15 = vld [vmem:[%s6368_s0 + $0x40] sm:$0xff] }
 0x1e7   : > { %v2180_v51 = vunpack.c.l.s8.bf16 %v2118_v33  ;;  %v2207_v16 = vunpack.c.h.s8.bf16 %v6669_v9  ;;  %v2231_v23 = vunpack.c.h.s8.bf16 %v2143_v21  ;;  %v2148_v50 = vld [vmem:[%s6368_s0 + $0x160] sm:$0xff] }
 0x1e8   : > { %2257 = vmatpush1.bf16.msra.mxu0 %v2158_v12  ;;  %v2172_v12 = vunpack.c.l.s8.bf16 %v2114_v0  ;;  %v2242_v60 = vunpack.c.h.s8.bf16 %v2148_v50 }
 0x1e9   : > { %2258 = vmatprep.subr.bf16.mxu0 %v2157_v14  ;;  %2298 = vmatpush1.bf16.msra.mxu1 %v2192_v19  ;;  %v2171_v14 = vunpack.c.h.s8.bf16 %v2113_v8  ;;  %v2206_v19 = vunpack.c.h.s8.bf16 %v6674_v17 }
 0x1ea   : > { %2299 = vmatprep.subr.bf16.mxu1 %v2191_v1  ;;  %v2168_v1 = vunpack.c.l.s8.bf16 %v2112_v15 }
 0x1ec   : > { %2259 = vmatpush1.bf16.msra.mxu0 %v2156_v18  ;;  %v2170_v18 = vunpack.c.h.s8.bf16 %v2112_v15 }
 0x1ed   : > { %2260 = vmatprep.subr.bf16.mxu0 %v2155_v20  ;;  %2300 = vmatpush1.bf16.msra.mxu1 %v2190_v25  ;;  %v2169_v20 = vunpack.c.l.s8.bf16 %v2113_v8 }
 0x1ee   : > { %2301 = vmatprep.subr.bf16.mxu1 %v2189_v27  ;;  %v2141_v27 = vld [vmem:[%s6368_s0 + $0x128] sm:$0xff] }
 0x1f0   : > { %2261 = vmatpush1.bf16.msra.mxu0 %v2154_v24  ;;  %v2142_v24 = vld [vmem:[%s6368_s0 + $0x130] sm:$0xff] }
 0x1f1   : > { %2262 = vmatprep.subr.bf16.mxu0 %v2153_v26  ;;  %2302 = vmatpush1.bf16.msra.mxu1 %v2188_v32  ;;  %v2230_v25 = vunpack.c.h.s8.bf16 %v2142_v24  ;;  %v2229_v26 = vunpack.c.l.s8.bf16 %v2143_v21  ;;  %v2145_v21 = vld [vmem:[%s6368_s0 + $0x148] sm:$0xff] }
 0x1f2   : > { %2303 = vmatprep.subr.bf16.mxu1 %v2187_v35 }
 0x1f4   : > { %2263 = vmatpush1.bf16.msra.mxu0 %v2152_v30  ;;  %v2140_v30 = vld [vmem:[%s6368_s0 + $0x120] sm:$0xff] }
 0x1f5   : > { %2264 = vmatprep.subr.bf16.mxu0 %v2183_v49  ;;  %v2226_v32 = vunpack.c.h.s8.bf16 %v2140_v30  ;;  %v2225_v49 = vunpack.c.l.s8.bf16 %v2141_v27  ;;  %v2224_v35 = vunpack.c.l.s8.bf16 %v2140_v30 }
 0x26b   : > { %v2462_v36 = vpop.xlane.xlu0 %2461 }
 0x26c   : > { %v6631_v39 = vmul.f32 0.07216878, %v2462_v36  ;;  %v2120_v36 = vld [vmem:[%s6368_s0 + $0x80] sm:$0xff] }
 0x26d   : > { %v2184_v44 = vunpack.c.l.s8.bf16 %v2120_v36 }
 0x26e   : > { %v2476_v42 = vrot.slane %v6631_v39, %v6629_v37 }
 0x26f   : > { %v2466_v40 = vpop.xlane.xlu0 %2465 }
 0x270   : > { %v6633_v41 = vmul.f32 0.07216878, %v2466_v40  ;;  %v2182_v40 = vunpack.c.h.s8.bf16 %v2118_v33  ;;  %v2139_v33 = vld [vmem:[%s6368_s0 + $0x118] sm:$0xff] }
 0x272   : > { %v2480_v45 = vrot.slane %v6633_v41, %v6629_v37  ;;  %2265 = vmatpush2.bf16.msra.mxu0 %v2182_v40 }
 0x274   : > { %v2482_v31 = vsel %vm2481_vm1, %v2480_v45, %v2476_v42  ;;  %v2186_v42 = vunpack.c.h.s8.bf16 %v2120_v36  ;;  %v2181_v45 = vunpack.c.l.s8.bf16 %v2119_v28  ;;  %v2228_v28 = vunpack.c.l.s8.bf16 %v2142_v24 }
 0x275   : > { %v2485_v46 = vsel %vm2484_vm2, %v2482_v31, -inf  ;;  %v2185_v31 = vunpack.c.l.s8.bf16 %v2121_v29  ;;  %v2227_v29 = vunpack.c.h.s8.bf16 %v2141_v27  ;;  %v2223_v36 = vunpack.c.h.s8.bf16 %v2139_v33 }
 0x276   : > { %2486 = vmax.xlane.f32.xlu1 %v2485_v46  ;;  %v2117_v46 = vld [vmem:[%s6368_s0 + $0x68] sm:$0xff]  ;;  %2304 = vmatpush1.bf16.msra.mxu1 %v2186_v42  ;;  %v2235_v24 = vunpack.c.h.s8.bf16 %v2145_v21 }
 0x277   : > { %2266 = vmatprep.subr.bf16.mxu0 %v2181_v45  ;;  %v2179_v52 = vunpack.c.h.s8.bf16 %v2117_v46  ;;  %2305 = vmatprep.subr.bf16.mxu1 %v2185_v31  ;;  %v2177_v58 = vunpack.c.l.s8.bf16 %v2117_v46  ;;  %v2137_v42 = vld [vmem:[%s6368_s0 + $0x108] sm:$0xff]  ;;  %v2136_v46 = vld [vmem:[%s6368_s0 + $0x100] sm:$0xff] }
 0x278   : > { %2267 = vmatpush2.bf16.msra.mxu0 %v2180_v51  ;;  %v2219_v31 = vunpack.c.h.s8.bf16 %v2137_v42  ;;  %v2218_v47 = vunpack.c.h.s8.bf16 %v2136_v46  ;;  %v2217_v51 = vunpack.c.l.s8.bf16 %v2137_v42 }
 0x279   : > { %2268 = vmatprep.subr.bf16.mxu0 %v2179_v52  ;;  %v2216_v52 = vunpack.c.l.s8.bf16 %v2136_v46  ;;  %v2598_v46 = vld [vmem:[%s6381_s21 + $0x68] sm:$0xff] }
 0x27a   : > { %2306 = vmatpush1.bf16.msra.mxu1 %v2184_v44  ;;  %v2151_v44 = vld [vmem:[%s6368_s0 + $0x178] sm:$0xff] }
 0x27b   : > { %2307 = vmatprep.subr.bf16.mxu1 %v2215_v54  ;;  %v2247_v53 = vunpack.c.h.s8.bf16 %v2151_v44  ;;  %v2150_v54 = vld [vmem:[%s6368_s0 + $0x170] sm:$0xff] }
 0x27c   : > { %2269 = vmatpush2.bf16.msra.mxu0 %v2178_v56  ;;  %v2246_v55 = vunpack.c.h.s8.bf16 %v2150_v54  ;;  %v2245_v56 = vunpack.c.l.s8.bf16 %v2151_v44 }
 0x27d   : > { %2270 = vmatprep.subr.bf16.mxu0 %v2177_v58  ;;  %v2244_v58 = vunpack.c.l.s8.bf16 %v2150_v54 }
 0x27e   : > { %2308 = vmatpush2.bf16.msra.mxu1 %v2214_v57  ;;  %v2149_v57 = vld [vmem:[%s6368_s0 + $0x168] sm:$0xff] }
 0x27f   : > { %2309 = vmatprep.subr.bf16.mxu1 %v2213_v59  ;;  %v2243_v59 = vunpack.c.h.s8.bf16 %v2149_v57 }
 0x280   : > { %2271 = vmatpush2.bf16.msra.mxu0 %v2176_v61  ;;  %v2241_v61 = vunpack.c.l.s8.bf16 %v2149_v57 }
 0x281   : > { %2272 = vmatprep.subr.bf16.mxu0 %v2175_v63 }
 0x282   : > { %2310 = vmatpush2.bf16.msra.mxu1 %v2212_v62 }
 0x283   : > { %2311 = vmatprep.subr.bf16.mxu1 %v2211_v2  ;;  %v2240_v2 = vunpack.c.l.s8.bf16 %v2148_v50  ;;  %v2592_v50 = vld [vmem:[%s6381_s21 + $0x38] sm:$0xff] }
 0x284   : > { %2273 = vmatpush2.bf16.msra.mxu0 %v2174_v4 }
 0x285   : > { %2274 = vmatprep.subr.bf16.mxu0 %v2173_v6 }
 0x286   : > { %2312 = vmatpush2.bf16.msra.mxu1 %v2210_v5 }
 0x287   : > { %2313 = vmatprep.subr.bf16.mxu1 %v2209_v7  ;;  %v2147_v7 = vld [vmem:[%s6368_s0 + $0x158] sm:$0xff] }
 0x288   : > { %2275 = vmatpush2.bf16.msra.mxu0 %v2172_v12  ;;  %v2239_v8 = vunpack.c.h.s8.bf16 %v2147_v7  ;;  %v2146_v12 = vld [vmem:[%s6368_s0 + $0x150] sm:$0xff] }
 0x289   : > { %2276 = vmatprep.subr.bf16.mxu0 %v2171_v14  ;;  %v2205_v14 = vunpack.c.l.s8.bf16 %v6669_v9  ;;  %v2128_v9 = vld [vmem:[%s6368_s0 + $0xc0] sm:$0xff] }
 0x28a   : > { %2314 = vmatpush2.bf16.msra.mxu1 %v2208_v13  ;;  %v2238_v13 = vunpack.c.h.s8.bf16 %v2146_v12  ;;  %v2200_v27 = vunpack.c.l.s8.bf16 %v2128_v9 }
 0x28b   : > { %2315 = vmatprep.subr.bf16.mxu1 %v2207_v16 }
 0x28c   : > { %2277 = vmatpush2.bf16.msra.mxu0 %v2170_v18  ;;  %v2236_v18 = vunpack.c.l.s8.bf16 %v2146_v12 }
 0x28d   : > { %2278 = vmatprep.subr.bf16.mxu0 %v2169_v20 }
 0x28e   : > { %2316 = vmatpush2.bf16.msra.mxu1 %v2206_v19  ;;  %v2129_v19 = vld [vmem:[%s6368_s0 + $0xc8] sm:$0xff] }
 0x28f   : > { %2317 = vmatprep.subr.bf16.mxu1 %v2205_v14  ;;  %v2203_v20 = vunpack.c.h.s8.bf16 %v2129_v19 }
 0x290   : > { %2279 = vmatpush2.bf16.msra.mxu0 %v2168_v1  ;;  %v2144_v1 = vld [vmem:[%s6368_s0 + $0x140] sm:$0xff] }
 0x291   : > { %2334 = vmatprep.subr.bf16.mxu0 %v2231_v23  ;;  %v2202_v23 = vunpack.c.h.s8.bf16 %v2128_v9  ;;  %v2590_v9 = vld [vmem:[%s6381_s21 + $0x28] sm:$0xff] }
 0x293   : > { %2281 = vmatmul.mubr.bf16.vlgmr.msra.gmra.mxu0 %v6525_v34  ;;  %v2138_v34 = vld [vmem:[%s6368_s0 + $0x110] sm:$0xff] }
 0x294   : > { %2335 = vmatpush1.bf16.msra.mxu0 %v2230_v25  ;;  %2366 = vmatprep.mubr.bf16.mxu0 %v6539_v48  ;;  %v2222_v40 = vunpack.c.h.s8.bf16 %v2138_v34  ;;  %v2221_v48 = vunpack.c.l.s8.bf16 %v2139_v33  ;;  %v2220_v45 = vunpack.c.l.s8.bf16 %v2138_v34  ;;  %v2234_v25 = vunpack.c.h.s8.bf16 %v2144_v1  ;;  %v2603_v34 = vld [vmem:[%s6381_s21 + $0x90] sm:$0xff] }
 0x295   : > { %2336 = vmatprep.subr.bf16.mxu0 %v2229_v26  ;;  %v2233_v26 = vunpack.c.l.s8.bf16 %v2145_v21 }
 0x298   : > { %2337 = vmatpush1.bf16.msra.mxu0 %v2228_v28  ;;  %v2232_v28 = vunpack.c.l.s8.bf16 %v2144_v1 }
 0x299   : > { %2338 = vmatprep.subr.bf16.mxu0 %v2227_v29 }
 0x29c   : > { %2339 = vmatpush1.bf16.msra.mxu0 %v2226_v32 }
 0x29d   : > { %2340 = vmatprep.subr.bf16.mxu0 %v2225_v49 }
 0x2a0   : > { %2341 = vmatpush1.bf16.msra.mxu0 %v2224_v35 }
 0x2a1   : > { %2342 = vmatprep.subr.bf16.mxu0 %v2223_v36  ;;  %v2604_v36 = vld [vmem:[%s6381_s21 + $0x98] sm:$0xff] }
 0x2a4   : > { %2343 = vmatpush1.bf16.msra.mxu0 %v2222_v40  ;;  %v2664_v40 = vunpack.c.h.s8.bf16 %v2604_v36 }
 0x2a5   : > { %2344 = vmatprep.subr.bf16.mxu0 %v2221_v48  ;;  %v2663_v48 = vunpack.c.h.s8.bf16 %v2603_v34 }
 0x2a8   : > { %2345 = vmatpush1.bf16.msra.mxu0 %v2220_v45 }
 0x2a9   : > { %2346 = vmatprep.subr.bf16.mxu0 %v2219_v31  ;;  %v2658_v31 = vunpack.c.l.s8.bf16 %v2604_v36 }
 0x2ac   : > { %2347 = vmatpush1.bf16.msra.mxu0 %v2218_v47  ;;  %v2602_v47 = vld [vmem:[%s6381_s21 + $0x88] sm:$0xff] }
 0x2ad   : > { %2348 = vmatprep.subr.bf16.mxu0 %v2217_v51  ;;  %v2657_v51 = vunpack.c.l.s8.bf16 %v2603_v34  ;;  %v2656_v54 = vunpack.c.h.s8.bf16 %v2602_v47  ;;  %v2619_v34 = vld [vmem:[%s6381_s21 + $0x110] sm:$0xff] }
 0x2b0   : > { %2349 = vmatpush1.bf16.msra.mxu0 %v2216_v52  ;;  %v2652_v52 = vunpack.c.h.s8.bf16 %v2598_v46 }
 0x2b1   : > { %2350 = vmatprep.subr.bf16.mxu0 %v2247_v53  ;;  %v2597_v53 = vld [vmem:[%s6381_s21 + $0x60] sm:$0xff] }
 0x2b4   : > { %2351 = vmatpush2.bf16.msra.mxu0 %v2246_v55  ;;  %v2601_v55 = vld [vmem:[%s6381_s21 + $0x80] sm:$0xff] }
 0x2b5   : > { %2352 = vmatprep.subr.bf16.mxu0 %v2245_v56  ;;  %v2651_v56 = vunpack.c.h.s8.bf16 %v2597_v53  ;;  %v2655_v57 = vunpack.c.h.s8.bf16 %v2601_v55 }
 0x2b8   : > { %2353 = vmatpush2.bf16.msra.mxu0 %v2244_v58  ;;  %v2646_v58 = vunpack.c.l.s8.bf16 %v2598_v46  ;;  %v2614_v46 = vld [vmem:[%s6381_s21 + $0xe8] sm:$0xff] }
 0x2b9   : > { %2354 = vmatprep.subr.bf16.mxu0 %v2243_v59  ;;  %v2650_v59 = vunpack.c.l.s8.bf16 %v2602_v47  ;;  %v2680_v47 = vunpack.c.h.s8.bf16 %v2614_v46 }
 0x2bc   : > { %2355 = vmatpush2.bf16.msra.mxu0 %v2242_v60  ;;  %v2596_v60 = vld [vmem:[%s6381_s21 + $0x58] sm:$0xff] }
 0x2bd   : > { %2356 = vmatprep.subr.bf16.mxu0 %v2241_v61  ;;  %v2645_v61 = vunpack.c.l.s8.bf16 %v2597_v53 }
 0x2c0   : > { %2357 = vmatpush2.bf16.msra.mxu0 %v2240_v2  ;;  %v2644_v2 = vunpack.c.h.s8.bf16 %v2596_v60 }
 0x2c1   : > { %2358 = vmatprep.subr.bf16.mxu0 %v2239_v8 }
 0x2c4   : > { %2359 = vmatpush2.bf16.msra.mxu0 %v2238_v13 }
 0x2ff   : > { %v2487_v62 = vpop.xlane.xlu1 %2486 }
 0x300   : > { %v2492_v63 = vrot.slane %v2487_v62, %v6585_v22  ;;  %v2496_v0 = vrot.slane %v2487_v62, %v6593_v43  ;;  %v2649_v62 = vunpack.c.l.s8.bf16 %v2601_v55 }
 0x302   : > { %v2499_v3 = vsub.f32 %v6631_v39, %v2492_v63  ;;  %v2500_v4 = vsub.f32 %v6633_v41, %v2496_v0  ;;  %v2204_v39 = vunpack.c.l.s8.bf16 %v6674_v17  ;;  %v2237_v41 = vunpack.c.l.s8.bf16 %v2147_v7  ;;  %v2591_v0 = vld [vmem:[%s6381_s21 + $0x30] sm:$0xff] }
 0x303   : > { %v2201_v17 = vunpack.c.l.s8.bf16 %v2129_v19  ;;  %v2640_v63 = vunpack.c.h.s8.bf16 %v2592_v50  ;;  %v2638_v7 = vunpack.c.l.s8.bf16 %v2596_v60  ;;  %v2633_v8 = vunpack.c.l.s8.bf16 %v2591_v0 }
 0x304   : > { %v2501_v5 = vmul.f32 1.442695, %v2499_v3  ;;  %v2503_v6 = vmul.f32 1.442695, %v2500_v4  ;;  %2360 = vmatprep.subr.bf16.mxu0 %v2237_v41  ;;  %2318 = vmatpush2.bf16.msra.mxu1 %v2204_v39  ;;  %v2595_v3 = vld [vmem:[%s6381_s21 + $0x50] sm:$0xff]  ;;  %v2639_v4 = vunpack.c.h.s8.bf16 %v2591_v0  ;;  %v2586_v41 = vld [vmem:[%s6381_s21 + $0x8] sm:$0xff] }
 0x305   : > { %2361 = vmatpush2.bf16.msra.mxu0 %v2236_v18  ;;  %2319 = vmatprep.subr.bf16.mxu1 %v2203_v20  ;;  %v2637_v39 = vunpack.c.l.s8.bf16 %v2595_v3  ;;  %v2628_v19 = vunpack.c.h.s8.bf16 %v2586_v41  ;;  %v2585_v20 = vld [vmem:[%s6381_s21] sm:$0xff] }
 0x306   : > { %6082 = vpow2.f32 %v2501_v5  ;;  %2362 = vmatprep.subr.bf16.mxu0 %v2235_v24  ;;  %v2643_v5 = vunpack.c.h.s8.bf16 %v2595_v3  ;;  %v2627_v1 = vunpack.c.h.s8.bf16 %v2585_v20 }
 0x307   : > { %6084 = vpow2.f32 %v2503_v6  ;;  %v2634_v6 = vunpack.c.l.s8.bf16 %v2592_v50 }
 0x308   : > { %2320 = vmatpush2.bf16.msra.mxu1 %v2202_v23  ;;  %v2589_v23 = vld [vmem:[%s6381_s21 + $0x20] sm:$0xff] }
 0x309   : > { %2321 = vmatprep.subr.bf16.mxu1 %v2201_v17  ;;  %2363 = vmatpush2.bf16.msra.mxu0 %v2234_v25  ;;  %v2632_v17 = vunpack.c.h.s8.bf16 %v2590_v9  ;;  %v2631_v25 = vunpack.c.h.s8.bf16 %v2589_v23 }
 0x30a   : > { %2364 = vmatprep.subr.bf16.mxu0 %v2233_v26  ;;  %v2622_v26 = vunpack.c.l.s8.bf16 %v2586_v41 }
 0x30c   : > { %2322 = vmatpush2.bf16.msra.mxu1 %v2200_v27 }
 0x30d   : > { %2365 = vmatpush2.bf16.msra.mxu0 %v2232_v28  ;;  %2709 = vmatprep.subr.bf16.mxu1 %v2664_v40  ;;  %v2621_v28 = vunpack.c.l.s8.bf16 %v2585_v20 }
 0x30f   : > { %2324 = vmatmul.mubr.bf16.vlgmr.msra.gmra.mxu1 %v6573_v10  ;;  %v2608_v10 = vld [vmem:[%s6381_s21 + $0xb8] sm:$0xff] }
 0x310   : > { %2367 = vmatmul.mubr.bf16.vlgmr.msra.gmra.mxu0 %v6578_v11  ;;  %v2607_v11 = vld [vmem:[%s6381_s21 + $0xb0] sm:$0xff]  ;;  %v2668_v42 = vunpack.c.h.s8.bf16 %v2608_v10  ;;  %2710 = vmatpush1.bf16.msra.mxu1 %v2663_v48 }
 0x311   : > { %v2667_v45 = vunpack.c.h.s8.bf16 %v2607_v11  ;;  %2711 = vmatprep.subr.bf16.mxu1 %v2658_v31  ;;  %v2661_v44 = vunpack.c.l.s8.bf16 %v2607_v11  ;;  %v2685_v11 = vunpack.c.l.s8.bf16 %v2619_v34  ;;  %v2609_v31 = vld [vmem:[%s6381_s21 + $0xc0] sm:$0xff] }
 0x312   : > { %2791 = vmatprep.subr.bf16.mxu0 %v2668_v42  ;;  %v2610_v42 = vld [vmem:[%s6381_s21 + $0xc8] sm:$0xff]  ;;  %v2669_v53 = vunpack.c.l.s8.bf16 %v2609_v31 }
 0x313   : > { %v6699_v15 = vpop.eup %6082  ;;  %2792 = vmatpush1.bf16.msra.mxu0 %v2667_v45  ;;  %v2676_v45 = vunpack.c.h.s8.bf16 %v2610_v42 }
 0x314   : > { %v6701_v16 = vpop.eup %6084  ;;  %2508 = vperm.xlu1 %6070, %v6699_v15   ;;  %2712 = vmatpush1.bf16.msra.mxu1 %v2657_v51  ;;  %v2613_v51 = vld [vmem:[%s6381_s21 + $0xe0] sm:$0xff] }
 0x315   : > { %2511 = vperm.xlu0 %6071, %v6701_v16   ;;  %2713 = vmatprep.subr.bf16.mxu1 %v2652_v52  ;;  %v2670_v52 = vunpack.c.l.s8.bf16 %v2610_v42  ;;  %v2673_v55 = vunpack.c.l.s8.bf16 %v2613_v51 }
 0x318   : > { %2714 = vmatpush1.bf16.msra.mxu1 %v2651_v56  ;;  %v6744_v56 = vld [vmem:[%s6381_s21 + $0xa8] sm:$0xff] }
 0x319   : > { %2715 = vmatprep.subr.bf16.mxu1 %v2646_v58 }
 0x31c   : > { %2716 = vmatpush1.bf16.msra.mxu1 %v2645_v61 }
 0x31d   : > { %2717 = vmatprep.subr.bf16.mxu1 %v2640_v63 }
 0x320   : > { %2718 = vmatpush1.bf16.msra.mxu1 %v2639_v4 }
 0x321   : > { %2719 = vmatprep.subr.bf16.mxu1 %v2634_v6 }
 0x324   : > { %2720 = vmatpush1.bf16.msra.mxu1 %v2633_v8 }
 0x325   : > { %2721 = vmatprep.subr.bf16.mxu1 %v2628_v19 }
 0x328   : > { %2722 = vmatpush1.bf16.msra.mxu1 %v2627_v1 }
 0x329   : > { %2723 = vmatprep.subr.bf16.mxu1 %v2622_v26 }
 0x32c   : > { %2724 = vmatpush1.bf16.msra.mxu1 %v2621_v28 }
 0x353   : > { %v2282_v58 = vpop.f32.mrf.mxu0 }
 0x38f   : > { %v2509_v29 = vpop.permute.xlu1 %2508 }
 0x390   : > { %v2512_v30 = vpop.permute.xlu0 %2511  ;;  %v2516_v32 = vrot.slane %v2509_v29, %v6629_v37  ;;  %v2626_v29 = vunpack.c.l.s8.bf16 %v2590_v9 }
 0x391   : > { %v2520_v49 = vrot.slane %v2512_v30, %v6629_v37  ;;  %v2662_v37 = vunpack.c.l.s8.bf16 %v2608_v10  ;;  %v2616_v30 = vld [vmem:[%s6381_s21 + $0xf8] sm:$0xff] }
 0x392   : > { %v2682_v40 = vunpack.c.l.s8.bf16 %v2616_v30 }
 0x393   : > { %v2521_v33 = vsel %vm2481_vm1, %v2520_v49, %v2516_v32  ;;  %2793 = vmatprep.subr.bf16.mxu0 %v2662_v37  ;;  %v2688_v32 = vunpack.c.h.s8.bf16 %v2616_v30  ;;  %v2615_v49 = vld [vmem:[%s6381_s21 + $0xf0] sm:$0xff]  ;;  %v2675_v37 = vunpack.c.h.s8.bf16 %v2609_v31 }
 0x394   : > { %v2523_v35 = vsel %vm2484_vm2, %v2521_v33, 0.0  ;;  %2794 = vmatpush1.bf16.msra.mxu0 %v2661_v44  ;;  %v2620_v33 = vld [vmem:[%s6381_s21 + $0x118] sm:$0xff]  ;;  %v2681_v48 = vunpack.c.l.s8.bf16 %v2615_v49  ;;  %v2679_v44 = vunpack.c.h.s8.bf16 %v2613_v51 }
 0x395   : > { %2524 = vadd.xlane.f32.xlu1 %v2523_v35  ;;  %2795 = vmatprep.subr.bf16.mxu0 %v2656_v54  ;;  %v2687_v35 = vunpack.c.h.s8.bf16 %v2615_v49  ;;  %v2692_v36 = vunpack.c.h.s8.bf16 %v2620_v33  ;;  %v2686_v10 = vunpack.c.l.s8.bf16 %v2620_v33  ;;  %v2674_v54 = vunpack.c.l.s8.bf16 %v2614_v46 }
 0x396   : > { %2733 = vmatprep.subr.bf16.mxu1 %v2688_v32 }
 0x397   : > { %2734 = vmatpush2.bf16.msra.mxu1 %v2687_v35 }
 0x398   : > { %2796 = vmatpush1.bf16.msra.mxu0 %v2655_v57  ;;  %2735 = vmatprep.subr.bf16.mxu1 %v2682_v40  ;;  %v2666_v57 = vunpack.c.h.s8.bf16 %v6744_v56 }
 0x399   : > { %2797 = vmatprep.subr.bf16.mxu0 %v2650_v59  ;;  %v2284_v59 = vpop.f32.mrf.mxu0 }
 0x39b   : > { %2736 = vmatpush2.bf16.msra.mxu1 %v2681_v48  ;;  %v2286_v50 = vpop.f32.mrf.mxu0 }
 0x39c   : > { %2798 = vmatpush1.bf16.msra.mxu0 %v2649_v62  ;;  %2737 = vmatprep.subr.bf16.mxu1 %v2676_v45 }
 0x39d   : > { %2799 = vmatprep.subr.bf16.mxu0 %v2644_v2  ;;  %v2288_v60 = vpop.f32.mrf.mxu0 }
 0x39f   : > { %2738 = vmatpush2.bf16.msra.mxu1 %v2675_v37 }
 0x3a0   : > { %2800 = vmatpush1.bf16.msra.mxu0 %v2643_v5  ;;  %2739 = vmatprep.subr.bf16.mxu1 %v2670_v52  ;;  %v2377_v5 = vld [vmem:[%s7822_s5] sm:$0x3] }
 0x3a1   : > { %2801 = vmatprep.subr.bf16.mxu0 %v2638_v7  ;;  %v2382_v8 = vrot.slane %v2377_v5, %v6585_v22 }
 0x3a3   : > { %2740 = vmatpush2.bf16.msra.mxu1 %v2669_v53 }
 0x3a4   : > { %2802 = vmatpush1.bf16.msra.mxu0 %v2637_v39  ;;  %2750 = vmatprep.subr.bf16.mxu1 %v2666_v57 }
 0x3a5   : > { %2803 = vmatprep.subr.bf16.mxu0 %v2632_v17 }
 0x3a8   : > { %2804 = vmatpush1.bf16.msra.mxu0 %v2631_v25 }
 0x3a9   : > { %2805 = vmatprep.subr.bf16.mxu0 %v2626_v29 }
 0x3cf   : > { %v2325_v61 = vpop.f32.mrf.mxu1 }
 0x3d0   : > { %v2368_v63 = vpop.f32.mrf.mxu0  ;;  %v2326_v3 = vadd.f32 %v2325_v61, %v2282_v58 }
 0x3d1   : > { %v2327_v62 = vpop.f32.mrf.mxu1 }
 0x3d2   : > { %v2370_v2 = vpop.f32.mrf.mxu0  ;;  %v2328_v4 = vadd.f32 %v2327_v62, %v2284_v59 }
 0x3d3   : > { %v2329_v0 = vpop.f32.mrf.mxu1 }
 0x3d4   : > { %v2372_v7 = vpop.f32.mrf.mxu0  ;;  %v2371_v39 = vadd.f32 %v2370_v2, %v2328_v4 }
 0x3d5   : > { %v2331_v6 = vpop.f32.mrf.mxu1 }
 0x3d6   : > { %v2332_v41 = vadd.f32 %v2331_v6, %v2288_v60  ;;  %v2374_v19 = vpop.f32.mrf.mxu0 }
 0x41e   : > { %v2525_v12 = vpop.xlane.xlu1 %2524 }
 0x41f   : > { %v2530_v13 = vrot.slane %v2525_v12, %v6585_v22  ;;  %v2534_v14 = vrot.slane %v2525_v12, %v6593_v43  ;;  %v2386_v12 = vrot.slane %v2377_v5, %v6593_v43 }
 0x421   : > { %6086 = vrcp.f32 %v2530_v13  ;;  %v2369_v13 = vadd.f32 %v2368_v63, %v2326_v3  ;;  %v2390_v1 = vmul.f32 %v2386_v12, %v2371_v39 }
 0x422   : > { %6088 = vrcp.f32 %v2534_v14  ;;  %v2330_v14 = vadd.f32 %v2329_v0, %v2286_v50 }
 0x424   : > { %v2373_v17 = vadd.f32 %v2372_v7, %v2330_v14 }
 0x42e   : > { %v6087_v18 = vpop.eup %6086 }
 0x42f   : > { %v2538_v21 = vmul.f32 %v6087_v18, %v6699_v15  ;;  %v6089_v24 = vpop.eup %6088  ;;  %v2625_v15 = vunpack.c.l.s8.bf16 %v2589_v23  ;;  %v2393_v18 = vld [vmem:[%s7823_s7] sm:$0x3]  ;;  %v2375_v23 = vadd.f32 %v2374_v19, %v2332_v41  ;;  %v2600_v19 = vld [vmem:[%s6381_s21 + $0x78] sm:$0xff] }
 0x430   : > { %v2540_v27 = vmul.f32 %v6089_v24, %v6701_v16  ;;  %v2691_v16 = vunpack.c.h.s8.bf16 %v2619_v34  ;;  %v2398_v20 = vrot.slane %v2393_v18, %v6585_v22  ;;  %v2402_v9 = vrot.slane %v2393_v18, %v6593_v43 }
 0x431   : > { %2543 = vperm.xlu0 %6071, %v2538_v21   ;;  %2806 = vmatpush1.bf16.msra.mxu0 %v2625_v15  ;;  %v2389_v21 = vmul.f32 %v2382_v8, %v2369_v13  ;;  %v2391_v24 = vmul.f32 %v2382_v8, %v2373_v17  ;;  %v2392_v25 = vmul.f32 %v2386_v12, %v2375_v23  ;;  %v2605_v8 = vld [vmem:[%s6381_s21 + $0xa0] sm:$0xff]  ;;  %v2660_v18 = vunpack.c.l.s8.bf16 %v6744_v56  ;;  %v2594_v17 = vld [vmem:[%s6381_s21 + $0x48] sm:$0xff] }
 0x432   : > { %2815 = vmatprep.subr.bf16.mxu0 %v2692_v36  ;;  %v2665_v39 = vunpack.c.h.s8.bf16 %v2605_v8  ;;  %v2648_v56 = vunpack.c.l.s8.bf16 %v2600_v19 }
 0x433   : > { %v2405_v26 = vadd.f32 %v2398_v20, %v2389_v21  ;;  %v2407_v49 = vadd.f32 %v2398_v20, %v2391_v24  ;;  %v2408_v33 = vadd.f32 %v2402_v9, %v2392_v25  ;;  %v2659_v20 = vunpack.c.l.s8.bf16 %v2605_v8  ;;  %v2599_v21 = vld [vmem:[%s6381_s21 + $0x70] sm:$0xff]  ;;  %v2593_v25 = vld [vmem:[%s6381_s21 + $0x40] sm:$0xff] }
 0x434   : > { %v2647_v23 = vunpack.c.l.s8.bf16 %v2599_v21  ;;  %v2642_v24 = vunpack.c.h.s8.bf16 %v2594_v17 }
 0x435   : > { %2548 = vperm.xlu0 %6071, %v2540_v27   ;;  %2816 = vmatpush2.bf16.msra.mxu0 %v2691_v16  ;;  %v2406_v27 = vadd.f32 %v2402_v9, %v2390_v1  ;;  %v2654_v9 = vunpack.c.h.s8.bf16 %v2600_v19  ;;  %v2653_v1 = vunpack.c.h.s8.bf16 %v2599_v21 }
 0x436   : > { %2817 = vmatprep.subr.bf16.mxu0 %v2686_v10 }
 0x439   : > { %2818 = vmatpush2.bf16.msra.mxu0 %v2685_v11 }
 0x43a   : > { %2819 = vmatprep.subr.bf16.mxu0 %v2680_v47 }
 0x43d   : > { %2820 = vmatpush2.bf16.msra.mxu0 %v2679_v44 }
 0x43e   : > { %2821 = vmatprep.subr.bf16.mxu0 %v2674_v54 }
 0x441   : > { %2822 = vmatpush2.bf16.msra.mxu0 %v2673_v55 }
 0x4ac   : > { %v2544_v28 = vpop.permute.xlu0 %2543 }
 0x4ad   : > { %v2551_v29 = vmul.f32 %v2544_v28, %v2405_v26  ;;  %v2552_v15 = vmul.f32 %v2544_v28, %v2406_v27  ;;  %v2641_v26 = vunpack.c.h.s8.bf16 %v2593_v25  ;;  %v2636_v27 = vunpack.c.l.s8.bf16 %v2594_v17  ;;  %v2588_v28 = vld [vmem:[%s6381_s21 + $0x18] sm:$0xff] }
 0x4af   : > { %v2555_v30 = vrot.slane %v2551_v29, 4  ;;  %v2561_v32 = vsel %vm2458_vm0, %v2552_v15, 0.0  ;;  %v2630_v15 = vunpack.c.h.s8.bf16 %v2588_v28 }
 0x4b0   : > { %v2562_v35 = vrot.slane %v2561_v32, 4  ;;  %v2549_v36 = vpop.permute.xlu0 %2548 }
 0x4b1   : > { %v2556_v34 = vadd.f32 %v2555_v30, %v2551_v29  ;;  %v2553_v16 = vmul.f32 %v2549_v36, %v2407_v49  ;;  %v2554_v40 = vmul.f32 %v2549_v36, %v2408_v33  ;;  %v2635_v29 = vunpack.c.l.s8.bf16 %v2593_v25  ;;  %v2587_v30 = vld [vmem:[%s6381_s21 + $0x10] sm:$0xff]  ;;  %v2618_v33 = vld [vmem:[%s6381_s21 + $0x108] sm:$0xff] }
 0x4b2   : > { %v2563_v48 = vadd.f32 %v2562_v35, %v2561_v32  ;;  %v2629_v32 = vunpack.c.h.s8.bf16 %v2587_v30  ;;  %v2624_v49 = vunpack.c.l.s8.bf16 %v2588_v28  ;;  %v2623_v35 = vunpack.c.l.s8.bf16 %v2587_v30 }
 0x4b3   : > { %v2557_v10 = vrot.slane %v2556_v34, 2  ;;  %v2568_v11 = vrot.slane %v2553_v16, 4  ;;  %v2574_v42 = vsel %vm2458_vm0, %v2554_v40, 0.0  ;;  %v2690_v36 = vunpack.c.h.s8.bf16 %v2618_v33 }
 0x4b4   : > { %v2564_v45 = vrot.slane %v2563_v48, 2  ;;  %v2575_v31 = vrot.slane %v2574_v42, 4  ;;  %v2684_v40 = vunpack.c.l.s8.bf16 %v2618_v33 }
 0x4b5   : > { %v2558_v46 = vadd.f32 %v2557_v10, %v2556_v34  ;;  %v2569_v37 = vadd.f32 %v2568_v11, %v2553_v16  ;;  %v2617_v34 = vld [vmem:[%s6381_s21 + $0x100] sm:$0xff] }
 0x4b6   : > { %v2565_v47 = vadd.f32 %v2564_v45, %v2563_v48  ;;  %v2576_v51 = vadd.f32 %v2575_v31, %v2574_v42  ;;  %v2689_v16 = vunpack.c.h.s8.bf16 %v2617_v34  ;;  %v2612_v48 = vld [vmem:[%s6381_s21 + $0xd8] sm:$0xff]  ;;  %v2683_v10 = vunpack.c.l.s8.bf16 %v2617_v34  ;;  %v2611_v42 = vld [vmem:[%s6381_s21 + $0xd0] sm:$0xff] }
 0x4b7   : > { %v2559_v44 = vrot.slane %v2558_v46, 1  ;;  %v2570_v52 = vrot.slane %v2569_v37, 2  ;;  %v2678_v11 = vunpack.c.h.s8.bf16 %v2612_v48  ;;  %v2677_v45 = vunpack.c.h.s8.bf16 %v2611_v42 }
 0x4b8   : > { %v2566_v53 = vrot.slane %v2565_v47, 1  ;;  %v2577_v54 = vrot.slane %v2576_v51, 2  ;;  %v2672_v31 = vunpack.c.l.s8.bf16 %v2612_v48 }
 0x4b9   : > { %v2560_v55 = vadd.f32 %v2559_v44, %v2558_v46  ;;  %v2571_v57 = vadd.f32 %v2570_v52, %v2569_v37  ;;  %v2671_v46 = vunpack.c.l.s8.bf16 %v2611_v42  ;;  %v2852_v37 = vsub.s32 4, %v6433_v38  ;;  %v2832_v52 = vld [vmem:[%s6386_s3] sm:$0x3f] }
 0x4ba   : > { %v2567_v58 = vadd.f32 %v2566_v53, %v2565_v47  ;;  %v2578_v59 = vadd.f32 %v2577_v54, %v2576_v51  ;;  %v6183_v47 = vmov 1983009808   ;;  %v2856_v44 = vsub.s32 5, %v6433_v38 }
 0x4bb   : > { %v2572_v50 = vrot.slane %v2571_v57, 1  ;;  %v2581_v61 = vpack.c.bf16 %v2560_v55, %v2560_v55  ;;  %v2881_v51 = vunpack.c.l.s4 %v6183_v47  ;;  %v2853_v53 = vrot.slane %v2832_v52, %v2852_v37 }
 0x4bc   : > { %v2579_v60 = vrot.slane %v2578_v59, 1  ;;  %v2582_v63 = vpack.c.bf16 %v2567_v58, %v2567_v58  ;;  %v2857_v55 = vrot.slane %v2832_v52, %v2856_v44  ;;  %v2841_v8 = vrot.slane %v2832_v52, %v6593_v43 }
 0x4bd   : > { %v2573_v62 = vadd.f32 %v2572_v50, %v2571_v57  ;;  %v2697_v4 = vunpack.c.l.b16 %v2581_v61  ;;  %v2882_v54 = vunpack.c.0.s8 %v2881_v51 }
 0x4be   : > { %v2580_v0 = vadd.f32 %v2579_v60, %v2578_v59  ;;  %v2698_v6 = vunpack.c.l.b16 %v2582_v63 }
 0x4bf   : > { %v2583_v2 = vpack.c.bf16 %v2573_v62, %v2573_v62  ;;  %v2885_v61 = vsub.s32 %v2882_v54, %v6433_v38 }
 0x4c0   : > { %v2584_v3 = vpack.c.bf16 %v2580_v0, %v2580_v0 }
 0x4c1   : > { %v2699_v5 = vunpack.c.l.b16 %v2583_v2 }
 0x4c2   : > { %v2700_v7 = vunpack.c.l.b16 %v2584_v3  ;;  %v2871_v3 = vld [vmem:[#allocation2 + $0x8] sm:$0xf] }
 0x4c3   : > { %v2701_v12 = vsel %vm2481_vm1, %v2699_v5, %v2697_v4 }
 0x4c4   : > { %v2702_v13 = vsel %vm2481_vm1, %v2700_v7, %v2698_v6  ;;  %v2703_v41 = vpack.c.b16 %v2701_v12, %v2701_v12  ;;  %v2844_v12 = vsub.s32 2, %v6433_v38 }
 0x4c5   : > { %v2704_v14 = vpack.c.b16 %v2702_v13, %v2702_v13  ;;  %v2848_v13 = vsub.s32 3, %v6433_v38 }
 0x4c7   : > { %5880 = vmatprep.mubr.msk.bf16.mxu1 %vm2458_vm0, %v2704_v14  ;;  %5882 = vmatprep.mubr.msk.bf16.mxu0 %vm2458_vm0, %v2704_v14 }
 0x4c8   : > { %2742 = vmatmul.mubr.bf16.vlgmr.msra.gmra.mxu1 %v2703_v41  ;;  %2824 = vmatmul.mubr.bf16.vlgmr.msra.gmra.mxu0 %v2703_v41 }
 0x4c9   : > { %2751 = vmatpush1.bf16.msra.mxu1 %v2665_v39  ;;  %5881 = vmatprep.mubr.msk.bf16.mxu1 %vm2458_vm0, %v2704_v14  ;;  %v2837_v14 = vrot.slane %v2832_v52, %v6585_v22 }
 0x4ca   : > { %2752 = vmatprep.subr.bf16.mxu1 %v2660_v18  ;;  %v2849_v18 = vrot.slane %v2832_v52, %v2848_v13 }
 0x4cd   : > { %2753 = vmatpush1.bf16.msra.mxu1 %v2659_v20 }
 0x4ce   : > { %2754 = vmatprep.subr.bf16.mxu1 %v2654_v9 }
 0x4d1   : > { %2755 = vmatpush1.bf16.msra.mxu1 %v2653_v1 }
 0x4d2   : > { %2756 = vmatprep.subr.bf16.mxu1 %v2648_v56 }
 0x4d5   : > { %2757 = vmatpush1.bf16.msra.mxu1 %v2647_v23 }
 0x4d6   : > { %2758 = vmatprep.subr.bf16.mxu1 %v2642_v24 }
 0x4d9   : > { %2759 = vmatpush1.bf16.msra.mxu1 %v2641_v26  ;;  %v2870_v26 = vld [vmem:[#allocation2] sm:$0xff] }
 0x4da   : > { %2760 = vmatprep.subr.bf16.mxu1 %v2636_v27 }
 0x4dd   : > { %2761 = vmatpush1.bf16.msra.mxu1 %v2635_v29 }
 0x4de   : > { %2762 = vmatprep.subr.bf16.mxu1 %v2630_v15 }
 0x4e1   : > { %2763 = vmatpush1.bf16.msra.mxu1 %v2629_v32 }
 0x4e2   : > { %2764 = vmatprep.subr.bf16.mxu1 %v2624_v49 }
 0x4e5   : > { %2765 = vmatpush1.bf16.msra.mxu1 %v2623_v35 }
 0x4e6   : > { %2774 = vmatprep.subr.bf16.mxu1 %v2690_v36 }
 0x4e9   : > { %2775 = vmatpush2.bf16.msra.mxu1 %v2689_v16 }
 0x4ea   : > { %2776 = vmatprep.subr.bf16.mxu1 %v2684_v40 }
 0x4ed   : > { %2777 = vmatpush2.bf16.msra.mxu1 %v2683_v10 }
 0x4ee   : > { %2778 = vmatprep.subr.bf16.mxu1 %v2678_v11 }
 0x4f1   : > { %2779 = vmatpush2.bf16.msra.mxu1 %v2677_v45 }
 0x4f2   : > { %2780 = vmatprep.subr.bf16.mxu1 %v2672_v31 }
 0x4f5   : > { %2781 = vmatpush2.bf16.msra.mxu1 %v2671_v46 }
 0x4f8   : > { %2783 = vmatmul.mubr.bf16.vlgmr.msra.gmra.mxu1 %v2703_v41  ;;  %v2845_v41 = vrot.slane %v2832_v52, %v2844_v12 }
 0x588   : > { %v2743_v57 = vpop.f32.mrf.mxu1  ;;  %v2825_v58 = vpop.f32.mrf.mxu0 }
 0x589   : > { %v2868_v60 = vmul.f32 %v2853_v53, %v2825_v58  ;;  %v2864_v20 = vmul.f32 %v2837_v14, %v2743_v57 }
 0x58a   : > { %v2745_v59 = vpop.f32.mrf.mxu1  ;;  %v2827_v50 = vpop.f32.mrf.mxu0 }
 0x58b   : > { %v2869_v62 = vmul.f32 %v2857_v55, %v2827_v50  ;;  %v2865_v39 = vmul.f32 %v2841_v8, %v2745_v59 }
 0x58c   : > { %v2747_v63 = vpop.f32.mrf.mxu1  ;;  %v2829_v0 = vpop.f32.mrf.mxu0 }
 0x58d   : > { %v2895_v2 = vcombine.low %v2868_v60, %v2869_v62  ;;  %v2878_v21 = vcombine.low %v2864_v20, %v2865_v39 }
 0x58e   : > { %v2748_v4 = vpop.f32.mrf.mxu1  ;;  %v2830_v5 = vpop.f32.mrf.mxu0 }
 0x58f   : > { %v2902_v6 = vrot.slane %v2895_v2, %v2885_v61  ;;  %v2886_v25 = vrot.slane %v2878_v21, %v2885_v61 }
 0x591   : > { %v2906_v7 = vadd.f32 %v2902_v6, %v2871_v3 }
 0x593   : > { %2908 = vst [vmem:[#allocation2 + $0x8] sm:$0xf] %v2906_v7 }
 0x5b8   : > { %v2784_v19 = vpop.f32.mrf.mxu1 }
 0x5b9   : > { %v2866_v1 = vmul.f32 %v2845_v41, %v2784_v19 }
 0x5ba   : > { %v2786_v9 = vpop.f32.mrf.mxu1 }
 0x5bb   : > { %v2867_v56 = vmul.f32 %v2849_v18, %v2786_v9 }
 0x5bc   : > { %v2788_v17 = vpop.f32.mrf.mxu1 }
 0x5bd   : > { %v2879_v23 = vcombine.low %v2866_v1, %v2867_v56 }
 0x5be   : > { %v2789_v24 = vpop.f32.mrf.mxu1 }
 0x5bf   : > { %v2893_v43 = vrot.slane %v2879_v23, %v2885_v61 }
 0x5c1   : > { %v2894_v27 = vcombine.low %v2886_v25, %v2893_v43 }
 0x5c3   : > { %v2905_v28 = vadd.f32 %v2894_v27, %v2870_v26 }
 0x5c5   : > { %2907 = vst [vmem:[#allocation2] sm:$0xff] %v2905_v28 }
 0x5c6 PF: > { %s7824_s26 = sld [smem:[#allocation8_spill]] }
 0x5cc   : > { %p5883_p9 = scmp.ne.s32.totalorder %s7824_s26, 4 }
 0x5cd   : > { %s7825_s28 = sld [smem:[#allocation22_spill]] (!%p5883_p9) }
 0x5ce   : > { %2912 = sbr.rel (%p5883_p9) target bundleno = 1508 (0x5e4), region = 132 }
 0x5d3   : > { %v2917_v38 = vlaneseq  ;;  %v6184_v22 = vmov 1983009808   ;;  %v6185_v15 = vmov 0.0   ;;  %v2915_v32 = vld [vmem:[%s7825_s28] sm:$0x3f] }
 0x5d4   : > { %v2944_v29 = vunpack.c.l.s4 %v6184_v22  ;;  %2972 = vst [vmem:[#allocation3] sm:$0xff] %v6185_v15  ;;  %v2914_v53 = vld [vmem:[#allocation2 + $0x8] sm:$0xf]  ;;  %v2913_v54 = vld [vmem:[#allocation2] sm:$0xff] }
 0x5d5   : > { %v2918_v30 = vshrl.u32 %v2917_v38, 7 }
 0x5d6   : > { %v2945_v49 = vunpack.c.0.s8 %v2944_v29 }
 0x5d7   : > { %v2919_v33 = vsub.s32 0, %v2918_v30  ;;  %v2923_v35 = vsub.s32 1, %v2918_v30  ;;  %v2927_v36 = vsub.s32 2, %v2918_v30  ;;  %v2931_v34 = vsub.s32 3, %v2918_v30 }
 0x5d8   : > { %v2948_v16 = vsub.s32 %v2945_v49, %v2918_v30  ;;  %v2935_v40 = vsub.s32 4, %v2918_v30  ;;  %v2939_v48 = vsub.s32 5, %v2918_v30 }
 0x5d9   : > { %v2920_v10 = vrot.slane %v2915_v32, %v2919_v33  ;;  %v2924_v11 = vrot.slane %v2915_v32, %v2923_v35  ;;  %v2928_v42 = vrot.slane %v2915_v32, %v2927_v36  ;;  %v2932_v45 = vrot.slane %v2915_v32, %v2931_v34 }
 0x5da   : > { %v2936_v31 = vrot.slane %v2915_v32, %v2935_v40  ;;  %v2940_v46 = vrot.slane %v2915_v32, %v2939_v48 }
 0x5db   : > { %v2941_v37 = vcombine.low %v2920_v10, %v2924_v11  ;;  %v2942_v47 = vcombine.low %v2928_v42, %v2932_v45 }
 0x5dc   : > { %v2958_v51 = vcombine.low %v2936_v31, %v2940_v46 }
 0x5dd   : > { %v2949_v44 = vrot.slane %v2941_v37, %v2948_v16  ;;  %v2956_v52 = vrot.slane %v2942_v47, %v2948_v16 }
 0x5de   : > { %v2965_v55 = vrot.slane %v2958_v51, %v2948_v16 }
 0x5df   : > { %v2957_v57 = vcombine.low %v2949_v44, %v2956_v52 }
 0x5e0   : > { %v2969_v58 = vadd.f32 %v2965_v55, %v2914_v53 }
 0x5e1   : > { %v2968_v59 = vadd.f32 %v2957_v57, %v2913_v54 }
 0x5e2   : > { %2971 = vst [vmem:[#allocation2 + $0x8] sm:$0xf] %v2969_v58 }
 0x5e3   : > { %2970 = vst [vmem:[#allocation2] sm:$0xff] %v2968_v59 }
 0x5e4 PF: > { %s7826_s20 = sld [smem:[#allocation8_spill]] }
 0x5ea   : > { %p2974_p10 = scmp.lt.s32.totalorder %s7826_s20, 7 }
 0x5ec   : > { %p2975_p11 = pnand %p5873_p8, %p2974_p10 }
 0x5ed   : > { %s7827_s30 = sld [smem:[#allocation23_spill]] (!%p2975_p11)  ;;  %s7829_s0 = scalar_lea.vmem (!%p2975_p11), %s7753_s17, %s6388_s9 }
 0x5ee   : > { %2978 = sbr.rel (%p2975_p11) target bundleno = 2263 (0x8d7), region = 136  ;;  %s7828_s6 = sld [smem:[#allocation24_spill]] (!%p2975_p11) }
 0x5f3   : > { %v6090_v50 = vld [vmem:[%s7827_s30 + $0x78] sm:$0xff]   ;;  %v6094_v63 = vld [vmem:[%s7827_s30 + $0x70] sm:$0xff]   ;;  %v6098_v4 = vld [vmem:[%s7827_s30 + $0x68] sm:$0xff]   ;;  %v2987_v26 = vlaneseq  ;;  %v6186_v29 = vmov 1983009808   ;;  %vm3531_vm3 = vcmask 17408  }
 0x5f4   : > { %v6091_v60 = vld [vmem:[%s7827_s30 + $0xf8] sm:$0xff]   ;;  %5977 = vmatprep.subr.bf16.mxu0 %v6090_v50  ;;  %v6095_v0 = vld [vmem:[%s7827_s30 + $0xf0] sm:$0xff]   ;;  %v6099_v5 = vld [vmem:[%s7827_s30 + $0xe8] sm:$0xff]   ;;  %v2985_v15 = vunpack.c.l.s4 %v6186_v29 }
 0x5f5   : > { %v6092_v61 = vld [vmem:[%s7827_s30 + $0x38] sm:$0xff]   ;;  %5999 = vmatprep.subr.bf16.mxu1 %v6091_v60  ;;  %v6096_v2 = vld [vmem:[%s7827_s30 + $0x30] sm:$0xff]   ;;  %v6100_v6 = vld [vmem:[%s7827_s30 + $0x28] sm:$0xff]   ;;  %v6895_v30 = vshrl.u32 %v2987_v26, 7 }
 0x5f6   : > { %v6093_v62 = vld [vmem:[%s7827_s30 + $0xb8] sm:$0xff]   ;;  %5978 = vmatpush3.bf16.msra.mxu0 %v6092_v61  ;;  %v6097_v3 = vld [vmem:[%s7827_s30 + $0xb0] sm:$0xff]   ;;  %v6101_v7 = vld [vmem:[%s7827_s30 + $0xa8] sm:$0xff]   ;;  %v2986_v33 = vunpack.c.0.s8 %v2985_v15 }
 0x5f7   : > { %6000 = vmatpush3.bf16.msra.mxu1 %v6093_v62  ;;  %5979 = vmatprep.subr.bf16.mxu0 %v6094_v63  ;;  %v6102_v8 = vld [vmem:[%s7827_s30 + $0x60] sm:$0xff]   ;;  %v6106_v39 = vld [vmem:[%s7827_s30 + $0x58] sm:$0xff]   ;;  %v6110_v20 = vld [vmem:[%s7827_s30 + $0x50] sm:$0xff]  }
 0x5f8   : > { %6001 = vmatprep.subr.bf16.mxu1 %v6095_v0  ;;  %v6103_v12 = vld [vmem:[%s7827_s30 + $0xe0] sm:$0xff]   ;;  %v6107_v41 = vld [vmem:[%s7827_s30 + $0xd8] sm:$0xff]   ;;  %v6111_v9 = vld [vmem:[%s7827_s30 + $0xd0] sm:$0xff]   ;;  %v6899_v36 = vsub.s32 %v2986_v33, %v6895_v30 }
 0x5f9   : > { %v6104_v13 = vld [vmem:[%s7827_s30 + $0x20] sm:$0xff]   ;;  %v6108_v18 = vld [vmem:[%s7827_s30 + $0x18] sm:$0xff]   ;;  %v6112_v21 = vld [vmem:[%s7827_s30 + $0x10] sm:$0xff]  }
 0x5fa   : > { %5980 = vmatpush3.bf16.msra.mxu0 %v6096_v2  ;;  %v6105_v14 = vld [vmem:[%s7827_s30 + $0xa0] sm:$0xff]   ;;  %v6109_v19 = vld [vmem:[%s7827_s30 + $0x98] sm:$0xff]   ;;  %v6113_v1 = vld [vmem:[%s7827_s30 + $0x90] sm:$0xff]  }
 0x5fb   : > { %6002 = vmatpush3.bf16.msra.mxu1 %v6097_v3  ;;  %5981 = vmatprep.subr.bf16.mxu0 %v6098_v4  ;;  %v6114_v56 = vld [vmem:[%s7827_s30 + $0x48] sm:$0xff]   ;;  %v6118_v25 = vld [vmem:[%s7827_s30 + $0x40] sm:$0xff]   ;;  %v6123_v22 = vld [vmem:[%s7827_s30 + $0x178] sm:$0xff]  }
 0x5fc   : > { %6003 = vmatprep.subr.bf16.mxu1 %v6099_v5  ;;  %v6115_v17 = vld [vmem:[%s7827_s30 + $0xc8] sm:$0xff]   ;;  %v6119_v43 = vld [vmem:[%s7827_s30 + $0xc0] sm:$0xff]   ;;  %v6124_v46 = vld [vmem:[%s7827_s30 + $0x138] sm:$0xff]  }
 0x5fd   : > { %v6116_v23 = vld [vmem:[%s7827_s30 + $0x8] sm:$0xff]   ;;  %v6120_v27 = vld [vmem:[%s7827_s30] sm:$0xff]   ;;  %v6125_v47 = vld [vmem:[%s7827_s30 + $0x170] sm:$0xff]  }
 0x5fe   : > { %5982 = vmatpush3.bf16.msra.mxu0 %v6100_v6  ;;  %v6117_v24 = vld [vmem:[%s7827_s30 + $0x88] sm:$0xff]   ;;  %v6121_v28 = vld [vmem:[%s7827_s30 + $0x80] sm:$0xff]   ;;  %v6126_v52 = vld [vmem:[%s7827_s30 + $0x130] sm:$0xff]  }
 0x5ff   : > { %6004 = vmatpush3.bf16.msra.mxu1 %v6101_v7  ;;  %5983 = vmatprep.subr.bf16.mxu0 %v6102_v8  ;;  %v2979_v38 = vld [vmem:[#allocation2] sm:$0xff]  ;;  %v3565_v32 = vld [vmem:[%s6401_s1 + $0x68] sm:$0xff]  ;;  %v6131_v4 = vld [vmem:[%s7827_s30 + $0x158] sm:$0xff]  }
 0x600   : > { %6005 = vmatprep.subr.bf16.mxu1 %v6103_v12  ;;  %v3677_v49 = vunpack.c.h.s8.bf16 %v3565_v32  ;;  %v2983_v35 = vcombine.high %v2979_v38, %v2979_v38  ;;  %v2990_v34 = vrot.slane %v2979_v38, %v6899_v36  ;;  %v3564_v40 = vld [vmem:[%s6401_s1 + $0x60] sm:$0xff]  ;;  %v3673_v51 = vunpack.c.l.s8.bf16 %v3565_v32  ;;  %v3561_v44 = vld [vmem:[%s6401_s1 + $0x48] sm:$0xff]  ;;  %v6132_v7 = vld [vmem:[%s7827_s30 + $0x118] sm:$0xff]  }
 0x601   : > { %v3676_v37 = vunpack.c.h.s8.bf16 %v3564_v40  ;;  %v3672_v53 = vunpack.c.l.s8.bf16 %v3564_v40  ;;  %v6127_v54 = vld [vmem:[%s7827_s30 + $0x168] sm:$0xff]   ;;  %v3669_v55 = vunpack.c.h.s8.bf16 %v3561_v44  ;;  %v3560_v57 = vld [vmem:[%s6401_s1 + $0x40] sm:$0xff]  ;;  %v3665_v61 = vunpack.c.l.s8.bf16 %v3561_v44  ;;  %v6133_v12 = vld [vmem:[%s7827_s30 + $0x150] sm:$0xff]  }
 0x602   : > { %5984 = vmatpush3.bf16.msra.mxu0 %v6104_v13  ;;  %v2997_v16 = vrot.slane %v2983_v35, %v6899_v36  ;;  %v2998_v48 = vcombine.high %v2990_v34, %v2990_v34  ;;  %v6904_v11 = vpack.c.bf16 %v2990_v34, %v2990_v34  ;;  %v6128_v58 = vld [vmem:[%s7827_s30 + $0x128] sm:$0xff]   ;;  %v3668_v59 = vunpack.c.h.s8.bf16 %v3560_v57  ;;  %v6129_v60 = vld [vmem:[%s7827_s30 + $0x160] sm:$0xff]  }
 0x603   : > { %6006 = vmatpush3.bf16.msra.mxu1 %v6105_v14  ;;  %5985 = vmatprep.subr.bf16.mxu0 %v6106_v39  ;;  %v5884_v50 = vld.sshfl [vmem:[#allocation2 + $0x8] sm:$0x33 pattern:$0x76325410]  ;;  %v6130_v2 = vld [vmem:[%s7827_s30 + $0x120] sm:$0xff]   ;;  %v3664_v3 = vunpack.c.l.s8.bf16 %v3560_v57  ;;  %v6134_v39 = vld [vmem:[%s7827_s30 + $0x110] sm:$0xff]  }
 0x604   : > { %6007 = vmatprep.subr.bf16.mxu1 %v6107_v41  ;;  %v2999_v10 = vcombine.high %v2997_v16, %v2997_v16  ;;  %v6906_v42 = vpack.c.bf16 %v2997_v16, %v2997_v16  ;;  %v6908_v45 = vpack.c.bf16 %v2998_v48, %v2998_v48  ;;  %v3007_v62 = vcombine.high %v5884_v50, %v5884_v50  ;;  %v3557_v63 = vld [vmem:[%s6401_s1 + $0x28] sm:$0xff]  ;;  %v3556_v6 = vld [vmem:[%s6401_s1 + $0x20] sm:$0xff] }
 0x605   : > { %v3661_v5 = vunpack.c.h.s8.bf16 %v3557_v63  ;;  %v3660_v8 = vunpack.c.h.s8.bf16 %v3556_v6  ;;  %v3657_v13 = vunpack.c.l.s8.bf16 %v3557_v63  ;;  %v3553_v14 = vld [vmem:[%s6401_s1 + $0x8] sm:$0xff]  ;;  %v3656_v41 = vunpack.c.l.s8.bf16 %v3556_v6  ;;  %v3596_v38 = vld [vmem:[%s6401_s1 + $0x160] sm:$0xff] }
 0x606   : > { %5986 = vmatpush3.bf16.msra.mxu0 %v6108_v18  ;;  %v6910_v31 = vpack.c.bf16 %v2999_v10, %v2999_v10  ;;  %3443 = vmatprep.mubr.bf16.mxu0 %v6908_v45  ;;  %v6938_v0 = vpack.c.bf16 %v3007_v62, %v3007_v62  ;;  %v6135_v18 = vld [vmem:[%s7827_s30 + $0x148] sm:$0xff]   ;;  %v3740_v15 = vunpack.c.h.s8.bf16 %v3596_v38  ;;  %v3736_v16 = vunpack.c.l.s8.bf16 %v3596_v38  ;;  %v3576_v10 = vld [vmem:[%s6401_s1 + $0xc0] sm:$0xff] }
 0x607   : > { %6008 = vmatpush3.bf16.msra.mxu1 %v6109_v19  ;;  %5987 = vmatprep.subr.bf16.mxu0 %v6110_v20  ;;  %v3653_v19 = vunpack.c.h.s8.bf16 %v3553_v14  ;;  %v3552_v20 = vld [vmem:[%s6401_s1] sm:$0xff]  ;;  %v3577_v33 = vld [vmem:[%s6401_s1 + $0xc8] sm:$0xff] }
 0x608   : > { %6009 = vmatprep.subr.bf16.mxu1 %v6111_v9  ;;  %3483 = vmatprep.mubr.bf16.mxu1 %v6910_v31  ;;  %v6136_v9 = vld [vmem:[%s7827_s30 + $0x108] sm:$0xff]   ;;  %v3701_v40 = vunpack.c.h.s8.bf16 %v3577_v33 }
 0x609   : > { %v3593_v35 = vld [vmem:[%s6401_s1 + $0x148] sm:$0xff] }
 0x60a   : > { %5988 = vmatpush3.bf16.msra.mxu0 %v6112_v21  ;;  %v3652_v21 = vunpack.c.h.s8.bf16 %v3552_v20  ;;  %v3733_v48 = vunpack.c.h.s8.bf16 %v3593_v35  ;;  %v3729_v44 = vunpack.c.l.s8.bf16 %v3593_v35 }
 0x60b   : > { %6010 = vmatpush3.bf16.msra.mxu1 %v6113_v1  ;;  %5989 = vmatprep.subr.bf16.mxu0 %v6114_v56  ;;  %v6137_v1 = vld [vmem:[%s7827_s30 + $0x140] sm:$0xff]   ;;  %v3649_v56 = vunpack.c.l.s8.bf16 %v3553_v14 }
 0x60c   : > { %6011 = vmatprep.subr.bf16.mxu1 %v6115_v17  ;;  %v3581_v17 = vld [vmem:[%s6401_s1 + $0xe8] sm:$0xff] }
 0x60d   : > { %v3705_v32 = vunpack.c.l.s8.bf16 %v3581_v17 }
 0x60e   : > { %5990 = vmatpush3.bf16.msra.mxu0 %v6116_v23  ;;  %v3597_v23 = vld [vmem:[%s6401_s1 + $0x168] sm:$0xff] }
 0x60f   : > { %6012 = vmatpush3.bf16.msra.mxu1 %v6117_v24  ;;  %5991 = vmatprep.subr.bf16.mxu0 %v6118_v25  ;;  %v6138_v24 = vld [vmem:[%s7827_s30 + $0x100] sm:$0xff]   ;;  %v3648_v25 = vunpack.c.l.s8.bf16 %v3552_v20 }
 0x610   : > { %6013 = vmatprep.subr.bf16.mxu1 %v6119_v43  ;;  %v3709_v43 = vunpack.c.h.s8.bf16 %v3581_v17  ;;  %v3628_v17 = vld [vmem:[%s6401_s1 + $0x260] sm:$0xff] }
 0x612   : > { %5992 = vmatpush3.bf16.msra.mxu0 %v6120_v27  ;;  %v3741_v27 = vunpack.c.h.s8.bf16 %v3597_v23 }
 0x613   : > { %6014 = vmatpush3.bf16.msra.mxu1 %v6121_v28  ;;  %6021 = vmatprep.subr.bf16.mxu0 %v6123_v22  ;;  %v3580_v28 = vld [vmem:[%s6401_s1 + $0xe0] sm:$0xff]  ;;  %v6975_v22 = vpack.c.bf16 %v5884_v50, %v5884_v50 }
 0x614   : > { %3840 = vmatprep.subr.bf16.mxu1 %v3677_v49  ;;  %v3708_v29 = vunpack.c.h.s8.bf16 %v3580_v28  ;;  %v3737_v49 = vunpack.c.l.s8.bf16 %v3597_v23  ;;  %v3704_v34 = vunpack.c.l.s8.bf16 %v3580_v28  ;;  %v3588_v50 = vld [vmem:[%s6401_s1 + $0x120] sm:$0xff]  ;;  %v3625_v28 = vld [vmem:[%s6401_s1 + $0x248] sm:$0xff] }
 0x615   : > { %3444 = vmatmul.mubr.bf16.vlgmr.msra.gmra.mxu0 %v6904_v11 }
 0x616   : > { %3484 = vmatmul.mubr.bf16.vlgmr.msra.gmra.mxu1 %v6906_v42  ;;  %6022 = vmatpush3.bf16.msra.mxu0 %v6124_v46  ;;  %v3592_v46 = vld [vmem:[%s6401_s1 + $0x140] sm:$0xff] }
 0x617   : > { %3841 = vmatpush1.bf16.msra.mxu1 %v3676_v37  ;;  %6023 = vmatprep.subr.bf16.mxu0 %v6125_v47  ;;  %v3700_v37 = vunpack.c.h.s8.bf16 %v3576_v10  ;;  %v3732_v47 = vunpack.c.h.s8.bf16 %v3592_v46 }
 0x618   : > { %3842 = vmatprep.subr.bf16.mxu1 %v3673_v51  ;;  %3872 = vmatprep.mubr.bf16.mxu1 %v6908_v45  ;;  %v3697_v51 = vunpack.c.l.s8.bf16 %v3577_v33  ;;  %v3624_v33 = vld [vmem:[%s6401_s1 + $0x240] sm:$0xff] }
 0x619   : > { %3523 = vmatprep.mubr.bf16.mxu0 %v6938_v0 }
 0x61a   : > { %6024 = vmatpush3.bf16.msra.mxu0 %v6126_v52  ;;  %v3573_v52 = vld [vmem:[%s6401_s1 + $0xa8] sm:$0xff] }
 0x61b   : > { %3843 = vmatpush1.bf16.msra.mxu1 %v3672_v53  ;;  %6025 = vmatprep.subr.bf16.mxu0 %v6127_v54  ;;  %v3589_v53 = vld [vmem:[%s6401_s1 + $0x128] sm:$0xff]  ;;  %v3696_v54 = vunpack.c.l.s8.bf16 %v3576_v10  ;;  %v3693_v57 = vunpack.c.h.s8.bf16 %v3573_v52  ;;  %v3689_v62 = vunpack.c.l.s8.bf16 %v3573_v52  ;;  %v3620_v52 = vld [vmem:[%s6401_s1 + $0x220] sm:$0xff] }
 0x61c   : > { %3844 = vmatprep.subr.bf16.mxu1 %v3669_v55  ;;  %v3728_v55 = vunpack.c.l.s8.bf16 %v3592_v46  ;;  %v3721_v63 = vunpack.c.l.s8.bf16 %v3589_v53  ;;  %v3621_v10 = vld [vmem:[%s6401_s1 + $0x228] sm:$0xff] }
 0x61e   : > { %6026 = vmatpush3.bf16.msra.mxu0 %v6128_v58  ;;  %v3725_v58 = vunpack.c.h.s8.bf16 %v3589_v53 }
 0x61f   : > { %3845 = vmatpush1.bf16.msra.mxu1 %v3668_v59  ;;  %6027 = vmatprep.subr.bf16.mxu0 %v6129_v60  ;;  %v3572_v59 = vld [vmem:[%s6401_s1 + $0xa0] sm:$0xff] }
 0x620   : > { %3846 = vmatprep.subr.bf16.mxu1 %v3665_v61  ;;  %v3692_v60 = vunpack.c.h.s8.bf16 %v3572_v59  ;;  %v3724_v61 = vunpack.c.h.s8.bf16 %v3588_v50 }
 0x622   : > { %6028 = vmatpush3.bf16.msra.mxu0 %v6130_v2  ;;  %v3569_v2 = vld [vmem:[%s6401_s1 + $0x88] sm:$0xff] }
 0x623   : > { %3847 = vmatpush1.bf16.msra.mxu1 %v3664_v3  ;;  %6029 = vmatprep.subr.bf16.mxu0 %v6131_v4  ;;  %v3585_v3 = vld [vmem:[%s6401_s1 + $0x108] sm:$0xff]  ;;  %v3688_v4 = vunpack.c.l.s8.bf16 %v3572_v59  ;;  %v3685_v6 = vunpack.c.h.s8.bf16 %v3569_v2 }
 0x624   : > { %3848 = vmatprep.subr.bf16.mxu1 %v3661_v5  ;;  %v3720_v5 = vunpack.c.l.s8.bf16 %v3588_v50  ;;  %v3617_v59 = vld [vmem:[%s6401_s1 + $0x208] sm:$0xff] }
 0x626   : > { %6030 = vmatpush3.bf16.msra.mxu0 %v6132_v7  ;;  %v3717_v7 = vunpack.c.h.s8.bf16 %v3585_v3 }
 0x627   : > { %3849 = vmatpush1.bf16.msra.mxu1 %v3660_v8  ;;  %6031 = vmatprep.subr.bf16.mxu0 %v6133_v12  ;;  %v3568_v8 = vld [vmem:[%s6401_s1 + $0x80] sm:$0xff] }
 0x628   : > { %3850 = vmatprep.subr.bf16.mxu1 %v3657_v13  ;;  %v3584_v12 = vld [vmem:[%s6401_s1 + $0x100] sm:$0xff]  ;;  %v3684_v13 = vunpack.c.h.s8.bf16 %v3568_v8  ;;  %v3680_v20 = vunpack.c.l.s8.bf16 %v3568_v8  ;;  %v3567_v8 = vld [vmem:[%s6401_s1 + $0x78] sm:$0xff] }
 0x629   : > { %v3716_v14 = vunpack.c.h.s8.bf16 %v3584_v12 }
 0x62a   : > { %6032 = vmatpush3.bf16.msra.mxu0 %v6134_v39  ;;  %v3681_v39 = vunpack.c.l.s8.bf16 %v3569_v2  ;;  %v3616_v2 = vld [vmem:[%s6401_s1 + $0x200] sm:$0xff] }
 0x62b   : > { %3851 = vmatpush1.bf16.msra.mxu1 %v3656_v41  ;;  %6033 = vmatprep.subr.bf16.mxu0 %v6135_v18  ;;  %v3713_v41 = vunpack.c.l.s8.bf16 %v3585_v3  ;;  %v3613_v18 = vld [vmem:[%s6401_s1 + $0x1e8] sm:$0xff] }
 0x62c   : > { %3852 = vmatprep.subr.bf16.mxu1 %v3653_v19  ;;  %v3629_v19 = vld [vmem:[%s6401_s1 + $0x268] sm:$0xff] }
 0x62e   : > { %6034 = vmatpush3.bf16.msra.mxu0 %v6136_v9  ;;  %v3712_v9 = vunpack.c.l.s8.bf16 %v3584_v12 }
 0x62f   : > { %3853 = vmatpush1.bf16.msra.mxu1 %v3652_v21  ;;  %6035 = vmatprep.subr.bf16.mxu0 %v6137_v1  ;;  %v3773_v21 = vunpack.c.h.s8.bf16 %v3613_v18  ;;  %v3805_v1 = vunpack.c.h.s8.bf16 %v3629_v19 }
 0x630   : > { %3854 = vmatprep.subr.bf16.mxu1 %v3649_v56  ;;  %v3612_v56 = vld [vmem:[%s6401_s1 + $0x1e0] sm:$0xff] }
 0x631   : > { %v3772_v23 = vunpack.c.h.s8.bf16 %v3612_v56  ;;  %v3768_v38 = vunpack.c.l.s8.bf16 %v3612_v56  ;;  %v3563_v56 = vld [vmem:[%s6401_s1 + $0x58] sm:$0xff] }
 0x632   : > { %6036 = vmatpush3.bf16.msra.mxu0 %v6138_v24  ;;  %v3804_v24 = vunpack.c.h.s8.bf16 %v3628_v17 }
 0x633   : > { %3855 = vmatpush1.bf16.msra.mxu1 %v3648_v25  ;;  %3881 = vmatprep.subr.bf16.mxu0 %v3741_v27  ;;  %v3769_v25 = vunpack.c.l.s8.bf16 %v3613_v18  ;;  %v3609_v27 = vld [vmem:[%s6401_s1 + $0x1c8] sm:$0xff]  ;;  %v3566_v18 = vld [vmem:[%s6401_s1 + $0x70] sm:$0xff] }
 0x634   : > { %3856 = vmatprep.subr.bf16.mxu1 %v3709_v43  ;;  %v3801_v43 = vunpack.c.l.s8.bf16 %v3629_v19 }
 0x635   : > { %3524 = vmatmul.mubr.bf16.vlgmr.msra.gmra.mxu0 %v6975_v22 }
 0x636   : > { %3882 = vmatpush1.bf16.msra.mxu0 %v3740_v15  ;;  %3913 = vmatprep.mubr.bf16.mxu0 %v6910_v31  ;;  %v3765_v15 = vunpack.c.h.s8.bf16 %v3609_v27 }
 0x637   : > { %3857 = vmatpush2.bf16.msra.mxu1 %v3708_v29  ;;  %3883 = vmatprep.subr.bf16.mxu0 %v3737_v49  ;;  %v3800_v29 = vunpack.c.l.s8.bf16 %v3628_v17  ;;  %v3608_v49 = vld [vmem:[%s6401_s1 + $0x1c0] sm:$0xff] }
 0x638   : > { %3858 = vmatprep.subr.bf16.mxu1 %v3705_v32  ;;  %v3797_v32 = vunpack.c.h.s8.bf16 %v3625_v28  ;;  %v3764_v35 = vunpack.c.h.s8.bf16 %v3608_v49  ;;  %v3760_v46 = vunpack.c.l.s8.bf16 %v3608_v49  ;;  %v3559_v49 = vld [vmem:[%s6401_s1 + $0x38] sm:$0xff] }
 0x63a   : > { %3884 = vmatpush1.bf16.msra.mxu0 %v3736_v16  ;;  %v3761_v16 = vunpack.c.l.s8.bf16 %v3609_v27  ;;  %v3562_v27 = vld [vmem:[%s6401_s1 + $0x50] sm:$0xff] }
 0x63b   : > { %3859 = vmatpush2.bf16.msra.mxu1 %v3704_v34  ;;  %3885 = vmatprep.subr.bf16.mxu0 %v3733_v48  ;;  %v3796_v34 = vunpack.c.h.s8.bf16 %v3624_v33  ;;  %v3605_v48 = vld [vmem:[%s6401_s1 + $0x1a8] sm:$0xff] }
 0x63c   : > { %3860 = vmatprep.subr.bf16.mxu1 %v3701_v40  ;;  %v3793_v40 = vunpack.c.l.s8.bf16 %v3625_v28 }
 0x63e   : > { %3886 = vmatpush1.bf16.msra.mxu0 %v3732_v47  ;;  %v3757_v47 = vunpack.c.h.s8.bf16 %v3605_v48 }
 0x63f   : > { %3861 = vmatpush2.bf16.msra.mxu1 %v3700_v37  ;;  %3887 = vmatprep.subr.bf16.mxu0 %v3729_v44  ;;  %v3792_v37 = vunpack.c.l.s8.bf16 %v3624_v33  ;;  %v3604_v44 = vld [vmem:[%s6401_s1 + $0x1a0] sm:$0xff] }
 0x640   : > { %3862 = vmatprep.subr.bf16.mxu1 %v3697_v51  ;;  %v3789_v51 = vunpack.c.h.s8.bf16 %v3621_v10  ;;  %v3756_v53 = vunpack.c.h.s8.bf16 %v3604_v44  ;;  %v3752_v50 = vunpack.c.l.s8.bf16 %v3604_v44 }
 0x642   : > { %3888 = vmatpush1.bf16.msra.mxu0 %v3728_v55  ;;  %v3753_v55 = vunpack.c.l.s8.bf16 %v3605_v48 }
 0x643   : > { %3863 = vmatpush2.bf16.msra.mxu1 %v3696_v54  ;;  %3889 = vmatprep.subr.bf16.mxu0 %v3725_v58  ;;  %v3788_v54 = vunpack.c.h.s8.bf16 %v3620_v52  ;;  %v3601_v58 = vld [vmem:[%s6401_s1 + $0x188] sm:$0xff] }
 0x644   : > { %3864 = vmatprep.subr.bf16.mxu1 %v3693_v57  ;;  %v3785_v57 = vunpack.c.l.s8.bf16 %v3621_v10 }
 0x646   : > { %3890 = vmatpush1.bf16.msra.mxu0 %v3724_v61  ;;  %v3749_v61 = vunpack.c.h.s8.bf16 %v3601_v58 }
 0x647   : > { %3865 = vmatpush2.bf16.msra.mxu1 %v3692_v60  ;;  %3891 = vmatprep.subr.bf16.mxu0 %v3721_v63  ;;  %v3784_v60 = vunpack.c.l.s8.bf16 %v3620_v52  ;;  %v3600_v63 = vld [vmem:[%s6401_s1 + $0x180] sm:$0xff] }
 0x648   : > { %3866 = vmatprep.subr.bf16.mxu1 %v3689_v62  ;;  %v3781_v62 = vunpack.c.h.s8.bf16 %v3617_v59  ;;  %v3748_v3 = vunpack.c.h.s8.bf16 %v3600_v63  ;;  %v3744_v12 = vunpack.c.l.s8.bf16 %v3600_v63 }
 0x64a   : > { %3892 = vmatpush1.bf16.msra.mxu0 %v3720_v5  ;;  %v3745_v5 = vunpack.c.l.s8.bf16 %v3601_v58 }
 0x64b   : > { %3867 = vmatpush2.bf16.msra.mxu1 %v3688_v4  ;;  %3893 = vmatprep.subr.bf16.mxu0 %v3717_v7  ;;  %v3780_v4 = vunpack.c.h.s8.bf16 %v3616_v2  ;;  %v3645_v7 = vld [vmem:[%s6401_s1 + $0x2e8] sm:$0xff] }
 0x64c   : > { %3868 = vmatprep.subr.bf16.mxu1 %v3685_v6  ;;  %v3777_v6 = vunpack.c.l.s8.bf16 %v3617_v59 }
 0x64e   : > { %3894 = vmatpush1.bf16.msra.mxu0 %v3716_v14  ;;  %v3837_v14 = vunpack.c.h.s8.bf16 %v3645_v7 }
 0x64f   : > { %3869 = vmatpush2.bf16.msra.mxu1 %v3684_v13  ;;  %3895 = vmatprep.subr.bf16.mxu0 %v3713_v41  ;;  %v3776_v13 = vunpack.c.l.s8.bf16 %v3616_v2  ;;  %v3644_v41 = vld [vmem:[%s6401_s1 + $0x2e0] sm:$0xff] }
 0x650   : > { %3870 = vmatprep.subr.bf16.mxu1 %v3681_v39  ;;  %v3679_v39 = vunpack.c.h.s8.bf16 %v3567_v8  ;;  %v3836_v19 = vunpack.c.h.s8.bf16 %v3644_v41  ;;  %v3832_v17 = vunpack.c.l.s8.bf16 %v3644_v41 }
 0x652   : > { %3896 = vmatpush1.bf16.msra.mxu0 %v3712_v9  ;;  %v3833_v9 = vunpack.c.l.s8.bf16 %v3645_v7 }
 0x653   : > { %3871 = vmatpush2.bf16.msra.mxu1 %v3680_v20  ;;  %3897 = vmatprep.subr.bf16.mxu0 %v3773_v21  ;;  %v3678_v20 = vunpack.c.h.s8.bf16 %v3566_v18  ;;  %v3675_v21 = vunpack.c.l.s8.bf16 %v3567_v8 }
 0x654   : > { %3922 = vmatprep.subr.bf16.mxu1 %v3805_v1  ;;  %v3641_v1 = vld [vmem:[%s6401_s1 + $0x2c8] sm:$0xff] }
 0x656   : > { %3873 = vmatmul.mubr.bf16.vlgmr.msra.gmra.mxu1 %v6904_v11  ;;  %3898 = vmatpush2.bf16.msra.mxu0 %v3772_v23  ;;  %v3674_v23 = vunpack.c.l.s8.bf16 %v3566_v18 }
 0x657   : > { %3923 = vmatpush1.bf16.msra.mxu1 %v3804_v24  ;;  %3899 = vmatprep.subr.bf16.mxu0 %v3769_v25  ;;  %v3829_v24 = vunpack.c.h.s8.bf16 %v3641_v1  ;;  %v3671_v25 = vunpack.c.h.s8.bf16 %v3563_v56 }
 0x658   : > { %3924 = vmatprep.subr.bf16.mxu1 %v3801_v43  ;;  %3954 = vmatprep.mubr.bf16.mxu1 %v6938_v0  ;;  %v3640_v43 = vld [vmem:[%s6401_s1 + $0x2c0] sm:$0xff] }
 0x659   : > { %v3828_v28 = vunpack.c.h.s8.bf16 %v3640_v43  ;;  %v3824_v33 = vunpack.c.l.s8.bf16 %v3640_v43 }
 0x65a   : > { %3900 = vmatpush2.bf16.msra.mxu0 %v3768_v38  ;;  %v3670_v38 = vunpack.c.h.s8.bf16 %v3562_v27 }
 0x65b   : > { %3925 = vmatpush1.bf16.msra.mxu1 %v3800_v29  ;;  %3901 = vmatprep.subr.bf16.mxu0 %v3765_v15  ;;  %v3825_v29 = vunpack.c.l.s8.bf16 %v3641_v1  ;;  %v3667_v15 = vunpack.c.l.s8.bf16 %v3563_v56 }
 0x65c   : > { %3926 = vmatprep.subr.bf16.mxu1 %v3797_v32  ;;  %v3637_v32 = vld [vmem:[%s6401_s1 + $0x2a8] sm:$0xff] }
 0x65e   : > { %3902 = vmatpush2.bf16.msra.mxu0 %v3764_v35  ;;  %v3666_v35 = vunpack.c.l.s8.bf16 %v3562_v27 }
 0x65f   : > { %3927 = vmatpush1.bf16.msra.mxu1 %v3796_v34  ;;  %3903 = vmatprep.subr.bf16.mxu0 %v3761_v16  ;;  %v3663_v34 = vunpack.c.h.s8.bf16 %v3559_v49  ;;  %v3636_v16 = vld [vmem:[%s6401_s1 + $0x2a0] sm:$0xff] }
 0x660   : > { %3928 = vmatprep.subr.bf16.mxu1 %v3793_v40  ;;  %v3558_v40 = vld [vmem:[%s6401_s1 + $0x30] sm:$0xff]  ;;  %v3820_v48 = vunpack.c.h.s8.bf16 %v3636_v16  ;;  %v3816_v44 = vunpack.c.l.s8.bf16 %v3636_v16 }
 0x661   : > { %v3662_v10 = vunpack.c.h.s8.bf16 %v3558_v40  ;;  %v3658_v52 = vunpack.c.l.s8.bf16 %v3558_v40 }
 0x662   : > { %3904 = vmatpush2.bf16.msra.mxu0 %v3760_v46  ;;  %v3817_v46 = vunpack.c.l.s8.bf16 %v3637_v32 }
 0x663   : > { %3929 = vmatpush1.bf16.msra.mxu1 %v3792_v37  ;;  %3905 = vmatprep.subr.bf16.mxu0 %v3757_v47  ;;  %v3659_v37 = vunpack.c.l.s8.bf16 %v3559_v49  ;;  %v3633_v47 = vld [vmem:[%s6401_s1 + $0x288] sm:$0xff] }
 0x664   : > { %3930 = vmatprep.subr.bf16.mxu1 %v3789_v51  ;;  %v3555_v51 = vld [vmem:[%s6401_s1 + $0x18] sm:$0xff] }
 0x666   : > { %3906 = vmatpush2.bf16.msra.mxu0 %v3756_v53  ;;  %v3813_v53 = vunpack.c.h.s8.bf16 %v3633_v47 }
 0x667   : > { %3931 = vmatpush1.bf16.msra.mxu1 %v3788_v54  ;;  %3907 = vmatprep.subr.bf16.mxu0 %v3753_v55  ;;  %v3655_v54 = vunpack.c.h.s8.bf16 %v3555_v51  ;;  %v3632_v55 = vld [vmem:[%s6401_s1 + $0x280] sm:$0xff] }
 0x668   : > { %3932 = vmatprep.subr.bf16.mxu1 %v3785_v57  ;;  %v3554_v57 = vld [vmem:[%s6401_s1 + $0x10] sm:$0xff]  ;;  %v3812_v58 = vunpack.c.h.s8.bf16 %v3632_v55  ;;  %v3808_v63 = vunpack.c.l.s8.bf16 %v3632_v55 }
 0x669   : > { %v3654_v59 = vunpack.c.h.s8.bf16 %v3554_v57  ;;  %v3650_v2 = vunpack.c.l.s8.bf16 %v3554_v57 }
 0x66a   : > { %3908 = vmatpush2.bf16.msra.mxu0 %v3752_v50  ;;  %v3809_v50 = vunpack.c.l.s8.bf16 %v3633_v47 }
 0x66b   : > { %3933 = vmatpush1.bf16.msra.mxu1 %v3784_v60  ;;  %3909 = vmatprep.subr.bf16.mxu0 %v3749_v61  ;;  %v3651_v60 = vunpack.c.l.s8.bf16 %v3555_v51  ;;  %v3583_v61 = vld [vmem:[%s6401_s1 + $0xf8] sm:$0xff] }
 0x66c   : > { %3934 = vmatprep.subr.bf16.mxu1 %v3781_v62  ;;  %v3599_v62 = vld [vmem:[%s6401_s1 + $0x178] sm:$0xff] }
 0x66e   : > { %3910 = vmatpush2.bf16.msra.mxu0 %v3748_v3  ;;  %v3711_v3 = vunpack.c.h.s8.bf16 %v3583_v61 }
 0x66f   : > { %3935 = vmatpush1.bf16.msra.mxu1 %v3780_v4  ;;  %3911 = vmatprep.subr.bf16.mxu0 %v3745_v5  ;;  %v3743_v4 = vunpack.c.h.s8.bf16 %v3599_v62  ;;  %v3582_v5 = vld [vmem:[%s6401_s1 + $0xf0] sm:$0xff] }
 0x670   : > { %3936 = vmatprep.subr.bf16.mxu1 %v3777_v6  ;;  %v3598_v6 = vld [vmem:[%s6401_s1 + $0x170] sm:$0xff]  ;;  %v3710_v7 = vunpack.c.h.s8.bf16 %v3582_v5  ;;  %v3706_v41 = vunpack.c.l.s8.bf16 %v3582_v5 }
 0x671   : > { %v3742_v8 = vunpack.c.h.s8.bf16 %v3598_v6  ;;  %v3738_v18 = vunpack.c.l.s8.bf16 %v3598_v6 }
 0x672   : > { %3912 = vmatpush2.bf16.msra.mxu0 %v3744_v12  ;;  %v3707_v12 = vunpack.c.l.s8.bf16 %v3583_v61 }
 0x673   : > { %3937 = vmatpush1.bf16.msra.mxu1 %v3776_v13  ;;  %3963 = vmatprep.subr.bf16.mxu0 %v3679_v39  ;;  %v3739_v13 = vunpack.c.l.s8.bf16 %v3599_v62  ;;  %v3595_v39 = vld [vmem:[%s6401_s1 + $0x158] sm:$0xff] }
 0x674   : > { %3938 = vmatprep.subr.bf16.mxu1 %v3837_v14  ;;  %v3579_v14 = vld [vmem:[%s6401_s1 + $0xd8] sm:$0xff] }
 0x675   : > { %3914 = vmatmul.mubr.bf16.vlgmr.msra.gmra.mxu0 %v6906_v42 }
 0x676   : > { %3964 = vmatpush1.bf16.msra.mxu0 %v3678_v20  ;;  %3995 = vmatprep.mubr.bf16.mxu0 %v6908_v45  ;;  %v3821_v45 = vunpack.c.h.s8.bf16 %v3637_v32  ;;  %v3735_v20 = vunpack.c.h.s8.bf16 %v3595_v39 }
 0x677   : > { %3939 = vmatpush2.bf16.msra.mxu1 %v3836_v19  ;;  %3965 = vmatprep.subr.bf16.mxu0 %v3675_v21  ;;  %v3703_v19 = vunpack.c.h.s8.bf16 %v3579_v14  ;;  %v3594_v21 = vld [vmem:[%s6401_s1 + $0x150] sm:$0xff] }
 0x678   : > { %3940 = vmatprep.subr.bf16.mxu1 %v3833_v9  ;;  %v3578_v9 = vld [vmem:[%s6401_s1 + $0xd0] sm:$0xff]  ;;  %v3734_v56 = vunpack.c.h.s8.bf16 %v3594_v21  ;;  %v3730_v27 = vunpack.c.l.s8.bf16 %v3594_v21 }
 0x679   : > { %v3702_v1 = vunpack.c.h.s8.bf16 %v3578_v9  ;;  %v3698_v43 = vunpack.c.l.s8.bf16 %v3578_v9  ;;  %v3606_v21 = vld [vmem:[%s6401_s1 + $0x1b0] sm:$0xff] }
 0x67a   : > { %3966 = vmatpush1.bf16.msra.mxu0 %v3674_v23  ;;  %v3731_v23 = vunpack.c.l.s8.bf16 %v3595_v39 }
 0x67b   : > { %3941 = vmatpush2.bf16.msra.mxu1 %v3832_v17  ;;  %3967 = vmatprep.subr.bf16.mxu0 %v3671_v25  ;;  %v3699_v17 = vunpack.c.l.s8.bf16 %v3579_v14  ;;  %v3591_v25 = vld [vmem:[%s6401_s1 + $0x138] sm:$0xff] }
 0x67c   : > { %3942 = vmatprep.subr.bf16.mxu1 %v3829_v24  ;;  %v3575_v24 = vld [vmem:[%s6401_s1 + $0xb8] sm:$0xff] }
 0x67d   : > { %v3691_v49 = vunpack.c.l.s8.bf16 %v3575_v24 }
 0x67e   : > { %3968 = vmatpush1.bf16.msra.mxu0 %v3670_v38  ;;  %v3574_v38 = vld [vmem:[%s6401_s1 + $0xb0] sm:$0xff] }
 0x67f   : > { %3943 = vmatpush2.bf16.msra.mxu1 %v3828_v28  ;;  %3969 = vmatprep.subr.bf16.mxu0 %v3667_v15  ;;  %v3727_v28 = vunpack.c.h.s8.bf16 %v3591_v25  ;;  %v3694_v15 = vunpack.c.h.s8.bf16 %v3574_v38 }
 0x680   : > { %3944 = vmatprep.subr.bf16.mxu1 %v3825_v29  ;;  %v3590_v29 = vld [vmem:[%s6401_s1 + $0x130] sm:$0xff] }
 0x681   : > { %v3726_v32 = vunpack.c.h.s8.bf16 %v3590_v29  ;;  %v3722_v16 = vunpack.c.l.s8.bf16 %v3590_v29  ;;  %v3602_v29 = vld [vmem:[%s6401_s1 + $0x190] sm:$0xff] }
 0x682   : > { %3970 = vmatpush1.bf16.msra.mxu0 %v3666_v35  ;;  %v3571_v35 = vld [vmem:[%s6401_s1 + $0x98] sm:$0xff] }
 0x683   : > { %3945 = vmatpush2.bf16.msra.mxu1 %v3824_v33  ;;  %3971 = vmatprep.subr.bf16.mxu0 %v3663_v34  ;;  %v3723_v33 = vunpack.c.l.s8.bf16 %v3591_v25  ;;  %v3690_v34 = vunpack.c.l.s8.bf16 %v3574_v38  ;;  %v3687_v40 = vunpack.c.h.s8.bf16 %v3571_v35  ;;  %v3683_v51 = vunpack.c.l.s8.bf16 %v3571_v35  ;;  %v3603_v25 = vld [vmem:[%s6401_s1 + $0x198] sm:$0xff] }
 0x684   : > { %3946 = vmatprep.subr.bf16.mxu1 %v3821_v45  ;;  %v3587_v45 = vld [vmem:[%s6401_s1 + $0x118] sm:$0xff] }
 0x686   : > { %3972 = vmatpush1.bf16.msra.mxu0 %v3662_v10  ;;  %v3570_v10 = vld [vmem:[%s6401_s1 + $0x90] sm:$0xff] }
 0x687   : > { %3947 = vmatpush2.bf16.msra.mxu1 %v3820_v48  ;;  %3973 = vmatprep.subr.bf16.mxu0 %v3659_v37  ;;  %v3719_v48 = vunpack.c.h.s8.bf16 %v3587_v45  ;;  %v3686_v37 = vunpack.c.h.s8.bf16 %v3570_v10 }
 0x688   : > { %3948 = vmatprep.subr.bf16.mxu1 %v3817_v46  ;;  %v3586_v46 = vld [vmem:[%s6401_s1 + $0x110] sm:$0xff] }
 0x689   : > { %v3718_v47 = vunpack.c.h.s8.bf16 %v3586_v46  ;;  %v3714_v55 = vunpack.c.l.s8.bf16 %v3586_v46 }
 0x68a   : > { %3974 = vmatpush1.bf16.msra.mxu0 %v3658_v52  ;;  %v3615_v52 = vld [vmem:[%s6401_s1 + $0x1f8] sm:$0xff] }
 0x68b   : > { %3949 = vmatpush2.bf16.msra.mxu1 %v3816_v44  ;;  %3975 = vmatprep.subr.bf16.mxu0 %v3655_v54  ;;  %v3715_v44 = vunpack.c.l.s8.bf16 %v3587_v45  ;;  %v3682_v54 = vunpack.c.l.s8.bf16 %v3570_v10  ;;  %v3775_v57 = vunpack.c.h.s8.bf16 %v3615_v52  ;;  %v3771_v62 = vunpack.c.l.s8.bf16 %v3615_v52  ;;  %v3647_v45 = vld [vmem:[%s6401_s1 + $0x2f8] sm:$0xff]  ;;  %v3646_v10 = vld [vmem:[%s6401_s1 + $0x2f0] sm:$0xff] }
 0x68c   : > { %3950 = vmatprep.subr.bf16.mxu1 %v3813_v53  ;;  %v3631_v53 = vld [vmem:[%s6401_s1 + $0x278] sm:$0xff] }
 0x68e   : > { %3976 = vmatpush1.bf16.msra.mxu0 %v3654_v59  ;;  %v3614_v59 = vld [vmem:[%s6401_s1 + $0x1f0] sm:$0xff] }
 0x68f   : > { %3951 = vmatpush2.bf16.msra.mxu1 %v3812_v58  ;;  %3977 = vmatprep.subr.bf16.mxu0 %v3651_v60  ;;  %v3807_v58 = vunpack.c.h.s8.bf16 %v3631_v53  ;;  %v3774_v60 = vunpack.c.h.s8.bf16 %v3614_v59 }
 0x690   : > { %3952 = vmatprep.subr.bf16.mxu1 %v3809_v50  ;;  %v3630_v50 = vld [vmem:[%s6401_s1 + $0x270] sm:$0xff] }
 0x691   : > { %v3806_v61 = vunpack.c.h.s8.bf16 %v3630_v50  ;;  %v3802_v5 = vunpack.c.l.s8.bf16 %v3630_v50 }
 0x692   : > { %3978 = vmatpush1.bf16.msra.mxu0 %v3650_v2  ;;  %v3611_v2 = vld [vmem:[%s6401_s1 + $0x1d8] sm:$0xff] }
 0x693   : > { %3953 = vmatpush2.bf16.msra.mxu1 %v3808_v63  ;;  %3979 = vmatprep.subr.bf16.mxu0 %v3711_v3  ;;  %v3803_v63 = vunpack.c.l.s8.bf16 %v3631_v53  ;;  %v3627_v3 = vld [vmem:[%s6401_s1 + $0x258] sm:$0xff]  ;;  %v3767_v6 = vunpack.c.h.s8.bf16 %v3611_v2 }
 0x694   : > { %4004 = vmatprep.subr.bf16.mxu1 %v3743_v4  ;;  %v3770_v4 = vunpack.c.l.s8.bf16 %v3614_v59  ;;  %v3795_v39 = vunpack.c.l.s8.bf16 %v3627_v3  ;;  %v3643_v53 = vld [vmem:[%s6401_s1 + $0x2d8] sm:$0xff] }
 0x696   : > { %3955 = vmatmul.mubr.bf16.vlgmr.msra.gmra.mxu1 %v6975_v22  ;;  %3980 = vmatpush2.bf16.msra.mxu0 %v3710_v7  ;;  %v3799_v7 = vunpack.c.h.s8.bf16 %v3627_v3 }
 0x697   : > { %4005 = vmatpush1.bf16.msra.mxu1 %v3742_v8  ;;  %3981 = vmatprep.subr.bf16.mxu0 %v3707_v12  ;;  %v3610_v8 = vld [vmem:[%s6401_s1 + $0x1d0] sm:$0xff] }
 0x698   : > { %4006 = vmatprep.subr.bf16.mxu1 %v3739_v13  ;;  %4036 = vmatprep.mubr.bf16.mxu1 %v6910_v31  ;;  %v3695_v31 = vunpack.c.h.s8.bf16 %v3575_v24  ;;  %v3626_v12 = vld [vmem:[%s6401_s1 + $0x250] sm:$0xff]  ;;  %v3766_v13 = vunpack.c.h.s8.bf16 %v3610_v8 }
 0x699   : > { %v3798_v14 = vunpack.c.h.s8.bf16 %v3626_v12 }
 0x69a   : > { %3982 = vmatpush2.bf16.msra.mxu0 %v3706_v41  ;;  %v3607_v41 = vld [vmem:[%s6401_s1 + $0x1b8] sm:$0xff] }
 0x69b   : > { %4007 = vmatpush1.bf16.msra.mxu1 %v3738_v18  ;;  %3983 = vmatprep.subr.bf16.mxu0 %v3703_v19  ;;  %v3623_v18 = vld [vmem:[%s6401_s1 + $0x238] sm:$0xff]  ;;  %v3762_v19 = vunpack.c.l.s8.bf16 %v3610_v8 }
 0x69c   : > { %4008 = vmatprep.subr.bf16.mxu1 %v3735_v20  ;;  %v3794_v20 = vunpack.c.l.s8.bf16 %v3626_v12  ;;  %v3791_v9 = vunpack.c.h.s8.bf16 %v3623_v18  ;;  %v3787_v24 = vunpack.c.l.s8.bf16 %v3623_v18  ;;  %v3638_v18 = vld [vmem:[%s6401_s1 + $0x2b0] sm:$0xff] }
 0x69e   : > { %3984 = vmatpush2.bf16.msra.mxu0 %v3702_v1  ;;  %v3622_v1 = vld [vmem:[%s6401_s1 + $0x230] sm:$0xff] }
 0x69f   : > { %4009 = vmatpush1.bf16.msra.mxu1 %v3734_v56  ;;  %3985 = vmatprep.subr.bf16.mxu0 %v3699_v17  ;;  %v3758_v56 = vunpack.c.h.s8.bf16 %v3606_v21  ;;  %v3790_v17 = vunpack.c.h.s8.bf16 %v3622_v1 }
 0x6a0   : > { %4010 = vmatprep.subr.bf16.mxu1 %v3731_v23  ;;  %v3755_v23 = vunpack.c.l.s8.bf16 %v3607_v41 }
 0x6a2   : > { %3986 = vmatpush2.bf16.msra.mxu0 %v3698_v43  ;;  %v3619_v43 = vld [vmem:[%s6401_s1 + $0x218] sm:$0xff] }
 0x6a3   : > { %4011 = vmatpush1.bf16.msra.mxu1 %v3730_v27  ;;  %3987 = vmatprep.subr.bf16.mxu0 %v3695_v31  ;;  %v3754_v27 = vunpack.c.l.s8.bf16 %v3606_v21  ;;  %v3786_v31 = vunpack.c.l.s8.bf16 %v3622_v1  ;;  %v3783_v38 = vunpack.c.h.s8.bf16 %v3619_v43  ;;  %v3779_v35 = vunpack.c.l.s8.bf16 %v3619_v43  ;;  %v3634_v43 = vld [vmem:[%s6401_s1 + $0x290] sm:$0xff] }
 0x6a4   : > { %4012 = vmatprep.subr.bf16.mxu1 %v3727_v28  ;;  %v3751_v28 = vunpack.c.h.s8.bf16 %v3603_v25 }
 0x6a6   : > { %3988 = vmatpush2.bf16.msra.mxu0 %v3694_v15  ;;  %v3618_v15 = vld [vmem:[%s6401_s1 + $0x210] sm:$0xff] }
 0x6a7   : > { %4013 = vmatpush1.bf16.msra.mxu1 %v3726_v32  ;;  %3989 = vmatprep.subr.bf16.mxu0 %v3691_v49  ;;  %v3750_v32 = vunpack.c.h.s8.bf16 %v3602_v29  ;;  %v3782_v49 = vunpack.c.h.s8.bf16 %v3618_v15 }
 0x6a8   : > { %4014 = vmatprep.subr.bf16.mxu1 %v3723_v33  ;;  %v3747_v33 = vunpack.c.l.s8.bf16 %v3603_v25 }
 0x6aa   : > { %3990 = vmatpush2.bf16.msra.mxu0 %v3690_v34  ;;  %v4159_v34 = vld [vmem:[%s6406_s27 + $0x68] sm:$0xff] }
 0x6ab   : > { %4015 = vmatpush1.bf16.msra.mxu1 %v3722_v16  ;;  %3991 = vmatprep.subr.bf16.mxu0 %v3687_v40  ;;  %v3746_v16 = vunpack.c.l.s8.bf16 %v3602_v29  ;;  %v3778_v40 = vunpack.c.l.s8.bf16 %v3618_v15  ;;  %v4239_v46 = vunpack.c.h.s8.bf16 %v4159_v34  ;;  %v4235_v52 = vunpack.c.l.s8.bf16 %v4159_v34 }
 0x6ac   : > { %4016 = vmatprep.subr.bf16.mxu1 %v3719_v48  ;;  %v3839_v48 = vunpack.c.h.s8.bf16 %v3647_v45 }
 0x6ae   : > { %3992 = vmatpush2.bf16.msra.mxu0 %v3686_v37  ;;  %v4158_v37 = vld [vmem:[%s6406_s27 + $0x60] sm:$0xff] }
 0x6af   : > { %4017 = vmatpush1.bf16.msra.mxu1 %v3718_v47  ;;  %3993 = vmatprep.subr.bf16.mxu0 %v3683_v51  ;;  %v3838_v47 = vunpack.c.h.s8.bf16 %v3646_v10  ;;  %v4238_v51 = vunpack.c.h.s8.bf16 %v4158_v37  ;;  %v4234_v59 = vunpack.c.l.s8.bf16 %v4158_v37  ;;  %v4171_v37 = vld [vmem:[%s6406_s27 + $0xc8] sm:$0xff] }
 0x6b0   : > { %4018 = vmatprep.subr.bf16.mxu1 %v3715_v44  ;;  %v3835_v44 = vunpack.c.l.s8.bf16 %v3647_v45  ;;  %v4174_v45 = vld [vmem:[%s6406_s27 + $0xe0] sm:$0xff] }
 0x6b2   : > { %3994 = vmatpush2.bf16.msra.mxu0 %v3682_v54  ;;  %v4155_v54 = vld [vmem:[%s6406_s27 + $0x48] sm:$0xff] }
 0x6b3   : > { %4019 = vmatpush1.bf16.msra.mxu1 %v3714_v55  ;;  %4045 = vmatprep.subr.bf16.mxu0 %v3807_v58  ;;  %v3834_v58 = vunpack.c.l.s8.bf16 %v3646_v10  ;;  %v4227_v12 = vunpack.c.l.s8.bf16 %v4155_v54 }
 0x6b4   : > { %4020 = vmatprep.subr.bf16.mxu1 %v3775_v57 }
 0x6b5   : > { %3996 = vmatmul.mubr.bf16.vlgmr.msra.gmra.mxu0 %v6904_v11  ;;  %v3763_v11 = vunpack.c.l.s8.bf16 %v3611_v2  ;;  %v4154_v2 = vld [vmem:[%s6406_s27 + $0x40] sm:$0xff] }
 0x6b6   : > { %4046 = vmatpush1.bf16.msra.mxu0 %v3806_v61  ;;  %4077 = vmatprep.mubr.bf16.mxu0 %v6938_v0  ;;  %v3759_v0 = vunpack.c.h.s8.bf16 %v3607_v41  ;;  %v3831_v61 = vunpack.c.h.s8.bf16 %v3643_v53 }
 0x6b7   : > { %4021 = vmatpush2.bf16.msra.mxu1 %v3774_v60  ;;  %4047 = vmatprep.subr.bf16.mxu0 %v3803_v63  ;;  %v4231_v63 = vunpack.c.h.s8.bf16 %v4155_v54 }
 0x6b8   : > { %4022 = vmatprep.subr.bf16.mxu1 %v3771_v62  ;;  %v3642_v62 = vld [vmem:[%s6401_s1 + $0x2d0] sm:$0xff] }
 0x6ba   : > { %4048 = vmatpush1.bf16.msra.mxu0 %v3802_v5  ;;  %v4230_v5 = vunpack.c.h.s8.bf16 %v4154_v2 }
 0x6bb   : > { %4023 = vmatpush2.bf16.msra.mxu1 %v3770_v4  ;;  %4049 = vmatprep.subr.bf16.mxu0 %v3799_v7  ;;  %v3830_v4 = vunpack.c.h.s8.bf16 %v3642_v62  ;;  %v3827_v7 = vunpack.c.l.s8.bf16 %v3643_v53  ;;  %v4170_v53 = vld [vmem:[%s6406_s27 + $0xc0] sm:$0xff] }
 0x6bc   : > { %4024 = vmatprep.subr.bf16.mxu1 %v3767_v6 }
 0x6be   : > { %4050 = vmatpush1.bf16.msra.mxu0 %v3798_v14  ;;  %v4151_v14 = vld [vmem:[%s6406_s27 + $0x28] sm:$0xff] }
 0x6bf   : > { %4025 = vmatpush2.bf16.msra.mxu1 %v3766_v13  ;;  %4051 = vmatprep.subr.bf16.mxu0 %v3795_v39  ;;  %v3639_v13 = vld [vmem:[%s6401_s1 + $0x2b8] sm:$0xff]  ;;  %v4226_v39 = vunpack.c.l.s8.bf16 %v4154_v2  ;;  %v4219_v1 = vunpack.c.l.s8.bf16 %v4151_v14  ;;  %v4166_v2 = vld [vmem:[%s6406_s27 + $0xa0] sm:$0xff] }
 0x6c0   : > { %4026 = vmatprep.subr.bf16.mxu1 %v3763_v11  ;;  %v3826_v11 = vunpack.c.l.s8.bf16 %v3642_v62  ;;  %v3823_v41 = vunpack.c.h.s8.bf16 %v3639_v13  ;;  %v3819_v21 = vunpack.c.l.s8.bf16 %v3639_v13  ;;  %v4258_v62 = vunpack.c.l.s8.bf16 %v4170_v53 }
 0x6c1   : > { %v4250_v13 = vunpack.c.l.s8.bf16 %v4166_v2 }
 0x6c2   : > { %4052 = vmatpush1.bf16.msra.mxu0 %v3794_v20  ;;  %v4150_v20 = vld [vmem:[%s6406_s27 + $0x20] sm:$0xff] }
 0x6c3   : > { %4027 = vmatpush2.bf16.msra.mxu1 %v3762_v19  ;;  %4053 = vmatprep.subr.bf16.mxu0 %v3791_v9  ;;  %v4223_v19 = vunpack.c.h.s8.bf16 %v4151_v14  ;;  %v4222_v9 = vunpack.c.h.s8.bf16 %v4150_v20 }
 0x6c4   : > { %4028 = vmatprep.subr.bf16.mxu1 %v3759_v0  ;;  %v3822_v0 = vunpack.c.h.s8.bf16 %v3638_v18 }
 0x6c6   : > { %4054 = vmatpush1.bf16.msra.mxu0 %v3790_v17  ;;  %v4147_v17 = vld [vmem:[%s6406_s27 + $0x8] sm:$0xff] }
 0x6c7   : > { %4029 = vmatpush2.bf16.msra.mxu1 %v3758_v56  ;;  %4055 = vmatprep.subr.bf16.mxu0 %v3787_v24  ;;  %v3635_v56 = vld [vmem:[%s6401_s1 + $0x298] sm:$0xff]  ;;  %v4218_v24 = vunpack.c.l.s8.bf16 %v4150_v20  ;;  %v4211_v15 = vunpack.c.l.s8.bf16 %v4147_v17 }
 0x6c8   : > { %4030 = vmatprep.subr.bf16.mxu1 %v3755_v23  ;;  %v3818_v23 = vunpack.c.l.s8.bf16 %v3638_v18  ;;  %v3815_v25 = vunpack.c.h.s8.bf16 %v3635_v56  ;;  %v3811_v29 = vunpack.c.l.s8.bf16 %v3635_v56 }
 0x6ca   : > { %4056 = vmatpush1.bf16.msra.mxu0 %v3786_v31  ;;  %v4146_v31 = vld [vmem:[%s6406_s27] sm:$0xff] }
 0x6cb   : > { %4031 = vmatpush2.bf16.msra.mxu1 %v3754_v27  ;;  %4057 = vmatprep.subr.bf16.mxu0 %v3783_v38  ;;  %v4215_v27 = vunpack.c.h.s8.bf16 %v4147_v17  ;;  %v4214_v38 = vunpack.c.h.s8.bf16 %v4146_v31 }
 0x6cc   : > { %4032 = vmatprep.subr.bf16.mxu1 %v3751_v28  ;;  %v3814_v28 = vunpack.c.h.s8.bf16 %v3634_v43 }
 0x6ce   : > { %4058 = vmatpush1.bf16.msra.mxu0 %v3782_v49  ;;  %v3810_v49 = vunpack.c.l.s8.bf16 %v3634_v43  ;;  %v4182_v43 = vld [vmem:[%s6406_s27 + $0x120] sm:$0xff] }
 0x6cf   : > { %4033 = vmatpush2.bf16.msra.mxu1 %v3750_v32  ;;  %4059 = vmatprep.subr.bf16.mxu0 %v3779_v35  ;;  %v4175_v32 = vld [vmem:[%s6406_s27 + $0xe8] sm:$0xff] }
 0x6d0   : > { %4034 = vmatprep.subr.bf16.mxu1 %v3747_v33  ;;  %v4210_v33 = vunpack.c.l.s8.bf16 %v4146_v31  ;;  %v4271_v35 = vunpack.c.h.s8.bf16 %v4175_v32 }
 0x6d2   : > { %4060 = vmatpush1.bf16.msra.mxu0 %v3778_v40  ;;  %v4270_v40 = vunpack.c.h.s8.bf16 %v4174_v45 }
 0x6d3   : > { %4035 = vmatpush2.bf16.msra.mxu1 %v3746_v16  ;;  %4061 = vmatprep.subr.bf16.mxu0 %v3839_v48  ;;  %v5885_v16 = vld [vmem:[%s7828_s6] ss:$0 sm:$0xff]  ;;  %v4267_v48 = vunpack.c.l.s8.bf16 %v4175_v32 }
 0x6d4   : > { %4338 = vmatprep.subr.bf16.mxu1 %v4239_v46 }
 0x6d5   : > { %v7069_v55 = vpop.f32.mrf.mxu0 }
 0x6d6   : > { %4037 = vmatmul.mubr.bf16.vlgmr.msra.gmra.mxu1 %v6906_v42  ;;  %v7072_v57 = vpop.f32.mrf.mxu1  ;;  %4062 = vmatpush2.bf16.msra.mxu0 %v3838_v47 }
 0x6d7   : > { %4339 = vmatpush1.bf16.msra.mxu1 %v4238_v51  ;;  %v7074_v50 = vpop.f32.mrf.mxu0  ;;  %4063 = vmatprep.subr.bf16.mxu0 %v3835_v44  ;;  %v4266_v51 = vunpack.c.l.s8.bf16 %v4174_v45 }
 0x6d8   : > { %v7076_v60 = vpop.f32.mrf.mxu1  ;;  %4340 = vmatprep.subr.bf16.mxu1 %v4235_v52  ;;  %v5995_v34 = vadd.f32 %v7074_v50, %v7069_v55  ;;  %v4263_v52 = vunpack.c.h.s8.bf16 %v4171_v37 }
 0x6d9   : > { %v5996_v3 = vpop.f32.mrf.mxu0  ;;  %v6017_v46 = vadd.f32 %v7076_v60, %v7072_v57  ;;  %v4262_v57 = vunpack.c.h.s8.bf16 %v4170_v53 }
 0x6da   : > { %v6018_v42 = vpop.f32.mrf.mxu1  ;;  %4064 = vmatpush2.bf16.msra.mxu0 %v3834_v58  ;;  %v3446_v10 = vadd.f32 %v5995_v34, %v5885_v16  ;;  %v4191_v3 = vld [vmem:[%s6406_s27 + $0x168] sm:$0xff] }
 0x6db   : > { %4341 = vmatpush1.bf16.msra.mxu1 %v4234_v59  ;;  %v5997_v6 = vpop.f32.mrf.mxu0  ;;  %4065 = vmatprep.subr.bf16.mxu0 %v3831_v61  ;;  %v4167_v61 = vld [vmem:[%s6406_s27 + $0xa8] sm:$0xff]  ;;  %v4303_v42 = vunpack.c.h.s8.bf16 %v4191_v3 }
 0x6dc   : > { %v6019_v8 = vpop.f32.mrf.mxu1  ;;  %4342 = vmatprep.subr.bf16.mxu1 %v4231_v63  ;;  %v3486_v54 = vadd.f32 %v6017_v46, %v3446_v10  ;;  %v4255_v63 = vunpack.c.h.s8.bf16 %v4167_v61  ;;  %v4206_v10 = vld [vmem:[%s6406_s27 + $0x1e0] sm:$0xff] }
 0x6dd   : > { %v4163_v8 = vld [vmem:[%s6406_s27 + $0x88] sm:$0xff]  ;;  %v4334_v46 = vunpack.c.h.s8.bf16 %v4206_v10 }
 0x6de   : > { %4066 = vmatpush2.bf16.msra.mxu0 %v3830_v4  ;;  %v4190_v4 = vld [vmem:[%s6406_s27 + $0x160] sm:$0xff] }
 0x6df   : > { %4343 = vmatpush1.bf16.msra.mxu1 %v4230_v5  ;;  %4067 = vmatprep.subr.bf16.mxu0 %v3827_v7  ;;  %v4254_v5 = vunpack.c.h.s8.bf16 %v4166_v2  ;;  %v4302_v6 = vunpack.c.h.s8.bf16 %v4190_v4  ;;  %v4251_v7 = vunpack.c.l.s8.bf16 %v4167_v61  ;;  %v4298_v14 = vunpack.c.l.s8.bf16 %v4190_v4  ;;  %v4195_v2 = vld [vmem:[%s6406_s27 + $0x188] sm:$0xff]  ;;  %v4194_v4 = vld [vmem:[%s6406_s27 + $0x180] sm:$0xff] }
 0x6e0   : > { %4344 = vmatprep.subr.bf16.mxu1 %v4227_v12  ;;  %v4299_v12 = vunpack.c.l.s8.bf16 %v4191_v3 }
 0x6e2   : > { %4068 = vmatpush2.bf16.msra.mxu0 %v3826_v11  ;;  %v4247_v11 = vunpack.c.h.s8.bf16 %v4163_v8 }
 0x6e3   : > { %4345 = vmatpush1.bf16.msra.mxu1 %v4226_v39  ;;  %4069 = vmatprep.subr.bf16.mxu0 %v3823_v41  ;;  %v4162_v39 = vld [vmem:[%s6406_s27 + $0x80] sm:$0xff]  ;;  %v4187_v41 = vld [vmem:[%s6406_s27 + $0x148] sm:$0xff] }
 0x6e4   : > { %4346 = vmatprep.subr.bf16.mxu1 %v4223_v19  ;;  %v4295_v18 = vunpack.c.h.s8.bf16 %v4187_v41  ;;  %v4186_v19 = vld [vmem:[%s6406_s27 + $0x140] sm:$0xff]  ;;  %v4246_v20 = vunpack.c.h.s8.bf16 %v4162_v39  ;;  %v4242_v17 = vunpack.c.l.s8.bf16 %v4162_v39  ;;  %v7147_v39 = vsub.s32 1, %v6895_v30 }
 0x6e5   : > { %v4290_v56 = vunpack.c.l.s8.bf16 %v4186_v19 }
 0x6e6   : > { %4070 = vmatpush2.bf16.msra.mxu0 %v3822_v0  ;;  %v4294_v0 = vunpack.c.h.s8.bf16 %v4186_v19 }
 0x6e7   : > { %4347 = vmatpush1.bf16.msra.mxu1 %v4222_v9  ;;  %4071 = vmatprep.subr.bf16.mxu0 %v3819_v21  ;;  %v4243_v9 = vunpack.c.l.s8.bf16 %v4163_v8  ;;  %v7113_v21 = vld [vmem:[%s6406_s27 + $0x78] sm:$0xff]  ;;  %v4306_v8 = vunpack.c.l.s8.bf16 %v4194_v4 }
 0x6e8   : > { %4348 = vmatprep.subr.bf16.mxu1 %v4219_v1  ;;  %v4291_v1 = vunpack.c.l.s8.bf16 %v4187_v41  ;;  %v7154_v41 = vld [vmem:[%s1353_s29] sm:$0xf]  ;;  %s7830_s29 = sld [smem:[#allocation9_spill]] }
 0x6ea   : > { %4072 = vmatpush2.bf16.msra.mxu0 %v3818_v23  ;;  %v4241_v23 = vunpack.c.h.s8.bf16 %v7113_v21 }
 0x6eb   : > { %4349 = vmatpush1.bf16.msra.mxu1 %v4218_v24  ;;  %4073 = vmatprep.subr.bf16.mxu0 %v3815_v25  ;;  %v4183_v24 = vld [vmem:[%s6406_s27 + $0x128] sm:$0xff] }
 0x6ec   : > { %4350 = vmatprep.subr.bf16.mxu1 %v4215_v27  ;;  %v4287_v25 = vunpack.c.h.s8.bf16 %v4183_v24  ;;  %v4286_v27 = vunpack.c.h.s8.bf16 %v4182_v43 }
 0x6ee   : > { %4074 = vmatpush2.bf16.msra.mxu0 %v3814_v28  ;;  %v4283_v28 = vunpack.c.l.s8.bf16 %v4183_v24 }
 0x6ef   : > { %4351 = vmatpush1.bf16.msra.mxu1 %v4214_v38  ;;  %4075 = vmatprep.subr.bf16.mxu0 %v3811_v29  ;;  %v4282_v38 = vunpack.c.l.s8.bf16 %v4182_v43 }
 0x6f0   : > { %4352 = vmatprep.subr.bf16.mxu1 %v4211_v15  ;;  %v4179_v15 = vld [vmem:[%s6406_s27 + $0x108] sm:$0xff] }
 0x6f1   : > { %v4275_v34 = vunpack.c.l.s8.bf16 %v4179_v15 }
 0x6f2   : > { %4076 = vmatpush2.bf16.msra.mxu0 %v3810_v49  ;;  %v4279_v49 = vunpack.c.h.s8.bf16 %v4179_v15  ;;  %v4160_v15 = vld [vmem:[%s6406_s27 + $0x70] sm:$0xff] }
 0x6f3   : > { %4353 = vmatpush1.bf16.msra.mxu1 %v4210_v33  ;;  %4379 = vmatprep.subr.bf16.mxu0 %v4303_v42  ;;  %v4178_v33 = vld [vmem:[%s6406_s27 + $0x100] sm:$0xff]  ;;  %v4311_v42 = vunpack.c.h.s8.bf16 %v4195_v2 }
 0x6f4   : > { %4354 = vmatprep.subr.bf16.mxu1 %v4271_v35  ;;  %v4278_v35 = vunpack.c.h.s8.bf16 %v4178_v33  ;;  %v4274_v16 = vunpack.c.l.s8.bf16 %v4178_v33  ;;  %v4240_v33 = vunpack.c.h.s8.bf16 %v4160_v15 }
 0x6f5   : > { %v6037_v47 = vpop.f32.mrf.mxu0  ;;  %4078 = vmatmul.mubr.bf16.vlgmr.msra.gmra.mxu0 %v6975_v22  ;;  %v4259_v22 = vunpack.c.l.s8.bf16 %v4171_v37 }
 0x6f6   : > { %4380 = vmatpush1.bf16.msra.mxu0 %v4302_v6 }
 0x6f7   : > { %4355 = vmatpush2.bf16.msra.mxu1 %v4270_v40  ;;  %v6038_v44 = vpop.f32.mrf.mxu0  ;;  %4381 = vmatprep.subr.bf16.mxu0 %v4299_v12  ;;  %v4207_v40 = vld [vmem:[%s6406_s27 + $0x1e8] sm:$0xff]  ;;  %v7133_v12 = vld [vmem:[%s6406_s27 + $0x178] sm:$0xff] }
 0x6f8   : > { %4356 = vmatprep.subr.bf16.mxu1 %v4267_v48  ;;  %v6039_v55 = vadd.f32 %v6038_v44, %v6037_v47  ;;  %v4335_v48 = vunpack.c.h.s8.bf16 %v4207_v40  ;;  %v4331_v37 = vunpack.c.l.s8.bf16 %v4207_v40  ;;  %v4203_v47 = vld [vmem:[%s6406_s27 + $0x1c8] sm:$0xff] }
 0x6f9   : > { %v6040_v58 = vpop.f32.mrf.mxu0  ;;  %v4327_v44 = vunpack.c.h.s8.bf16 %v4203_v47 }
 0x6fa   : > { %v7100_v59 = vadd.f32 %v6039_v55, %v3486_v54  ;;  %4382 = vmatpush1.bf16.msra.mxu0 %v4298_v14  ;;  %v4323_v54 = vunpack.c.l.s8.bf16 %v4203_v47  ;;  %v4199_v55 = vld [vmem:[%s6406_s27 + $0x1a8] sm:$0xff]  ;;  %v7137_v14 = vsub.s32 0, %v6895_v30 }
 0x6fb   : > { %4357 = vmatpush2.bf16.msra.mxu1 %v4266_v51  ;;  %v6041_v50 = vpop.f32.mrf.mxu0  ;;  %4383 = vmatprep.subr.bf16.mxu0 %v4295_v18  ;;  %v4330_v51 = vunpack.c.l.s8.bf16 %v4206_v10  ;;  %v4315_v61 = vunpack.c.l.s8.bf16 %v4199_v55 }
 0x6fc   : > { %4358 = vmatprep.subr.bf16.mxu1 %v4263_v52  ;;  %v3532_v60 = vsel %vm3531_vm3, %v7100_v59, -inf  ;;  %v4202_v52 = vld [vmem:[%s6406_s27 + $0x1c0] sm:$0xff] }
 0x6fd   : > { %3533 = vmax.xlane.f32.xlu0 %v3532_v60  ;;  %v4326_v53 = vunpack.c.h.s8.bf16 %v4202_v52  ;;  %v4322_v58 = vunpack.c.l.s8.bf16 %v4202_v52  ;;  %v4198_v50 = vld [vmem:[%s6406_s27 + $0x1a0] sm:$0xff] }
 0x6fe   : > { %4384 = vmatpush1.bf16.msra.mxu0 %v4294_v0 }
 0x6ff   : > { %4359 = vmatpush2.bf16.msra.mxu1 %v4262_v57  ;;  %4385 = vmatprep.subr.bf16.mxu0 %v4291_v1  ;;  %v4319_v57 = vunpack.c.h.s8.bf16 %v4199_v55  ;;  %v4117_v1 = vrot.slane %v7154_v41, %v7137_v14 }
 0x700   : > { %4360 = vmatprep.subr.bf16.mxu1 %v4259_v22  ;;  %v4318_v22 = vunpack.c.h.s8.bf16 %v4198_v50 }
 0x702   : > { %4386 = vmatpush1.bf16.msra.mxu0 %v4290_v56 }
 0x703   : > { %4361 = vmatpush2.bf16.msra.mxu1 %v4258_v62  ;;  %4387 = vmatprep.subr.bf16.mxu0 %v4287_v25  ;;  %v4314_v62 = vunpack.c.l.s8.bf16 %v4198_v50  ;;  %v4121_v25 = vrot.slane %v7154_v41, %v7147_v39 }
 0x704   : > { %4362 = vmatprep.subr.bf16.mxu1 %v4255_v63 }
 0x706   : > { %4388 = vmatpush1.bf16.msra.mxu0 %v4286_v27 }
 0x707   : > { %4363 = vmatpush2.bf16.msra.mxu1 %v4254_v5  ;;  %4389 = vmatprep.subr.bf16.mxu0 %v4283_v28  ;;  %v4310_v5 = vunpack.c.h.s8.bf16 %v4194_v4 }
 0x708   : > { %4364 = vmatprep.subr.bf16.mxu1 %v4251_v7  ;;  %v4307_v7 = vunpack.c.l.s8.bf16 %v4195_v2 }
 0x70a   : > { %4390 = vmatpush1.bf16.msra.mxu0 %v4282_v38 }
 0x70b   : > { %4365 = vmatpush2.bf16.msra.mxu1 %v4250_v13  ;;  %4391 = vmatprep.subr.bf16.mxu0 %v4279_v49  ;;  %v4305_v13 = vunpack.c.h.s8.bf16 %v7133_v12 }
 0x70c   : > { %4366 = vmatprep.subr.bf16.mxu1 %v4247_v11  ;;  %v7144_v11 = vld [vmem:[%s7829_s0] sm:$0xf] }
 0x70d   : > { %v4091_v19 = vrot.slane %v7144_v11, %v7137_v14  ;;  %v4095_v56 = vrot.slane %v7144_v11, %v7147_v39 }
 0x70e   : > { %4392 = vmatpush1.bf16.msra.mxu0 %v4278_v35 }
 0x70f   : > { %4367 = vmatpush2.bf16.msra.mxu1 %v4246_v20  ;;  %4393 = vmatprep.subr.bf16.mxu0 %v4275_v34  ;;  %v4157_v34 = vld [vmem:[%s6406_s27 + $0x58] sm:$0xff] }
 0x710   : > { %4368 = vmatprep.subr.bf16.mxu1 %v4243_v9  ;;  %v4233_v40 = vunpack.c.h.s8.bf16 %v4157_v34 }
 0x712   : > { %4394 = vmatpush1.bf16.msra.mxu0 %v4274_v16  ;;  %v4236_v16 = vunpack.c.l.s8.bf16 %v4160_v15 }
 0x713   : > { %4369 = vmatpush2.bf16.msra.mxu1 %v4242_v17  ;;  %4395 = vmatprep.subr.bf16.mxu0 %v4335_v48  ;;  %v4156_v48 = vld [vmem:[%s6406_s27 + $0x50] sm:$0xff] }
 0x714   : > { %4420 = vmatprep.subr.bf16.mxu1 %v4241_v23  ;;  %v4232_v10 = vunpack.c.h.s8.bf16 %v4156_v48 }
 0x716   : > { %v7118_v31 = vpop.f32.mrf.mxu1  ;;  %4396 = vmatpush2.bf16.msra.mxu0 %v4334_v46  ;;  %v4229_v46 = vunpack.c.l.s8.bf16 %v4157_v34 }
 0x717   : > { %4397 = vmatprep.subr.bf16.mxu0 %v4331_v37  ;;  %v4153_v37 = vld [vmem:[%s6406_s27 + $0x38] sm:$0xff] }
 0x718   : > { %v7120_v29 = vpop.f32.mrf.mxu1  ;;  %v4225_v47 = vunpack.c.h.s8.bf16 %v4153_v37  ;;  %v4221_v52 = vunpack.c.l.s8.bf16 %v4153_v37 }
 0x71a   : > { %v3878_v32 = vpop.f32.mrf.mxu1  ;;  %4398 = vmatpush2.bf16.msra.mxu0 %v4330_v51  ;;  %v4152_v51 = vld [vmem:[%s6406_s27 + $0x30] sm:$0xff] }
 0x71b   : > { %4399 = vmatprep.subr.bf16.mxu0 %v4327_v44  ;;  %v4224_v44 = vunpack.c.h.s8.bf16 %v4152_v51 }
 0x71c   : > { %v3879_v45 = vpop.f32.mrf.mxu1 }
 0x71d   : > { %v4237_v45 = vunpack.c.l.s8.bf16 %v7113_v21  ;;  %v4228_v21 = vunpack.c.l.s8.bf16 %v4156_v48 }
 0x71e   : > { %4400 = vmatpush2.bf16.msra.mxu0 %v4326_v53  ;;  %v4149_v53 = vld [vmem:[%s6406_s27 + $0x18] sm:$0xff] }
 0x71f   : > { %4401 = vmatprep.subr.bf16.mxu0 %v4323_v54  ;;  %v4220_v54 = vunpack.c.l.s8.bf16 %v4152_v51 }
 0x722   : > { %4402 = vmatpush2.bf16.msra.mxu0 %v4322_v58  ;;  %v4217_v58 = vunpack.c.h.s8.bf16 %v4149_v53 }
 0x723   : > { %4403 = vmatprep.subr.bf16.mxu0 %v4319_v57  ;;  %v4148_v57 = vld [vmem:[%s6406_s27 + $0x10] sm:$0xff] }
 0x724   : > { %v4212_v2 = vunpack.c.l.s8.bf16 %v4148_v57 }
 0x726   : > { %4404 = vmatpush2.bf16.msra.mxu0 %v4318_v22  ;;  %v4216_v22 = vunpack.c.h.s8.bf16 %v4148_v57 }
 0x727   : > { %4405 = vmatprep.subr.bf16.mxu0 %v4315_v61  ;;  %v4213_v61 = vunpack.c.l.s8.bf16 %v4149_v53 }
 0x72a   : > { %4406 = vmatpush2.bf16.msra.mxu0 %v4314_v62  ;;  %v4177_v62 = vld [vmem:[%s6406_s27 + $0xf8] sm:$0xff] }
 0x72b   : > { %4407 = vmatprep.subr.bf16.mxu0 %v4311_v42  ;;  %v4176_v42 = vld [vmem:[%s6406_s27 + $0xf0] sm:$0xff] }
 0x72c   : > { %v4272_v4 = vunpack.c.h.s8.bf16 %v4176_v42 }
 0x72e   : > { %4408 = vmatpush2.bf16.msra.mxu0 %v4310_v5  ;;  %v4269_v5 = vunpack.c.l.s8.bf16 %v4177_v62 }
 0x72f   : > { %4409 = vmatprep.subr.bf16.mxu0 %v4307_v7  ;;  %v4268_v7 = vunpack.c.l.s8.bf16 %v4176_v42  ;;  %v4188_v42 = vld [vmem:[%s6406_s27 + $0x150] sm:$0xff] }
 0x732   : > { %4410 = vmatpush2.bf16.msra.mxu0 %v4306_v8 }
 0x733   : > { %4461 = vmatprep.subr.bf16.mxu0 %v4305_v13  ;;  %v4172_v13 = vld [vmem:[%s6406_s27 + $0xd0] sm:$0xff] }
 0x735   : > { %v3915_v60 = vpop.f32.mrf.mxu0 }
 0x736   : > { %v3916_v18 = vadd.f32 %v3915_v60, %v7118_v31 }
 0x737   : > { %v3917_v63 = vpop.f32.mrf.mxu0 }
 0x738   : > { %v3918_v0 = vadd.f32 %v3917_v63, %v7120_v29 }
 0x739   : > { %v3919_v3 = vpop.f32.mrf.mxu0 }
 0x73a   : > { %v4273_v3 = vunpack.c.h.s8.bf16 %v4177_v62 }
 0x73b   : > { %v3920_v6 = vpop.f32.mrf.mxu0 }
 0x73c   : > { %v4173_v6 = vld [vmem:[%s6406_s27 + $0xd8] sm:$0xff] }
 0x73d   : > { %v4265_v8 = vunpack.c.h.s8.bf16 %v4173_v6 }
 0x756   : > { %v3956_v20 = vpop.f32.mrf.mxu1 }
 0x757   : > { %v3957_v9 = vadd.f32 %v3956_v20, %v3916_v18  ;;  %v4264_v20 = vunpack.c.h.s8.bf16 %v4172_v13 }
 0x758   : > { %v3958_v17 = vpop.f32.mrf.mxu1 }
 0x759   : > { %v4108_v23 = vmul.f32 %v4091_v19, %v3957_v9  ;;  %v3959_v24 = vadd.f32 %v3958_v17, %v3918_v0  ;;  %v4261_v9 = vunpack.c.l.s8.bf16 %v4173_v6  ;;  %v4185_v6 = vld [vmem:[%s6406_s27 + $0x138] sm:$0xff] }
 0x75a   : > { %v3960_v43 = vpop.f32.mrf.mxu1 }
 0x75b   : > { %v4134_v27 = vadd.f32 %v4117_v1, %v4108_v23  ;;  %v4109_v31 = vmul.f32 %v4095_v56, %v3959_v24  ;;  %v4169_v1 = vld [vmem:[%s6406_s27 + $0xb8] sm:$0xff]  ;;  %v4260_v56 = vunpack.c.l.s8.bf16 %v4172_v13  ;;  %v4168_v23 = vld [vmem:[%s6406_s27 + $0xb0] sm:$0xff] }
 0x75c   : > { %v3961_v28 = vpop.f32.mrf.mxu1  ;;  %v4257_v17 = vunpack.c.h.s8.bf16 %v4169_v1  ;;  %v4256_v24 = vunpack.c.h.s8.bf16 %v4168_v23  ;;  %v4165_v43 = vld [vmem:[%s6406_s27 + $0x98] sm:$0xff] }
 0x75d   : > { %v4135_v38 = vadd.f32 %v4121_v25, %v4109_v31  ;;  %v4138_v29 = vmax.f32 %v4134_v27, 0.0  ;;  %v4253_v25 = vunpack.c.l.s8.bf16 %v4169_v1  ;;  %v4249_v31 = vunpack.c.h.s8.bf16 %v4165_v43  ;;  %v4164_v28 = vld [vmem:[%s6406_s27 + $0x90] sm:$0xff] }
 0x75e   : > { %v4248_v15 = vunpack.c.h.s8.bf16 %v4164_v28  ;;  %v4244_v34 = vunpack.c.l.s8.bf16 %v4164_v28 }
 0x75f   : > { %v4139_v32 = vmax.f32 %v4135_v38, 0.0  ;;  %v7167_v35 = vpack.c.bf16 %v4138_v29, %v4138_v29 }
 0x761   : > { %v4143_v49 = vpack.c.bf16 %v4139_v32, %v4139_v32 }
 0x763   : > { %4370 = vmatprep.mubr.bf16.mxu1 %v4143_v49 }
 0x764   : > { %4371 = vmatmul.mubr.bf16.vlgmr.msra.gmra.mxu1 %v7167_v35 }
 0x765   : > { %4421 = vmatpush1.bf16.msra.mxu1 %v4240_v33  ;;  %4452 = vmatprep.mubr.bf16.mxu1 %v4143_v49  ;;  %v4245_v49 = vunpack.c.l.s8.bf16 %v4165_v43 }
 0x766   : > { %4422 = vmatprep.subr.bf16.mxu1 %v4237_v45 }
 0x769   : > { %4423 = vmatpush1.bf16.msra.mxu1 %v4236_v16  ;;  %v7196_v16 = vsub.s32 2, %v6895_v30 }
 0x76a   : > { %4424 = vmatprep.subr.bf16.mxu1 %v4233_v40  ;;  %v7199_v40 = vsub.s32 3, %v6895_v30 }
 0x76d   : > { %4425 = vmatpush1.bf16.msra.mxu1 %v4232_v10  ;;  %v4099_v10 = vrot.slane %v7144_v11, %v7196_v16 }
 0x76e   : > { %4426 = vmatprep.subr.bf16.mxu1 %v4229_v46 }
 0x771   : > { %4427 = vmatpush1.bf16.msra.mxu1 %v4228_v21 }
 0x772   : > { %4428 = vmatprep.subr.bf16.mxu1 %v4225_v47  ;;  %v4125_v47 = vrot.slane %v7154_v41, %v7196_v16 }
 0x775   : > { %4429 = vmatpush1.bf16.msra.mxu1 %v4224_v44  ;;  %v7176_v55 = vpop.f32.mrf.mxu0 }
 0x776   : > { %4430 = vmatprep.subr.bf16.mxu1 %v4221_v52  ;;  %v4129_v52 = vrot.slane %v7154_v41, %v7199_v40 }
 0x777   : > { %v7179_v50 = vpop.f32.mrf.mxu0 }
 0x779   : > { %4431 = vmatpush1.bf16.msra.mxu1 %v4220_v54  ;;  %v4001_v60 = vpop.f32.mrf.mxu0 }
 0x77a   : > { %4432 = vmatprep.subr.bf16.mxu1 %v4217_v58 }
 0x77b   : > { %v4002_v63 = vpop.f32.mrf.mxu0 }
 0x77c   : > { %v4301_v63 = vunpack.c.l.s8.bf16 %v7133_v12  ;;  %v4292_v12 = vunpack.c.l.s8.bf16 %v4188_v42 }
 0x77d   : > { %4433 = vmatpush1.bf16.msra.mxu1 %v4216_v22  ;;  %v4192_v22 = vld [vmem:[%s6406_s27 + $0x170] sm:$0xff] }
 0x77e   : > { %4434 = vmatprep.subr.bf16.mxu1 %v4213_v61  ;;  %v4304_v62 = vunpack.c.h.s8.bf16 %v4192_v22  ;;  %v4300_v41 = vunpack.c.l.s8.bf16 %v4192_v22 }
 0x781   : > { %4435 = vmatpush1.bf16.msra.mxu1 %v4212_v2  ;;  %v4189_v2 = vld [vmem:[%s6406_s27 + $0x158] sm:$0xff] }
 0x782   : > { %4436 = vmatprep.subr.bf16.mxu1 %v4273_v3  ;;  %v4297_v3 = vunpack.c.h.s8.bf16 %v4189_v2 }
 0x785   : > { %4437 = vmatpush2.bf16.msra.mxu1 %v4272_v4  ;;  %v4296_v4 = vunpack.c.h.s8.bf16 %v4188_v42 }
 0x786   : > { %4438 = vmatprep.subr.bf16.mxu1 %v4269_v5  ;;  %v3534_v18 = vpop.xlane.xlu0 %3533  ;;  %v4293_v5 = vunpack.c.l.s8.bf16 %v4189_v2 }
 0x787   : > { %v3535_v19 = vsub.f32 %v7100_v59, %v3534_v18  ;;  %v4252_v59 = vunpack.c.l.s8.bf16 %v4168_v23  ;;  %v4285_v18 = vunpack.c.l.s8.bf16 %v4185_v6 }
 0x789   : > { %4439 = vmatpush2.bf16.msra.mxu1 %v4268_v7  ;;  %v3536_v0 = vmul.f32 1.442695, %v3535_v19  ;;  %v4289_v7 = vunpack.c.h.s8.bf16 %v4185_v6  ;;  %v4181_v19 = vld [vmem:[%s6406_s27 + $0x118] sm:$0xff] }
 0x78a   : > { %4440 = vmatprep.subr.bf16.mxu1 %v4265_v8  ;;  %v4184_v8 = vld [vmem:[%s6406_s27 + $0x130] sm:$0xff] }
 0x78b   : > { %6139 = vpow2.f32 %v3536_v0  ;;  %v4288_v13 = vunpack.c.h.s8.bf16 %v4184_v8  ;;  %v4281_v0 = vunpack.c.h.s8.bf16 %v4181_v19 }
 0x78d   : > { %4441 = vmatpush2.bf16.msra.mxu1 %v4264_v20  ;;  %v4284_v20 = vunpack.c.l.s8.bf16 %v4184_v8 }
 0x78e   : > { %4442 = vmatprep.subr.bf16.mxu1 %v4261_v9  ;;  %v4180_v9 = vld [vmem:[%s6406_s27 + $0x110] sm:$0xff] }
 0x78f   : > { %v4280_v1 = vunpack.c.h.s8.bf16 %v4180_v9  ;;  %v4276_v23 = vunpack.c.l.s8.bf16 %v4180_v9 }
 0x791   : > { %4443 = vmatpush2.bf16.msra.mxu1 %v4260_v56  ;;  %v4277_v56 = vunpack.c.l.s8.bf16 %v4181_v19 }
 0x792   : > { %4444 = vmatprep.subr.bf16.mxu1 %v4257_v17  ;;  %v4209_v17 = vld [vmem:[%s6406_s27 + $0x1f8] sm:$0xff] }
 0x795   : > { %4445 = vmatpush2.bf16.msra.mxu1 %v4256_v24  ;;  %v4337_v24 = vunpack.c.h.s8.bf16 %v4209_v17 }
 0x796   : > { %v4038_v27 = vpop.f32.mrf.mxu1  ;;  %4446 = vmatprep.subr.bf16.mxu1 %v4253_v25  ;;  %v4208_v25 = vld [vmem:[%s6406_s27 + $0x1f0] sm:$0xff] }
 0x797   : > { %v4039_v48 = vadd.f32 %v4038_v27, %v7176_v55  ;;  %v4336_v43 = vunpack.c.h.s8.bf16 %v4208_v25  ;;  %v4205_v27 = vld [vmem:[%s6406_s27 + $0x1d8] sm:$0xff] }
 0x798   : > { %v4040_v38 = vpop.f32.mrf.mxu1  ;;  %v7190_v29 = vpop.eup %6139  ;;  %v4329_v28 = vunpack.c.h.s8.bf16 %v4205_v27 }
 0x799   : > { %4447 = vmatpush2.bf16.msra.mxu1 %v4252_v59  ;;  %v3538_v32 = vsel %vm3531_vm3, %v7190_v29, 0.0  ;;  %v4041_v37 = vadd.f32 %v4040_v38, %v7179_v50  ;;  %v4333_v59 = vunpack.c.l.s8.bf16 %v4209_v17  ;;  %v4204_v38 = vld [vmem:[%s6406_s27 + $0x1d0] sm:$0xff] }
 0x79a   : > { %4448 = vmatprep.subr.bf16.mxu1 %v4249_v31  ;;  %v4042_v33 = vpop.f32.mrf.mxu1  ;;  %3539 = vadd.xlane.f32.xlu0 %v3538_v32  ;;  %v4332_v31 = vunpack.c.l.s8.bf16 %v4208_v25  ;;  %v4325_v32 = vunpack.c.l.s8.bf16 %v4205_v27 }
 0x79b   : > { %v4324_v33 = vunpack.c.l.s8.bf16 %v4204_v38 }
 0x79c   : > { %v4043_v45 = vpop.f32.mrf.mxu1 }
 0x79d   : > { %4449 = vmatpush2.bf16.msra.mxu1 %v4248_v15  ;;  %v4328_v15 = vunpack.c.h.s8.bf16 %v4204_v38 }
 0x79e   : > { %4450 = vmatprep.subr.bf16.mxu1 %v4245_v49  ;;  %v4201_v49 = vld [vmem:[%s6406_s27 + $0x1b8] sm:$0xff] }
 0x79f   : > { %v4321_v45 = vunpack.c.h.s8.bf16 %v4201_v49 }
 0x7a1   : > { %4451 = vmatpush2.bf16.msra.mxu1 %v4244_v34  ;;  %v4200_v34 = vld [vmem:[%s6406_s27 + $0x1b0] sm:$0xff] }
 0x7a4   : > { %4453 = vmatmul.mubr.bf16.vlgmr.msra.gmra.mxu1 %v7167_v35  ;;  %v4103_v35 = vrot.slane %v7144_v11, %v7199_v40 }
 0x7b5   : > { %v4079_v46 = vpop.f32.mrf.mxu0 }
 0x7b6   : > { %v4080_v21 = vadd.f32 %v4079_v46, %v4039_v48  ;;  %v4320_v48 = vunpack.c.h.s8.bf16 %v4200_v34  ;;  %v4197_v46 = vld [vmem:[%s6406_s27 + $0x198] sm:$0xff] }
 0x7b7   : > { %v4081_v51 = vpop.f32.mrf.mxu0 }
 0x7b8   : > { %v4110_v44 = vmul.f32 %v4099_v10, %v4080_v21  ;;  %v4082_v30 = vadd.f32 %v4081_v51, %v4041_v37  ;;  %v4317_v10 = vunpack.c.l.s8.bf16 %v4201_v49  ;;  %v4316_v37 = vunpack.c.l.s8.bf16 %v4200_v34 }
 0x7b9   : > { %v4083_v53 = vpop.f32.mrf.mxu0  ;;  %v4313_v21 = vunpack.c.h.s8.bf16 %v4197_v46  ;;  %v4309_v51 = vunpack.c.l.s8.bf16 %v4197_v46 }
 0x7ba   : > { %v4136_v54 = vadd.f32 %v4125_v47, %v4110_v44  ;;  %v4111_v55 = vmul.f32 %v4103_v35, %v4082_v30  ;;  %v4196_v47 = vld [vmem:[%s6406_s27 + $0x190] sm:$0xff] }
 0x7bb   : > { %v4084_v58 = vpop.f32.mrf.mxu0  ;;  %v4312_v35 = vunpack.c.h.s8.bf16 %v4196_v47  ;;  %v4308_v44 = vunpack.c.l.s8.bf16 %v4196_v47 }
 0x7bc   : > { %v4137_v57 = vadd.f32 %v4129_v52, %v4111_v55  ;;  %v4140_v50 = vmax.f32 %v4136_v54, 0.0  ;;  %v3545_v58 = vand.u32 127, %v2987_v26  ;;  %v4502_v26 = vld [vmem:[%s1382_s23] sm:$0xf] }
 0x7be   : > { %v4141_v60 = vmax.f32 %v4137_v57, 0.0  ;;  %v7212_v11 = vpack.c.bf16 %v4140_v50, %v4140_v50  ;;  %v3546_v57 = vstv %s7830_s29 }
 0x7bf   : > { %vm3547_vm4 = vcmp.eq.s32.totalorder %v3545_v58, %v3546_v57 }
 0x7c0   : > { %v4145_v61 = vpack.c.bf16 %v4141_v60, %v4141_v60 }
 0x7c2   : > { %4411 = vmatprep.mubr.bf16.mxu0 %v4145_v61 }
 0x7c3   : > { %4412 = vmatmul.mubr.bf16.vlgmr.msra.gmra.mxu0 %v7212_v11 }
 0x7c4   : > { %4462 = vmatpush1.bf16.msra.mxu0 %v4304_v62  ;;  %4493 = vmatprep.mubr.bf16.mxu0 %v4145_v61 }
 0x7c5   : > { %4463 = vmatprep.subr.bf16.mxu0 %v4301_v63 }
 0x7c8   : > { %4464 = vmatpush1.bf16.msra.mxu0 %v4300_v41 }
 0x7c9   : > { %4465 = vmatprep.subr.bf16.mxu0 %v4297_v3 }
 0x7cc   : > { %4466 = vmatpush1.bf16.msra.mxu0 %v4296_v4 }
 0x7cd   : > { %4467 = vmatprep.subr.bf16.mxu0 %v4293_v5 }
 0x7d0   : > { %4468 = vmatpush1.bf16.msra.mxu0 %v4292_v12  ;;  %v4511_v12 = vrot.slane %v4502_v26, %v7147_v39 }
 0x7d1   : > { %4469 = vmatprep.subr.bf16.mxu0 %v4289_v7  ;;  %v4528_v7 = vld [vmem:[%s1396_s25] sm:$0xf] }
 0x7d2   : > { %v4537_v19 = vrot.slane %v4528_v7, %v7147_v39 }
 0x7d4   : > { %4470 = vmatpush1.bf16.msra.mxu0 %v4288_v13  ;;  %v4533_v13 = vrot.slane %v4528_v7, %v7137_v14 }
 0x7d5   : > { %4471 = vmatprep.subr.bf16.mxu0 %v4285_v18 }
 0x7d8   : > { %4472 = vmatpush1.bf16.msra.mxu0 %v4284_v20 }
 0x7d9   : > { %4473 = vmatprep.subr.bf16.mxu0 %v4281_v0 }
 0x7dc   : > { %4474 = vmatpush1.bf16.msra.mxu0 %v4280_v1 }
 0x7dd   : > { %4475 = vmatprep.subr.bf16.mxu0 %v4277_v56 }
 0x7e0   : > { %4476 = vmatpush1.bf16.msra.mxu0 %v4276_v23  ;;  %v4515_v23 = vrot.slane %v4502_v26, %v7196_v16 }
 0x7e1   : > { %4477 = vmatprep.subr.bf16.mxu0 %v4337_v24 }
 0x7e4   : > { %4478 = vmatpush2.bf16.msra.mxu0 %v4336_v43  ;;  %v4541_v43 = vrot.slane %v4528_v7, %v7196_v16  ;;  %v4554_v16 = vld [vmem:[#allocation3] sm:$0xff] }
 0x7e5   : > { %4479 = vmatprep.subr.bf16.mxu0 %v4333_v59  ;;  %v4519_v59 = vrot.slane %v4502_v26, %v7199_v40 }
 0x7e8   : > { %4480 = vmatpush2.bf16.msra.mxu0 %v4332_v31 }
 0x7e9   : > { %4481 = vmatprep.subr.bf16.mxu0 %v4329_v28  ;;  %v4545_v28 = vrot.slane %v4528_v7, %v7199_v40 }
 0x7ec   : > { %4482 = vmatpush2.bf16.msra.mxu0 %v4328_v15 }
 0x7ed   : > { %4483 = vmatprep.subr.bf16.mxu0 %v4325_v32 }
 0x7f0   : > { %4484 = vmatpush2.bf16.msra.mxu0 %v4324_v33 }
 0x7f1   : > { %4485 = vmatprep.subr.bf16.mxu0 %v4321_v45 }
 0x7f4   : > { %4486 = vmatpush2.bf16.msra.mxu0 %v4320_v48 }
 0x7f5   : > { %4487 = vmatprep.subr.bf16.mxu0 %v4317_v10 }
 0x7f8   : > { %4488 = vmatpush2.bf16.msra.mxu0 %v4316_v37 }
 0x7f9   : > { %4489 = vmatprep.subr.bf16.mxu0 %v4313_v21 }
 0x7fc   : > { %4490 = vmatpush2.bf16.msra.mxu0 %v4312_v35 }
 0x7fd   : > { %4491 = vmatprep.subr.bf16.mxu0 %v4309_v51 }
 0x800   : > { %4492 = vmatpush2.bf16.msra.mxu0 %v4308_v44 }
 0x803   : > { %4494 = vmatmul.mubr.bf16.vlgmr.msra.gmra.mxu0 %v7212_v11 }
 0x823   : > { %v3540_v52 = vpop.xlane.xlu0 %3539 }
 0x824   : > { %v4372_v30 = vpop.f32.mrf.mxu1  ;;  %6141 = vrcp.f32 %v3540_v52 }
 0x826   : > { %v4374_v53 = vpop.f32.mrf.mxu1 }
 0x828   : > { %v4376_v54 = vpop.f32.mrf.mxu1 }
 0x82a   : > { %v4377_v55 = vpop.f32.mrf.mxu1 }
 0x831   : > { %v6142_v50 = vpop.eup %6141 }
 0x832   : > { %v3542_v22 = vmul.f32 %v6142_v50, %v7190_v29  ;;  %v4507_v29 = vrot.slane %v4502_v26, %v7137_v14 }
 0x834   : > { %v3548_v60 = vsel %vm3547_vm4, %v3542_v22, 0.0 }
 0x835   : > { %v3549_v61 = vsel %vm3531_vm3, %v3548_v60, 0.0 }
 0x836   : > { %3550 = vadd.xlane.f32.xlu1 %v3549_v61 }
 0x864   : > { %v4454_v62 = vpop.f32.mrf.mxu1 }
 0x866   : > { %v4456_v11 = vpop.f32.mrf.mxu1 }
 0x868   : > { %v4458_v63 = vpop.f32.mrf.mxu1 }
 0x86a   : > { %v4459_v2 = vpop.f32.mrf.mxu1 }
 0x883   : > { %v4413_v41 = vpop.f32.mrf.mxu0 }
 0x884   : > { %v4414_v5 = vadd.f32 %v4413_v41, %v4372_v30 }
 0x885   : > { %v4415_v3 = vpop.f32.mrf.mxu0 }
 0x886   : > { %v4416_v6 = vadd.f32 %v4415_v3, %v4374_v53  ;;  %v4524_v8 = vmul.f32 %v4507_v29, %v4414_v5 }
 0x887   : > { %v4417_v42 = vpop.f32.mrf.mxu0 }
 0x888   : > { %v4525_v18 = vmul.f32 %v4511_v12, %v4416_v6  ;;  %v4550_v20 = vadd.f32 %v4533_v13, %v4524_v8 }
 0x889   : > { %v4418_v4 = vpop.f32.mrf.mxu0 }
 0x88a   : > { %v4551_v0 = vadd.f32 %v4537_v19, %v4525_v18 }
 0x8bf   : > { %v3551_v9 = vpop.xlane.xlu1 %3550 }
 0x8c0   : > { %v4555_v1 = vmul.f32 %v4550_v20, %v3551_v9  ;;  %v4556_v56 = vmul.f32 %v4551_v0, %v3551_v9 }
 0x8c2   : > { %v4563_v17 = vcombine.low %v4555_v1, %v4556_v56 }
 0x8c3   : > { %v4495_v24 = vpop.f32.mrf.mxu0 }
 0x8c4   : > { %v4496_v25 = vadd.f32 %v4495_v24, %v4454_v62  ;;  %v4571_v48 = vrot.slane %v4563_v17, %v6899_v36 }
 0x8c5   : > { %v4497_v27 = vpop.f32.mrf.mxu0 }
 0x8c6   : > { %v4526_v31 = vmul.f32 %v4515_v23, %v4496_v25  ;;  %v4498_v14 = vadd.f32 %v4497_v27, %v4456_v11 }
 0x8c7   : > { %v4499_v39 = vpop.f32.mrf.mxu0 }
 0x8c8   : > { %v4552_v38 = vadd.f32 %v4541_v43, %v4526_v31  ;;  %v4527_v15 = vmul.f32 %v4519_v59, %v4498_v14 }
 0x8c9   : > { %v4500_v32 = vpop.f32.mrf.mxu0 }
 0x8ca   : > { %v4553_v49 = vadd.f32 %v4545_v28, %v4527_v15  ;;  %v4557_v33 = vmul.f32 %v4552_v38, %v3551_v9 }
 0x8cc   : > { %v4558_v45 = vmul.f32 %v4553_v49, %v3551_v9 }
 0x8ce   : > { %v4564_v34 = vcombine.low %v4557_v33, %v4558_v45 }
 0x8d0   : > { %v4578_v10 = vrot.slane %v4564_v34, %v6899_v36 }
 0x8d2   : > { %v4579_v46 = vcombine.low %v4571_v48, %v4578_v10 }
 0x8d4   : > { %v4581_v37 = vadd.f32 %v4579_v46, %v4554_v16 }
 0x8d6   : > { %4582 = vst [vmem:[#allocation3] sm:$0xff] %v4581_v37 }
 0x8d7 PF: > { %s7833_s23 = sld [smem:[#allocation8_spill]] }
 0x8dd   : > { %p5935_p12 = scmp.ne.s32.totalorder %s7833_s23, 7 }
 0x8de   : > { %s7834_s21 = sld [smem:[#allocation27_spill]] (!%p5935_p12) }
 0x8df   : > { %4586 = sbr.rel (%p5935_p12) target bundleno = 2744 (0xab8), region = 140  ;;  %s7835_s2 = sld [smem:[#allocation28_spill]] (!%p5935_p12) }
 0x8e0   : > { %s7836_s15 = sld [smem:[#allocation29_spill]] (!%p5935_p12) }
 0x8e4   : > { %v4639_v40 = vld [vmem:[%s7834_s21 + $0xc8] sm:$0xff]  ;;  %v4638_v36 = vld [vmem:[%s7834_s21 + $0xc0] sm:$0xff]  ;;  %v4593_v12 = vlaneseq  ;;  %v6187_v20 = vmov 1983009808  }
 0x8e5   : > { %v4703_v21 = vld [vmem:[%s7834_s21 + $0x2c8] sm:$0xff]  ;;  %v4791_v47 = vunpack.c.l.s8.bf16 %v4639_v40  ;;  %v4799_v35 = vunpack.c.h.s8.bf16 %v4639_v40  ;;  %v4702_v30 = vld [vmem:[%s7834_s21 + $0x2c0] sm:$0xff]  ;;  %v4798_v52 = vunpack.c.h.s8.bf16 %v4638_v36  ;;  %v4790_v58 = vunpack.c.l.s8.bf16 %v4638_v36 }
 0x8e6   : > { %v4919_v51 = vunpack.c.l.s8.bf16 %v4703_v21  ;;  %v4927_v44 = vunpack.c.h.s8.bf16 %v4703_v21  ;;  %v4926_v53 = vunpack.c.h.s8.bf16 %v4702_v30  ;;  %v4631_v54 = vld [vmem:[%s7834_s21 + $0x88] sm:$0xff]  ;;  %v4918_v57 = vunpack.c.l.s8.bf16 %v4702_v30  ;;  %v4630_v60 = vld [vmem:[%s7834_s21 + $0x80] sm:$0xff] }
 0x8e7   : > { %v4695_v55 = vld [vmem:[%s7834_s21 + $0x288] sm:$0xff]  ;;  %4998 = vmatprep.subr.bf16.mxu0 %v4799_v35  ;;  %v4783_v50 = vunpack.c.h.s8.bf16 %v4631_v54  ;;  %v4694_v61 = vld [vmem:[%s7834_s21 + $0x280] sm:$0xff]  ;;  %v4782_v62 = vunpack.c.h.s8.bf16 %v4630_v60  ;;  %v4775_v63 = vunpack.c.l.s8.bf16 %v4631_v54  ;;  %v4774_v42 = vunpack.c.l.s8.bf16 %v4630_v60 }
 0x8e8   : > { %5039 = vmatprep.subr.bf16.mxu1 %v4927_v44  ;;  %4999 = vmatpush1.bf16.msra.mxu0 %v4798_v52  ;;  %v4911_v22 = vunpack.c.h.s8.bf16 %v4695_v55  ;;  %v4910_v11 = vunpack.c.h.s8.bf16 %v4694_v61  ;;  %v4903_v2 = vunpack.c.l.s8.bf16 %v4695_v55  ;;  %v4623_v41 = vld [vmem:[%s7834_s21 + $0x48] sm:$0xff]  ;;  %v4902_v4 = vunpack.c.l.s8.bf16 %v4694_v61  ;;  %v4622_v29 = vld [vmem:[%s7834_s21 + $0x40] sm:$0xff] }
 0x8e9   : > { %5040 = vmatpush1.bf16.msra.mxu1 %v4926_v53  ;;  %5000 = vmatprep.subr.bf16.mxu0 %v4791_v47  ;;  %v4687_v3 = vld [vmem:[%s7834_s21 + $0x248] sm:$0xff]  ;;  %v4767_v26 = vunpack.c.h.s8.bf16 %v4623_v41  ;;  %v4686_v6 = vld [vmem:[%s7834_s21 + $0x240] sm:$0xff]  ;;  %v4766_v7 = vunpack.c.h.s8.bf16 %v4622_v29  ;;  %v4759_v18 = vunpack.c.l.s8.bf16 %v4623_v41  ;;  %v4591_v0 = vunpack.c.l.s4 %v6187_v20 }
 0x8ea   : > { %5041 = vmatprep.subr.bf16.mxu1 %v4919_v51  ;;  %v4895_v5 = vunpack.c.h.s8.bf16 %v4687_v3  ;;  %v4894_v8 = vunpack.c.h.s8.bf16 %v4686_v6  ;;  %v4587_v13 = vld [vmem:[#allocation3] sm:$0xff]  ;;  %v4887_v19 = vunpack.c.l.s8.bf16 %v4687_v3  ;;  %v7292_v9 = vshrl.u32 %v4593_v12, 7  ;;  %v4614_v27 = vld [vmem:[%s7834_s21] sm:$0xff] }
 0x8eb   : > { %v4615_v1 = vld [vmem:[%s7834_s21 + $0x8] sm:$0xff]  ;;  %v4592_v17 = vunpack.c.0.s8 %v4591_v0  ;;  %v4589_v23 = vcombine.high %v4587_v13, %v4587_v13  ;;  %v4758_v24 = vunpack.c.l.s8.bf16 %v4622_v29  ;;  %v4886_v25 = vunpack.c.l.s8.bf16 %v4686_v6  ;;  %v4678_v31 = vld [vmem:[%s7834_s21 + $0x200] sm:$0xff] }
 0x8ec   : > { %5001 = vmatpush1.bf16.msra.mxu0 %v4790_v58  ;;  %v4679_v56 = vld [vmem:[%s7834_s21 + $0x208] sm:$0xff]  ;;  %v4751_v43 = vunpack.c.h.s8.bf16 %v4615_v1  ;;  %v4750_v38 = vunpack.c.h.s8.bf16 %v4614_v27  ;;  %v4878_v15 = vunpack.c.h.s8.bf16 %v4678_v31  ;;  %v4743_v32 = vunpack.c.l.s8.bf16 %v4615_v1  ;;  %v4670_v36 = vld [vmem:[%s7834_s21 + $0x1c0] sm:$0xff] }
 0x8ed   : > { %5042 = vmatpush1.bf16.msra.mxu1 %v4918_v57  ;;  %5002 = vmatprep.subr.bf16.mxu0 %v4783_v50  ;;  %v4879_v59 = vunpack.c.h.s8.bf16 %v4679_v56  ;;  %v7307_v14 = vsub.s32 %v4592_v17, %v7292_v9  ;;  %v4871_v49 = vunpack.c.l.s8.bf16 %v4679_v56  ;;  %v4671_v34 = vld [vmem:[%s7834_s21 + $0x1c8] sm:$0xff]  ;;  %v4742_v46 = vunpack.c.l.s8.bf16 %v4614_v27  ;;  %v4734_v47 = vld [vmem:[%s7834_s21 + $0x3c0] sm:$0xff] }
 0x8ee   : > { %5043 = vmatprep.subr.bf16.mxu1 %v4911_v22  ;;  %v4735_v48 = vld [vmem:[%s7834_s21 + $0x3c8] sm:$0xff]  ;;  %v4870_v37 = vunpack.c.l.s8.bf16 %v4678_v31  ;;  %v4863_v40 = vunpack.c.h.s8.bf16 %v4671_v34  ;;  %v4862_v35 = vunpack.c.h.s8.bf16 %v4670_v36  ;;  %v4990_v51 = vunpack.c.h.s8.bf16 %v4734_v47  ;;  %v4662_v50 = vld [vmem:[%s7834_s21 + $0x180] sm:$0xff] }
 0x8ef   : > { %v7310_v28 = vrot.slane %v4587_v13, %v7307_v14  ;;  %v7313_v39 = vrot.slane %v4589_v23, %v7307_v14  ;;  %v4991_v21 = vunpack.c.h.s8.bf16 %v4735_v48  ;;  %v4855_v44 = vunpack.c.l.s8.bf16 %v4671_v34  ;;  %v4663_v52 = vld [vmem:[%s7834_s21 + $0x188] sm:$0xff]  ;;  %v4726_v22 = vld [vmem:[%s7834_s21 + $0x380] sm:$0xff] }
 0x8f0   : > { %5003 = vmatpush1.bf16.msra.mxu0 %v4782_v62  ;;  %v4983_v30 = vunpack.c.l.s8.bf16 %v4735_v48  ;;  %v4727_v53 = vld [vmem:[%s7834_s21 + $0x388] sm:$0xff]  ;;  %v4854_v54 = vunpack.c.l.s8.bf16 %v4670_v36  ;;  %v4982_v55 = vunpack.c.l.s8.bf16 %v4734_v47  ;;  %v4847_v58 = vunpack.c.h.s8.bf16 %v4663_v52  ;;  %v4646_v1 = vld [vmem:[%s7834_s21 + $0x100] sm:$0xff] }
 0x8f1   : > { %5044 = vmatpush1.bf16.msra.mxu1 %v4910_v11  ;;  %5004 = vmatprep.subr.bf16.mxu0 %v4775_v63  ;;  %v4604_v33 = vcombine.high %v7310_v28, %v7310_v28  ;;  %v4605_v45 = vcombine.high %v7313_v39, %v7313_v39  ;;  %v4975_v57 = vunpack.c.h.s8.bf16 %v4727_v53  ;;  %v4846_v60 = vunpack.c.h.s8.bf16 %v4662_v50  ;;  %v4655_v63 = vld [vmem:[%s7834_s21 + $0x148] sm:$0xff]  ;;  %v4710_v56 = vld [vmem:[%s7834_s21 + $0x300] sm:$0xff] }
 0x8f2   : > { %5045 = vmatprep.subr.bf16.mxu1 %v4903_v2  ;;  %v4974_v61 = vunpack.c.h.s8.bf16 %v4726_v22  ;;  %v4839_v62 = vunpack.c.l.s8.bf16 %v4663_v52  ;;  %v4967_v11 = vunpack.c.l.s8.bf16 %v4727_v53  ;;  %v4719_v2 = vld [vmem:[%s7834_s21 + $0x348] sm:$0xff]  ;;  %v4838_v41 = vunpack.c.l.s8.bf16 %v4662_v50 }
 0x8f3   : > { %v7325_v10 = vpack.c.bf16 %v4604_v33, %v4604_v33  ;;  %v7327_v16 = vpack.c.bf16 %v4605_v45, %v4605_v45  ;;  %v4966_v3 = vunpack.c.l.s8.bf16 %v4726_v22  ;;  %v4823_v12 = vunpack.c.l.s8.bf16 %v4655_v63  ;;  %v4711_v13 = vld [vmem:[%s7834_s21 + $0x308] sm:$0xff] }
 0x8f4   : > { %5005 = vmatpush1.bf16.msra.mxu0 %v4774_v42  ;;  %v4831_v42 = vunpack.c.h.s8.bf16 %v4655_v63  ;;  %v4943_v0 = vunpack.c.h.s8.bf16 %v4711_v13  ;;  %v4814_v17 = vunpack.c.h.s8.bf16 %v4646_v1  ;;  %v4942_v23 = vunpack.c.h.s8.bf16 %v4710_v56 }
 0x8f5   : > { %5046 = vmatpush1.bf16.msra.mxu1 %v4902_v4  ;;  %5006 = vmatprep.subr.bf16.mxu0 %v4767_v26  ;;  %v4959_v4 = vunpack.c.h.s8.bf16 %v4719_v2  ;;  %v4654_v26 = vld [vmem:[%s7834_s21 + $0x140] sm:$0xff]  ;;  %v4806_v27 = vunpack.c.l.s8.bf16 %v4646_v1  ;;  %v4934_v31 = vunpack.c.l.s8.bf16 %v4710_v56  ;;  %v7387_v33 = vpack.c.bf16 %v7310_v28, %v7310_v28  ;;  %v4697_v28 = vld [vmem:[%s7834_s21 + $0x298] sm:$0xff] }
 0x8f6   : > { %5047 = vmatprep.subr.bf16.mxu1 %v4895_v5  ;;  %5030 = vmatprep.mubr.bf16.mxu0 %v7325_v10  ;;  %v4718_v5 = vld [vmem:[%s7834_s21 + $0x340] sm:$0xff]  ;;  %v4830_v29 = vunpack.c.h.s8.bf16 %v4654_v26  ;;  %v7391_v45 = vpack.c.bf16 %v7313_v39, %v7313_v39  ;;  %v4913_v47 = vunpack.c.h.s8.bf16 %v4697_v28  ;;  %v4905_v53 = vunpack.c.l.s8.bf16 %v4697_v28 }
 0x8f7   : > { %5071 = vmatprep.mubr.bf16.mxu1 %v7327_v16  ;;  %v4958_v6 = vunpack.c.h.s8.bf16 %v4718_v5 }
 0x8f8   : > { %5007 = vmatpush1.bf16.msra.mxu0 %v4766_v7  ;;  %v4951_v7 = vunpack.c.l.s8.bf16 %v4719_v2 }
 0x8f9   : > { %5048 = vmatpush1.bf16.msra.mxu1 %v4894_v8  ;;  %5008 = vmatprep.subr.bf16.mxu0 %v4759_v18  ;;  %v4647_v8 = vld [vmem:[%s7834_s21 + $0x108] sm:$0xff]  ;;  %v4822_v18 = vunpack.c.l.s8.bf16 %v4654_v26 }
 0x8fa   : > { %5049 = vmatprep.subr.bf16.mxu1 %v4887_v19  ;;  %v4950_v19 = vunpack.c.l.s8.bf16 %v4718_v5  ;;  %v4815_v20 = vunpack.c.h.s8.bf16 %v4647_v8 }
 0x8fc   : > { %5009 = vmatpush1.bf16.msra.mxu0 %v4758_v24  ;;  %v4807_v24 = vunpack.c.l.s8.bf16 %v4647_v8 }
 0x8fd   : > { %5050 = vmatpush1.bf16.msra.mxu1 %v4886_v25  ;;  %5010 = vmatprep.subr.bf16.mxu0 %v4751_v43  ;;  %v4935_v25 = vunpack.c.l.s8.bf16 %v4711_v13  ;;  %v4641_v43 = vld [vmem:[%s7834_s21 + $0xd8] sm:$0xff] }
 0x8fe   : > { %5051 = vmatprep.subr.bf16.mxu1 %v4879_v59  ;;  %v4705_v59 = vld [vmem:[%s7834_s21 + $0x2d8] sm:$0xff] }
 0x900   : > { %5011 = vmatpush1.bf16.msra.mxu0 %v4750_v38  ;;  %v4801_v38 = vunpack.c.h.s8.bf16 %v4641_v43 }
 0x901   : > { %5052 = vmatpush1.bf16.msra.mxu1 %v4878_v15  ;;  %5012 = vmatprep.subr.bf16.mxu0 %v4743_v32  ;;  %v4929_v15 = vunpack.c.h.s8.bf16 %v4705_v59  ;;  %v4640_v32 = vld [vmem:[%s7834_s21 + $0xd0] sm:$0xff] }
 0x902   : > { %5053 = vmatprep.subr.bf16.mxu1 %v4871_v49  ;;  %v4704_v49 = vld [vmem:[%s7834_s21 + $0x2d0] sm:$0xff]  ;;  %v4800_v34 = vunpack.c.h.s8.bf16 %v4640_v32  ;;  %v4792_v39 = vunpack.c.l.s8.bf16 %v4640_v32 }
 0x903   : > { %v4928_v48 = vunpack.c.h.s8.bf16 %v4704_v49 }
 0x904   : > { %5013 = vmatpush1.bf16.msra.mxu0 %v4742_v46  ;;  %v4793_v46 = vunpack.c.l.s8.bf16 %v4641_v43 }
 0x905   : > { %5054 = vmatpush1.bf16.msra.mxu1 %v4870_v37  ;;  %5014 = vmatprep.subr.bf16.mxu0 %v4863_v40  ;;  %v4921_v37 = vunpack.c.l.s8.bf16 %v4705_v59  ;;  %v4633_v40 = vld [vmem:[%s7834_s21 + $0x98] sm:$0xff] }
 0x906   : > { %5055 = vmatprep.subr.bf16.mxu1 %v4991_v21  ;;  %v4920_v21 = vunpack.c.l.s8.bf16 %v4704_v49  ;;  %v4785_v36 = vunpack.c.h.s8.bf16 %v4633_v40  ;;  %v4777_v52 = vunpack.c.l.s8.bf16 %v4633_v40 }
 0x908   : > { %5015 = vmatpush2.bf16.msra.mxu0 %v4862_v35  ;;  %v4632_v35 = vld [vmem:[%s7834_s21 + $0x90] sm:$0xff] }
 0x909   : > { %5056 = vmatpush2.bf16.msra.mxu1 %v4990_v51  ;;  %5016 = vmatprep.subr.bf16.mxu0 %v4855_v44  ;;  %v4696_v51 = vld [vmem:[%s7834_s21 + $0x290] sm:$0xff]  ;;  %v4784_v44 = vunpack.c.h.s8.bf16 %v4632_v35 }
 0x90a   : > { %5057 = vmatprep.subr.bf16.mxu1 %v4983_v30  ;;  %v4912_v30 = vunpack.c.h.s8.bf16 %v4696_v51 }
 0x90c   : > { %5017 = vmatpush2.bf16.msra.mxu0 %v4854_v54  ;;  %v4625_v54 = vld [vmem:[%s7834_s21 + $0x58] sm:$0xff] }
 0x90d   : > { %5058 = vmatpush2.bf16.msra.mxu1 %v4982_v55  ;;  %5018 = vmatprep.subr.bf16.mxu0 %v4847_v58  ;;  %v4689_v55 = vld [vmem:[%s7834_s21 + $0x258] sm:$0xff]  ;;  %v4776_v58 = vunpack.c.l.s8.bf16 %v4632_v35  ;;  %v4769_v50 = vunpack.c.h.s8.bf16 %v4625_v54  ;;  %v4761_v63 = vunpack.c.l.s8.bf16 %v4625_v54 }
 0x90e   : > { %5059 = vmatprep.subr.bf16.mxu1 %v4975_v57  ;;  %v4904_v57 = vunpack.c.l.s8.bf16 %v4696_v51  ;;  %v4897_v22 = vunpack.c.h.s8.bf16 %v4689_v55  ;;  %v4889_v2 = vunpack.c.l.s8.bf16 %v4689_v55 }
 0x910   : > { %5019 = vmatpush2.bf16.msra.mxu0 %v4846_v60  ;;  %v4624_v60 = vld [vmem:[%s7834_s21 + $0x50] sm:$0xff] }
 0x911   : > { %5060 = vmatpush2.bf16.msra.mxu1 %v4974_v61  ;;  %5020 = vmatprep.subr.bf16.mxu0 %v4839_v62  ;;  %v4688_v61 = vld [vmem:[%s7834_s21 + $0x250] sm:$0xff]  ;;  %v4768_v62 = vunpack.c.h.s8.bf16 %v4624_v60 }
 0x912   : > { %5061 = vmatprep.subr.bf16.mxu1 %v4967_v11  ;;  %v4896_v11 = vunpack.c.h.s8.bf16 %v4688_v61 }
 0x914   : > { %5021 = vmatpush2.bf16.msra.mxu0 %v4838_v41  ;;  %v4617_v41 = vld [vmem:[%s7834_s21 + $0x18] sm:$0xff] }
 0x915   : > { %5062 = vmatpush2.bf16.msra.mxu1 %v4966_v3  ;;  %5022 = vmatprep.subr.bf16.mxu0 %v4831_v42  ;;  %v4681_v3 = vld [vmem:[%s7834_s21 + $0x218] sm:$0xff]  ;;  %v4760_v42 = vunpack.c.l.s8.bf16 %v4624_v60  ;;  %v4753_v26 = vunpack.c.h.s8.bf16 %v4617_v41  ;;  %v4745_v8 = vunpack.c.l.s8.bf16 %v4617_v41 }
 0x916   : > { %5063 = vmatprep.subr.bf16.mxu1 %v4959_v4  ;;  %v4888_v4 = vunpack.c.l.s8.bf16 %v4688_v61  ;;  %v4881_v5 = vunpack.c.h.s8.bf16 %v4681_v3  ;;  %v4873_v13 = vunpack.c.l.s8.bf16 %v4681_v3 }
 0x918   : > { %5023 = vmatpush2.bf16.msra.mxu0 %v4830_v29  ;;  %v4616_v29 = vld [vmem:[%s7834_s21 + $0x10] sm:$0xff] }
 0x919   : > { %5064 = vmatpush2.bf16.msra.mxu1 %v4958_v6  ;;  %5024 = vmatprep.subr.bf16.mxu0 %v4823_v12  ;;  %v4680_v6 = vld [vmem:[%s7834_s21 + $0x210] sm:$0xff]  ;;  %v4752_v12 = vunpack.c.h.s8.bf16 %v4616_v29 }
 0x91a   : > { %5065 = vmatprep.subr.bf16.mxu1 %v4951_v7  ;;  %v4880_v7 = vunpack.c.h.s8.bf16 %v4680_v6 }
 0x91c   : > { %5025 = vmatpush2.bf16.msra.mxu0 %v4822_v18  ;;  %v4673_v18 = vld [vmem:[%s7834_s21 + $0x1d8] sm:$0xff] }
 0x91d   : > { %5066 = vmatpush2.bf16.msra.mxu1 %v4950_v19  ;;  %5026 = vmatprep.subr.bf16.mxu0 %v4815_v20  ;;  %v4737_v19 = vld [vmem:[%s7834_s21 + $0x3d8] sm:$0xff]  ;;  %v4744_v20 = vunpack.c.l.s8.bf16 %v4616_v29  ;;  %v4865_v1 = vunpack.c.h.s8.bf16 %v4673_v18  ;;  %v4857_v43 = vunpack.c.l.s8.bf16 %v4673_v18 }
 0x91e   : > { %5067 = vmatprep.subr.bf16.mxu1 %v4943_v0  ;;  %v4872_v0 = vunpack.c.l.s8.bf16 %v4680_v6  ;;  %v4993_v56 = vunpack.c.h.s8.bf16 %v4737_v19  ;;  %v4985_v59 = vunpack.c.l.s8.bf16 %v4737_v19 }
 0x920   : > { %5027 = vmatpush2.bf16.msra.mxu0 %v4814_v17  ;;  %v4672_v17 = vld [vmem:[%s7834_s21 + $0x1d0] sm:$0xff] }
 0x921   : > { %5068 = vmatpush2.bf16.msra.mxu1 %v4942_v23  ;;  %5028 = vmatprep.subr.bf16.mxu0 %v4807_v24  ;;  %v4736_v23 = vld [vmem:[%s7834_s21 + $0x3d0] sm:$0xff]  ;;  %v4864_v24 = vunpack.c.h.s8.bf16 %v4672_v17 }
 0x922   : > { %5069 = vmatprep.subr.bf16.mxu1 %v4935_v25  ;;  %v4992_v25 = vunpack.c.h.s8.bf16 %v4736_v23 }
 0x924   : > { %5029 = vmatpush2.bf16.msra.mxu0 %v4806_v27  ;;  %v4665_v27 = vld [vmem:[%s7834_s21 + $0x198] sm:$0xff] }
 0x925   : > { %5070 = vmatpush2.bf16.msra.mxu1 %v4934_v31  ;;  %5080 = vmatprep.subr.bf16.mxu0 %v4801_v38  ;;  %v4729_v31 = vld [vmem:[%s7834_s21 + $0x398] sm:$0xff]  ;;  %v4856_v38 = vunpack.c.l.s8.bf16 %v4672_v17  ;;  %v4849_v32 = vunpack.c.h.s8.bf16 %v4665_v27  ;;  %v4841_v40 = vunpack.c.l.s8.bf16 %v4665_v27 }
 0x926   : > { %5121 = vmatprep.subr.bf16.mxu1 %v4929_v15  ;;  %v4984_v15 = vunpack.c.l.s8.bf16 %v4736_v23  ;;  %v4977_v49 = vunpack.c.h.s8.bf16 %v4729_v31  ;;  %v4969_v28 = vunpack.c.l.s8.bf16 %v4729_v31 }
 0x927   : > { %5031 = vmatmul.mubr.bf16.vlgmr.msra.gmra.mxu0 %v7387_v33 }
 0x928   : > { %5072 = vmatmul.mubr.bf16.vlgmr.msra.gmra.mxu1 %v7391_v45  ;;  %5081 = vmatpush1.bf16.msra.mxu0 %v4800_v34  ;;  %v4664_v34 = vld [vmem:[%s7834_s21 + $0x190] sm:$0xff] }
 0x929   : > { %5122 = vmatpush1.bf16.msra.mxu1 %v4928_v48  ;;  %5082 = vmatprep.subr.bf16.mxu0 %v4793_v46  ;;  %v4728_v48 = vld [vmem:[%s7834_s21 + $0x390] sm:$0xff]  ;;  %v4848_v46 = vunpack.c.h.s8.bf16 %v4664_v34 }
 0x92a   : > { %5123 = vmatprep.subr.bf16.mxu1 %v4921_v37  ;;  %5112 = vmatprep.mubr.bf16.mxu0 %v7325_v10  ;;  %v4976_v37 = vunpack.c.h.s8.bf16 %v4728_v48 }
 0x92b   : > { %5153 = vmatprep.mubr.bf16.mxu1 %v7327_v16 }
 0x92c   : > { %5083 = vmatpush1.bf16.msra.mxu0 %v4792_v39  ;;  %v4657_v39 = vld [vmem:[%s7834_s21 + $0x158] sm:$0xff] }
 0x92d   : > { %5124 = vmatpush1.bf16.msra.mxu1 %v4920_v21  ;;  %5084 = vmatprep.subr.bf16.mxu0 %v4785_v36  ;;  %v4721_v21 = vld [vmem:[%s7834_s21 + $0x358] sm:$0xff]  ;;  %v4840_v36 = vunpack.c.l.s8.bf16 %v4664_v34  ;;  %v4833_v35 = vunpack.c.h.s8.bf16 %v4657_v39  ;;  %v4825_v54 = vunpack.c.l.s8.bf16 %v4657_v39 }
 0x92e   : > { %5125 = vmatprep.subr.bf16.mxu1 %v4913_v47  ;;  %v4968_v47 = vunpack.c.l.s8.bf16 %v4728_v48  ;;  %v4961_v51 = vunpack.c.h.s8.bf16 %v4721_v21  ;;  %v4953_v55 = vunpack.c.l.s8.bf16 %v4721_v21 }
 0x930   : > { %5085 = vmatpush1.bf16.msra.mxu0 %v4784_v44  ;;  %v4656_v44 = vld [vmem:[%s7834_s21 + $0x150] sm:$0xff] }
 0x931   : > { %5126 = vmatpush1.bf16.msra.mxu1 %v4912_v30  ;;  %5086 = vmatprep.subr.bf16.mxu0 %v4777_v52  ;;  %v4720_v30 = vld [vmem:[%s7834_s21 + $0x350] sm:$0xff]  ;;  %v4832_v52 = vunpack.c.h.s8.bf16 %v4656_v44 }
 0x932   : > { %5127 = vmatprep.subr.bf16.mxu1 %v4905_v53  ;;  %v4960_v53 = vunpack.c.h.s8.bf16 %v4720_v30 }
 0x934   : > { %5087 = vmatpush1.bf16.msra.mxu0 %v4776_v58  ;;  %v4649_v58 = vld [vmem:[%s7834_s21 + $0x118] sm:$0xff] }
 0x935   : > { %5128 = vmatpush1.bf16.msra.mxu1 %v4904_v57  ;;  %5088 = vmatprep.subr.bf16.mxu0 %v4769_v50  ;;  %v4713_v57 = vld [vmem:[%s7834_s21 + $0x318] sm:$0xff]  ;;  %v4824_v50 = vunpack.c.l.s8.bf16 %v4656_v44  ;;  %v4817_v60 = vunpack.c.h.s8.bf16 %v4649_v58  ;;  %v4809_v41 = vunpack.c.l.s8.bf16 %v4649_v58 }
 0x936   : > { %5129 = vmatprep.subr.bf16.mxu1 %v4897_v22  ;;  %v4952_v22 = vunpack.c.l.s8.bf16 %v4720_v30  ;;  %v4945_v61 = vunpack.c.h.s8.bf16 %v4713_v57  ;;  %v4937_v3 = vunpack.c.l.s8.bf16 %v4713_v57 }
 0x938   : > { %5089 = vmatpush1.bf16.msra.mxu0 %v4768_v62  ;;  %v4648_v62 = vld [vmem:[%s7834_s21 + $0x110] sm:$0xff] }
 0x939   : > { %5130 = vmatpush1.bf16.msra.mxu1 %v4896_v11  ;;  %5090 = vmatprep.subr.bf16.mxu0 %v4761_v63  ;;  %v4712_v11 = vld [vmem:[%s7834_s21 + $0x310] sm:$0xff]  ;;  %v4816_v63 = vunpack.c.h.s8.bf16 %v4648_v62 }
 0x93a   : > { %5131 = vmatprep.subr.bf16.mxu1 %v4889_v2  ;;  %v4944_v2 = vunpack.c.h.s8.bf16 %v4712_v11 }
 0x93c   : > { %5091 = vmatpush1.bf16.msra.mxu0 %v4760_v42  ;;  %v4643_v42 = vld [vmem:[%s7834_s21 + $0xe8] sm:$0xff] }
 0x93d   : > { %5132 = vmatpush1.bf16.msra.mxu1 %v4888_v4  ;;  %5092 = vmatprep.subr.bf16.mxu0 %v4753_v26  ;;  %v4707_v4 = vld [vmem:[%s7834_s21 + $0x2e8] sm:$0xff]  ;;  %v4808_v26 = vunpack.c.l.s8.bf16 %v4648_v62  ;;  %v4803_v29 = vunpack.c.h.s8.bf16 %v4643_v42  ;;  %v4795_v18 = vunpack.c.l.s8.bf16 %v4643_v42 }
 0x93e   : > { %5133 = vmatprep.subr.bf16.mxu1 %v4881_v5  ;;  %v4936_v5 = vunpack.c.l.s8.bf16 %v4712_v11  ;;  %v4931_v6 = vunpack.c.h.s8.bf16 %v4707_v4  ;;  %v4923_v19 = vunpack.c.l.s8.bf16 %v4707_v4 }
 0x940   : > { %5093 = vmatpush1.bf16.msra.mxu0 %v4752_v12  ;;  %v4642_v12 = vld [vmem:[%s7834_s21 + $0xe0] sm:$0xff] }
 0x941   : > { %5134 = vmatpush1.bf16.msra.mxu1 %v4880_v7  ;;  %5094 = vmatprep.subr.bf16.mxu0 %v4745_v8  ;;  %v4706_v7 = vld [vmem:[%s7834_s21 + $0x2e0] sm:$0xff]  ;;  %v4802_v8 = vunpack.c.h.s8.bf16 %v4642_v12 }
 0x942   : > { %5135 = vmatprep.subr.bf16.mxu1 %v4873_v13  ;;  %v4930_v13 = vunpack.c.h.s8.bf16 %v4706_v7 }
 0x944   : > { %5095 = vmatpush1.bf16.msra.mxu0 %v4744_v20  ;;  %v4635_v20 = vld [vmem:[%s7834_s21 + $0xa8] sm:$0xff] }
 0x945   : > { %5136 = vmatpush1.bf16.msra.mxu1 %v4872_v0  ;;  %5096 = vmatprep.subr.bf16.mxu0 %v4865_v1  ;;  %v4699_v0 = vld [vmem:[%s7834_s21 + $0x2a8] sm:$0xff]  ;;  %v4794_v1 = vunpack.c.l.s8.bf16 %v4642_v12  ;;  %v4787_v17 = vunpack.c.h.s8.bf16 %v4635_v20  ;;  %v4779_v27 = vunpack.c.l.s8.bf16 %v4635_v20 }
 0x946   : > { %5137 = vmatprep.subr.bf16.mxu1 %v4993_v56  ;;  %v4922_v56 = vunpack.c.l.s8.bf16 %v4706_v7  ;;  %v4915_v23 = vunpack.c.h.s8.bf16 %v4699_v0  ;;  %v4907_v31 = vunpack.c.l.s8.bf16 %v4699_v0 }
 0x948   : > { %5097 = vmatpush2.bf16.msra.mxu0 %v4864_v24  ;;  %v4634_v24 = vld [vmem:[%s7834_s21 + $0xa0] sm:$0xff] }
 0x949   : > { %5138 = vmatpush2.bf16.msra.mxu1 %v4992_v25  ;;  %5098 = vmatprep.subr.bf16.mxu0 %v4857_v43  ;;  %v4698_v25 = vld [vmem:[%s7834_s21 + $0x2a0] sm:$0xff]  ;;  %v4786_v43 = vunpack.c.h.s8.bf16 %v4634_v24 }
 0x94a   : > { %5139 = vmatprep.subr.bf16.mxu1 %v4985_v59  ;;  %v4914_v59 = vunpack.c.h.s8.bf16 %v4698_v25 }
 0x94c   : > { %5099 = vmatpush2.bf16.msra.mxu0 %v4856_v38  ;;  %v4627_v38 = vld [vmem:[%s7834_s21 + $0x68] sm:$0xff] }
 0x94d   : > { %5140 = vmatpush2.bf16.msra.mxu1 %v4984_v15  ;;  %5100 = vmatprep.subr.bf16.mxu0 %v4849_v32  ;;  %v4691_v15 = vld [vmem:[%s7834_s21 + $0x268] sm:$0xff]  ;;  %v4778_v32 = vunpack.c.l.s8.bf16 %v4634_v24  ;;  %v4771_v34 = vunpack.c.h.s8.bf16 %v4627_v38  ;;  %v4763_v39 = vunpack.c.l.s8.bf16 %v4627_v38 }
 0x94e   : > { %5141 = vmatprep.subr.bf16.mxu1 %v4977_v49  ;;  %v4906_v49 = vunpack.c.l.s8.bf16 %v4698_v25  ;;  %v4899_v48 = vunpack.c.h.s8.bf16 %v4691_v15  ;;  %v4891_v21 = vunpack.c.l.s8.bf16 %v4691_v15 }
 0x950   : > { %5101 = vmatpush2.bf16.msra.mxu0 %v4848_v46  ;;  %v4626_v46 = vld [vmem:[%s7834_s21 + $0x60] sm:$0xff] }
 0x951   : > { %5142 = vmatpush2.bf16.msra.mxu1 %v4976_v37  ;;  %5102 = vmatprep.subr.bf16.mxu0 %v4841_v40  ;;  %v4690_v37 = vld [vmem:[%s7834_s21 + $0x260] sm:$0xff]  ;;  %v4770_v40 = vunpack.c.h.s8.bf16 %v4626_v46 }
 0x952   : > { %5143 = vmatprep.subr.bf16.mxu1 %v4969_v28  ;;  %v4898_v28 = vunpack.c.h.s8.bf16 %v4690_v37 }
 0x954   : > { %5103 = vmatpush2.bf16.msra.mxu0 %v4840_v36  ;;  %v4619_v36 = vld [vmem:[%s7834_s21 + $0x28] sm:$0xff] }
 0x955   : > { %5144 = vmatpush2.bf16.msra.mxu1 %v4968_v47  ;;  %5104 = vmatprep.subr.bf16.mxu0 %v4833_v35  ;;  %v4683_v47 = vld [vmem:[%s7834_s21 + $0x228] sm:$0xff]  ;;  %v4762_v35 = vunpack.c.l.s8.bf16 %v4626_v46  ;;  %v4755_v44 = vunpack.c.h.s8.bf16 %v4619_v36  ;;  %v4747_v58 = vunpack.c.l.s8.bf16 %v4619_v36 }
 0x956   : > { %5145 = vmatprep.subr.bf16.mxu1 %v4961_v51  ;;  %v4890_v51 = vunpack.c.l.s8.bf16 %v4690_v37  ;;  %v4883_v30 = vunpack.c.h.s8.bf16 %v4683_v47  ;;  %v4875_v57 = vunpack.c.l.s8.bf16 %v4683_v47 }
 0x958   : > { %5105 = vmatpush2.bf16.msra.mxu0 %v4832_v52  ;;  %v4618_v52 = vld [vmem:[%s7834_s21 + $0x20] sm:$0xff] }
 0x959   : > { %5146 = vmatpush2.bf16.msra.mxu1 %v4960_v53  ;;  %5106 = vmatprep.subr.bf16.mxu0 %v4825_v54  ;;  %v4682_v53 = vld [vmem:[%s7834_s21 + $0x220] sm:$0xff]  ;;  %v4754_v54 = vunpack.c.h.s8.bf16 %v4618_v52 }
 0x95a   : > { %5147 = vmatprep.subr.bf16.mxu1 %v4953_v55  ;;  %v4882_v55 = vunpack.c.h.s8.bf16 %v4682_v53 }
 0x95c   : > { %5107 = vmatpush2.bf16.msra.mxu0 %v4824_v50  ;;  %v4675_v50 = vld [vmem:[%s7834_s21 + $0x1e8] sm:$0xff] }
 0x95d   : > { %5148 = vmatpush2.bf16.msra.mxu1 %v4952_v22  ;;  %5108 = vmatprep.subr.bf16.mxu0 %v4817_v60  ;;  %v4739_v22 = vld [vmem:[%s7834_s21 + $0x3e8] sm:$0xff]  ;;  %v4746_v60 = vunpack.c.l.s8.bf16 %v4618_v52  ;;  %v4867_v62 = vunpack.c.h.s8.bf16 %v4675_v50  ;;  %v4859_v42 = vunpack.c.l.s8.bf16 %v4675_v50 }
 0x95e   : > { %5149 = vmatprep.subr.bf16.mxu1 %v4945_v61  ;;  %v4874_v61 = vunpack.c.l.s8.bf16 %v4682_v53  ;;  %v4995_v11 = vunpack.c.h.s8.bf16 %v4739_v22  ;;  %v4987_v4 = vunpack.c.l.s8.bf16 %v4739_v22 }
 0x960   : > { %5109 = vmatpush2.bf16.msra.mxu0 %v4816_v63  ;;  %v4674_v63 = vld [vmem:[%s7834_s21 + $0x1e0] sm:$0xff] }
 0x961   : > { %5150 = vmatpush2.bf16.msra.mxu1 %v4944_v2  ;;  %5110 = vmatprep.subr.bf16.mxu0 %v4809_v41  ;;  %v4738_v2 = vld [vmem:[%s7834_s21 + $0x3e0] sm:$0xff]  ;;  %v4866_v41 = vunpack.c.h.s8.bf16 %v4674_v63 }
 0x962   : > { %5151 = vmatprep.subr.bf16.mxu1 %v4937_v3  ;;  %v4994_v3 = vunpack.c.h.s8.bf16 %v4738_v2 }
 0x964   : > { %5111 = vmatpush2.bf16.msra.mxu0 %v4808_v26  ;;  %v4667_v26 = vld [vmem:[%s7834_s21 + $0x1a8] sm:$0xff] }
 0x965   : > { %5152 = vmatpush2.bf16.msra.mxu1 %v4936_v5  ;;  %5162 = vmatprep.subr.bf16.mxu0 %v4803_v29  ;;  %v4731_v5 = vld [vmem:[%s7834_s21 + $0x3a8] sm:$0xff]  ;;  %v4858_v29 = vunpack.c.l.s8.bf16 %v4674_v63  ;;  %v4851_v12 = vunpack.c.h.s8.bf16 %v4667_v26  ;;  %v4843_v20 = vunpack.c.l.s8.bf16 %v4667_v26 }
 0x966   : > { %5203 = vmatprep.subr.bf16.mxu1 %v4931_v6  ;;  %v4986_v6 = vunpack.c.l.s8.bf16 %v4738_v2  ;;  %v4979_v7 = vunpack.c.h.s8.bf16 %v4731_v5  ;;  %v4971_v0 = vunpack.c.l.s8.bf16 %v4731_v5 }
 0x967   : > { %5113 = vmatmul.mubr.bf16.vlgmr.msra.gmra.mxu0 %v7387_v33 }
 0x968   : > { %5154 = vmatmul.mubr.bf16.vlgmr.msra.gmra.mxu1 %v7391_v45  ;;  %5163 = vmatpush1.bf16.msra.mxu0 %v4802_v8  ;;  %v4666_v8 = vld [vmem:[%s7834_s21 + $0x1a0] sm:$0xff] }
 0x969   : > { %5204 = vmatpush1.bf16.msra.mxu1 %v4930_v13  ;;  %5164 = vmatprep.subr.bf16.mxu0 %v4795_v18  ;;  %v4730_v13 = vld [vmem:[%s7834_s21 + $0x3a0] sm:$0xff]  ;;  %v4850_v18 = vunpack.c.h.s8.bf16 %v4666_v8 }
 0x96a   : > { %5205 = vmatprep.subr.bf16.mxu1 %v4923_v19  ;;  %5194 = vmatprep.mubr.bf16.mxu0 %v7325_v10  ;;  %v4978_v19 = vunpack.c.h.s8.bf16 %v4730_v13 }
 0x96b   : > { %5235 = vmatprep.mubr.bf16.mxu1 %v7327_v16 }
 0x96c   : > { %5165 = vmatpush1.bf16.msra.mxu0 %v4794_v1  ;;  %v4659_v1 = vld [vmem:[%s7834_s21 + $0x168] sm:$0xff] }
 0x96d   : > { %5206 = vmatpush1.bf16.msra.mxu1 %v4922_v56  ;;  %5166 = vmatprep.subr.bf16.mxu0 %v4787_v17  ;;  %v4723_v56 = vld [vmem:[%s7834_s21 + $0x368] sm:$0xff]  ;;  %v4842_v17 = vunpack.c.l.s8.bf16 %v4666_v8  ;;  %v4835_v24 = vunpack.c.h.s8.bf16 %v4659_v1  ;;  %v4827_v38 = vunpack.c.l.s8.bf16 %v4659_v1  ;;  %v4628_v8 = vld [vmem:[%s7834_s21 + $0x70] sm:$0xff]  ;;  %v4621_v1 = vld [vmem:[%s7834_s21 + $0x38] sm:$0xff] }
 0x96e   : > { %5207 = vmatprep.subr.bf16.mxu1 %v4915_v23  ;;  %v4970_v23 = vunpack.c.l.s8.bf16 %v4730_v13  ;;  %v4963_v25 = vunpack.c.h.s8.bf16 %v4723_v56  ;;  %v4955_v15 = vunpack.c.l.s8.bf16 %v4723_v56  ;;  %v4692_v13 = vld [vmem:[%s7834_s21 + $0x270] sm:$0xff]  ;;  %v4685_v56 = vld [vmem:[%s7834_s21 + $0x238] sm:$0xff] }
 0x970   : > { %5167 = vmatpush1.bf16.msra.mxu0 %v4786_v43  ;;  %v4658_v43 = vld [vmem:[%s7834_s21 + $0x160] sm:$0xff] }
 0x971   : > { %5208 = vmatpush1.bf16.msra.mxu1 %v4914_v59  ;;  %5168 = vmatprep.subr.bf16.mxu0 %v4779_v27  ;;  %v4722_v59 = vld [vmem:[%s7834_s21 + $0x360] sm:$0xff]  ;;  %v4834_v27 = vunpack.c.h.s8.bf16 %v4658_v43 }
 0x972   : > { %5209 = vmatprep.subr.bf16.mxu1 %v4907_v31  ;;  %v4962_v31 = vunpack.c.h.s8.bf16 %v4722_v59 }
 0x974   : > { %5169 = vmatpush1.bf16.msra.mxu0 %v4778_v32  ;;  %v4651_v32 = vld [vmem:[%s7834_s21 + $0x128] sm:$0xff] }
 0x975   : > { %5210 = vmatpush1.bf16.msra.mxu1 %v4906_v49  ;;  %5170 = vmatprep.subr.bf16.mxu0 %v4771_v34  ;;  %v4715_v49 = vld [vmem:[%s7834_s21 + $0x328] sm:$0xff]  ;;  %v4826_v34 = vunpack.c.l.s8.bf16 %v4658_v43  ;;  %v4819_v46 = vunpack.c.h.s8.bf16 %v4651_v32  ;;  %v4811_v36 = vunpack.c.l.s8.bf16 %v4651_v32  ;;  %v4620_v43 = vld [vmem:[%s7834_s21 + $0x30] sm:$0xff]  ;;  %v4677_v32 = vld [vmem:[%s7834_s21 + $0x1f8] sm:$0xff] }
 0x976   : > { %5211 = vmatprep.subr.bf16.mxu1 %v4899_v48  ;;  %v4954_v48 = vunpack.c.l.s8.bf16 %v4722_v59  ;;  %v4947_v37 = vunpack.c.h.s8.bf16 %v4715_v49  ;;  %v4939_v47 = vunpack.c.l.s8.bf16 %v4715_v49  ;;  %v4684_v59 = vld [vmem:[%s7834_s21 + $0x230] sm:$0xff]  ;;  %v4741_v49 = vld [vmem:[%s7834_s21 + $0x3f8] sm:$0xff] }
 0x978   : > { %5171 = vmatpush1.bf16.msra.mxu0 %v4770_v40  ;;  %v4650_v40 = vld [vmem:[%s7834_s21 + $0x120] sm:$0xff] }
 0x979   : > { %5212 = vmatpush1.bf16.msra.mxu1 %v4898_v28  ;;  %5172 = vmatprep.subr.bf16.mxu0 %v4763_v39  ;;  %v4714_v28 = vld [vmem:[%s7834_s21 + $0x320] sm:$0xff]  ;;  %v4818_v39 = vunpack.c.h.s8.bf16 %v4650_v40 }
 0x97a   : > { %5213 = vmatprep.subr.bf16.mxu1 %v4891_v21  ;;  %v4946_v21 = vunpack.c.h.s8.bf16 %v4714_v28 }
 0x97c   : > { %5173 = vmatpush1.bf16.msra.mxu0 %v4762_v35  ;;  %v4645_v35 = vld [vmem:[%s7834_s21 + $0xf8] sm:$0xff] }
 0x97d   : > { %5214 = vmatpush1.bf16.msra.mxu1 %v4890_v51  ;;  %5174 = vmatprep.subr.bf16.mxu0 %v4755_v44  ;;  %v4709_v51 = vld [vmem:[%s7834_s21 + $0x2f8] sm:$0xff]  ;;  %v4810_v44 = vunpack.c.l.s8.bf16 %v4650_v40  ;;  %v4805_v52 = vunpack.c.h.s8.bf16 %v4645_v35  ;;  %v4797_v50 = vunpack.c.l.s8.bf16 %v4645_v35  ;;  %v4676_v40 = vld [vmem:[%s7834_s21 + $0x1f0] sm:$0xff] }
 0x97e   : > { %5215 = vmatprep.subr.bf16.mxu1 %v4883_v30  ;;  %v4938_v30 = vunpack.c.l.s8.bf16 %v4714_v28  ;;  %v4933_v53 = vunpack.c.h.s8.bf16 %v4709_v51  ;;  %v4925_v22 = vunpack.c.l.s8.bf16 %v4709_v51  ;;  %v4740_v28 = vld [vmem:[%s7834_s21 + $0x3f0] sm:$0xff]  ;;  %v4669_v35 = vld [vmem:[%s7834_s21 + $0x1b8] sm:$0xff] }
 0x97f   : > { %v4733_v51 = vld [vmem:[%s7834_s21 + $0x3b8] sm:$0xff] }
 0x980   : > { %5175 = vmatpush1.bf16.msra.mxu0 %v4754_v54  ;;  %v4644_v54 = vld [vmem:[%s7834_s21 + $0xf0] sm:$0xff] }
 0x981   : > { %5216 = vmatpush1.bf16.msra.mxu1 %v4882_v55  ;;  %5176 = vmatprep.subr.bf16.mxu0 %v4747_v58  ;;  %v4708_v55 = vld [vmem:[%s7834_s21 + $0x2f0] sm:$0xff]  ;;  %v4804_v58 = vunpack.c.h.s8.bf16 %v4644_v54 }
 0x982   : > { %5217 = vmatprep.subr.bf16.mxu1 %v4875_v57  ;;  %v4932_v57 = vunpack.c.h.s8.bf16 %v4708_v55 }
 0x984   : > { %5177 = vmatpush1.bf16.msra.mxu0 %v4746_v60  ;;  %v4637_v60 = vld [vmem:[%s7834_s21 + $0xb8] sm:$0xff] }
 0x985   : > { %5218 = vmatpush1.bf16.msra.mxu1 %v4874_v61  ;;  %5178 = vmatprep.subr.bf16.mxu0 %v4867_v62  ;;  %v4701_v61 = vld [vmem:[%s7834_s21 + $0x2b8] sm:$0xff]  ;;  %v4796_v62 = vunpack.c.l.s8.bf16 %v4644_v54  ;;  %v4789_v63 = vunpack.c.h.s8.bf16 %v4637_v60  ;;  %v4781_v26 = vunpack.c.l.s8.bf16 %v4637_v60  ;;  %v4668_v54 = vld [vmem:[%s7834_s21 + $0x1b0] sm:$0xff] }
 0x986   : > { %5219 = vmatprep.subr.bf16.mxu1 %v4995_v11  ;;  %v4924_v11 = vunpack.c.l.s8.bf16 %v4708_v55  ;;  %v4917_v2 = vunpack.c.h.s8.bf16 %v4701_v61  ;;  %v4909_v5 = vunpack.c.l.s8.bf16 %v4701_v61  ;;  %v4732_v55 = vld [vmem:[%s7834_s21 + $0x3b0] sm:$0xff]  ;;  %v4661_v60 = vld [vmem:[%s7834_s21 + $0x178] sm:$0xff] }
 0x987   : > { %v4725_v61 = vld [vmem:[%s7834_s21 + $0x378] sm:$0xff] }
 0x988   : > { %5179 = vmatpush2.bf16.msra.mxu0 %v4866_v41  ;;  %v4636_v41 = vld [vmem:[%s7834_s21 + $0xb0] sm:$0xff] }
 0x989   : > { %5220 = vmatpush2.bf16.msra.mxu1 %v4994_v3  ;;  %5180 = vmatprep.subr.bf16.mxu0 %v4859_v42  ;;  %v4700_v3 = vld [vmem:[%s7834_s21 + $0x2b0] sm:$0xff]  ;;  %v4788_v42 = vunpack.c.h.s8.bf16 %v4636_v41 }
 0x98a   : > { %5221 = vmatprep.subr.bf16.mxu1 %v4987_v4  ;;  %v4916_v4 = vunpack.c.h.s8.bf16 %v4700_v3 }
 0x98c   : > { %5181 = vmatpush2.bf16.msra.mxu0 %v4858_v29  ;;  %v4629_v29 = vld [vmem:[%s7834_s21 + $0x78] sm:$0xff] }
 0x98d   : > { %5222 = vmatpush2.bf16.msra.mxu1 %v4986_v6  ;;  %5182 = vmatprep.subr.bf16.mxu0 %v4851_v12  ;;  %v4693_v6 = vld [vmem:[%s7834_s21 + $0x278] sm:$0xff]  ;;  %v4773_v12 = vunpack.c.h.s8.bf16 %v4629_v29 }
 0x98e   : > { %5223 = vmatprep.subr.bf16.mxu1 %v4979_v7  ;;  %v4901_v7 = vunpack.c.h.s8.bf16 %v4693_v6 }
 0x990   : > { %5183 = vmatpush2.bf16.msra.mxu0 %v4850_v18  ;;  %v4772_v18 = vunpack.c.h.s8.bf16 %v4628_v8 }
 0x991   : > { %5224 = vmatpush2.bf16.msra.mxu1 %v4978_v19  ;;  %5184 = vmatprep.subr.bf16.mxu0 %v4843_v20  ;;  %v4900_v19 = vunpack.c.h.s8.bf16 %v4692_v13  ;;  %v4765_v20 = vunpack.c.l.s8.bf16 %v4629_v29  ;;  %v4653_v29 = vld [vmem:[%s7834_s21 + $0x138] sm:$0xff] }
 0x992   : > { %5225 = vmatprep.subr.bf16.mxu1 %v4971_v0  ;;  %v4893_v0 = vunpack.c.l.s8.bf16 %v4693_v6  ;;  %v4717_v6 = vld [vmem:[%s7834_s21 + $0x338] sm:$0xff] }
 0x994   : > { %5185 = vmatpush2.bf16.msra.mxu0 %v4842_v17  ;;  %v4764_v17 = vunpack.c.l.s8.bf16 %v4628_v8  ;;  %v4652_v8 = vld [vmem:[%s7834_s21 + $0x130] sm:$0xff] }
 0x995   : > { %5226 = vmatpush2.bf16.msra.mxu1 %v4970_v23  ;;  %5186 = vmatprep.subr.bf16.mxu0 %v4835_v24  ;;  %v4892_v23 = vunpack.c.l.s8.bf16 %v4692_v13  ;;  %v4757_v24 = vunpack.c.h.s8.bf16 %v4621_v1  ;;  %v4716_v13 = vld [vmem:[%s7834_s21 + $0x330] sm:$0xff] }
 0x996   : > { %5227 = vmatprep.subr.bf16.mxu1 %v4963_v25  ;;  %v4885_v25 = vunpack.c.h.s8.bf16 %v4685_v56 }
 0x998   : > { %5187 = vmatpush2.bf16.msra.mxu0 %v4834_v27  ;;  %v4756_v27 = vunpack.c.h.s8.bf16 %v4620_v43 }
 0x999   : > { %5228 = vmatpush2.bf16.msra.mxu1 %v4962_v31  ;;  %5188 = vmatprep.subr.bf16.mxu0 %v4827_v38  ;;  %v4884_v31 = vunpack.c.h.s8.bf16 %v4684_v59  ;;  %v4749_v38 = vunpack.c.l.s8.bf16 %v4621_v1  ;;  %v4812_v1 = vunpack.c.l.s8.bf16 %v4652_v8 }
 0x99a   : > { %5229 = vmatprep.subr.bf16.mxu1 %v4955_v15  ;;  %v4877_v15 = vunpack.c.l.s8.bf16 %v4685_v56  ;;  %v4940_v56 = vunpack.c.l.s8.bf16 %v4716_v13 }
 0x99c   : > { %5189 = vmatpush2.bf16.msra.mxu0 %v4826_v34  ;;  %v4748_v34 = vunpack.c.l.s8.bf16 %v4620_v43 }
 0x99d   : > { %5230 = vmatpush2.bf16.msra.mxu1 %v4954_v48  ;;  %5190 = vmatprep.subr.bf16.mxu0 %v4819_v46  ;;  %v4876_v48 = vunpack.c.l.s8.bf16 %v4684_v59  ;;  %v4869_v46 = vunpack.c.h.s8.bf16 %v4677_v32 }
 0x99e   : > { %5231 = vmatprep.subr.bf16.mxu1 %v4947_v37  ;;  %v4997_v37 = vunpack.c.h.s8.bf16 %v4741_v49 }
 0x9a0   : > { %5191 = vmatpush2.bf16.msra.mxu0 %v4818_v39  ;;  %v4868_v39 = vunpack.c.h.s8.bf16 %v4676_v40 }
 0x9a1   : > { %5232 = vmatpush2.bf16.msra.mxu1 %v4946_v21  ;;  %5192 = vmatprep.subr.bf16.mxu0 %v4811_v36  ;;  %v4996_v21 = vunpack.c.h.s8.bf16 %v4740_v28  ;;  %v4861_v36 = vunpack.c.l.s8.bf16 %v4677_v32 }
 0x9a2   : > { %5233 = vmatprep.subr.bf16.mxu1 %v4939_v47  ;;  %v4989_v47 = vunpack.c.l.s8.bf16 %v4741_v49 }
 0x9a4   : > { %5193 = vmatpush2.bf16.msra.mxu0 %v4810_v44  ;;  %v4860_v44 = vunpack.c.l.s8.bf16 %v4676_v40 }
 0x9a5   : > { %5234 = vmatpush2.bf16.msra.mxu1 %v4938_v30  ;;  %5244 = vmatprep.subr.bf16.mxu0 %v4805_v52  ;;  %v4988_v30 = vunpack.c.l.s8.bf16 %v4740_v28  ;;  %v4853_v52 = vunpack.c.h.s8.bf16 %v4669_v35 }
 0x9a6   : > { %5285 = vmatprep.subr.bf16.mxu1 %v4933_v53  ;;  %v4981_v53 = vunpack.c.h.s8.bf16 %v4733_v51 }
 0x9a7   : > { %5195 = vmatmul.mubr.bf16.vlgmr.msra.gmra.mxu0 %v7387_v33 }
 0x9a8   : > { %5236 = vmatmul.mubr.bf16.vlgmr.msra.gmra.mxu1 %v7391_v45  ;;  %5245 = vmatpush1.bf16.msra.mxu0 %v4804_v58  ;;  %v4852_v58 = vunpack.c.h.s8.bf16 %v4668_v54 }
 0x9a9   : > { %5286 = vmatpush1.bf16.msra.mxu1 %v4932_v57  ;;  %5246 = vmatprep.subr.bf16.mxu0 %v4797_v50  ;;  %v4980_v57 = vunpack.c.h.s8.bf16 %v4732_v55  ;;  %v4845_v50 = vunpack.c.l.s8.bf16 %v4669_v35  ;;  %v5342_v35 = vsub.s32 3, %v7292_v9 }
 0x9aa   : > { %5287 = vmatprep.subr.bf16.mxu1 %v4925_v22  ;;  %5276 = vmatprep.mubr.bf16.mxu0 %v7325_v10  ;;  %v4780_v10 = vunpack.c.l.s8.bf16 %v4636_v41  ;;  %v4973_v22 = vunpack.c.l.s8.bf16 %v4733_v51  ;;  %v4660_v41 = vld [vmem:[%s7834_s21 + $0x170] sm:$0xff] }
 0x9ab   : > { %5317 = vmatprep.mubr.bf16.mxu1 %v7327_v16  ;;  %v4908_v16 = vunpack.c.l.s8.bf16 %v4700_v3  ;;  %v4724_v3 = vld [vmem:[%s7834_s21 + $0x370] sm:$0xff] }
 0x9ac   : > { %5247 = vmatpush1.bf16.msra.mxu0 %v4796_v62  ;;  %v4844_v62 = vunpack.c.l.s8.bf16 %v4668_v54 }
 0x9ad   : > { %5288 = vmatpush1.bf16.msra.mxu1 %v4924_v11  ;;  %5248 = vmatprep.subr.bf16.mxu0 %v4789_v63  ;;  %v4972_v11 = vunpack.c.l.s8.bf16 %v4732_v55  ;;  %v4837_v63 = vunpack.c.h.s8.bf16 %v4661_v60 }
 0x9ae   : > { %5289 = vmatprep.subr.bf16.mxu1 %v4917_v2  ;;  %v4965_v2 = vunpack.c.h.s8.bf16 %v4725_v61 }
 0x9b0   : > { %5249 = vmatpush1.bf16.msra.mxu0 %v4788_v42  ;;  %v4836_v42 = vunpack.c.h.s8.bf16 %v4660_v41 }
 0x9b1   : > { %5290 = vmatpush1.bf16.msra.mxu1 %v4916_v4  ;;  %5250 = vmatprep.subr.bf16.mxu0 %v4781_v26  ;;  %v4964_v4 = vunpack.c.h.s8.bf16 %v4724_v3  ;;  %v4829_v26 = vunpack.c.l.s8.bf16 %v4661_v60 }
 0x9b2   : > { %5291 = vmatprep.subr.bf16.mxu1 %v4909_v5  ;;  %v4957_v5 = vunpack.c.l.s8.bf16 %v4725_v61 }
 0x9b4   : > { %5251 = vmatpush1.bf16.msra.mxu0 %v4780_v10  ;;  %v4828_v10 = vunpack.c.l.s8.bf16 %v4660_v41 }
 0x9b5   : > { %5292 = vmatpush1.bf16.msra.mxu1 %v4908_v16  ;;  %5252 = vmatprep.subr.bf16.mxu0 %v4773_v12  ;;  %v4956_v16 = vunpack.c.l.s8.bf16 %v4724_v3  ;;  %v4821_v12 = vunpack.c.h.s8.bf16 %v4653_v29 }
 0x9b6   : > { %5293 = vmatprep.subr.bf16.mxu1 %v4901_v7  ;;  %v4949_v7 = vunpack.c.h.s8.bf16 %v4717_v6 }
 0x9b8   : > { %5253 = vmatpush1.bf16.msra.mxu0 %v4772_v18  ;;  %v4820_v18 = vunpack.c.h.s8.bf16 %v4652_v8 }
 0x9b9   : > { %5294 = vmatpush1.bf16.msra.mxu1 %v4900_v19  ;;  %5254 = vmatprep.subr.bf16.mxu0 %v4765_v20  ;;  %v4948_v19 = vunpack.c.h.s8.bf16 %v4716_v13  ;;  %v4813_v20 = vunpack.c.l.s8.bf16 %v4653_v29  ;;  %v5350_v29 = vsub.s32 5, %v7292_v9 }
 0x9ba   : > { %5295 = vmatprep.subr.bf16.mxu1 %v4893_v0  ;;  %v4941_v0 = vunpack.c.l.s8.bf16 %v4717_v6 }
 0x9bc   : > { %5255 = vmatpush1.bf16.msra.mxu0 %v4764_v17  ;;  %v5330_v17 = vsub.s32 0, %v7292_v9 }
 0x9bd   : > { %5296 = vmatpush1.bf16.msra.mxu1 %v4892_v23  ;;  %5256 = vmatprep.subr.bf16.mxu0 %v4757_v24  ;;  %v7685_v23 = vld [vmem:[%s7835_s2] sm:$0xff]  ;;  %v5334_v24 = vsub.s32 1, %v7292_v9 }
 0x9be   : > { %5297 = vmatprep.subr.bf16.mxu1 %v4885_v25  ;;  %v7691_v25 = vld [vmem:[%s7836_s15] sm:$0xff]  ;;  %v5331_v43 = vrot.slane %v7685_v23, %v5330_v17  ;;  %v5343_v54 = vrot.slane %v7685_v23, %v5342_v35  ;;  %v5351_v8 = vrot.slane %v7685_v23, %v5350_v29 }
 0x9c0   : > { %5257 = vmatpush1.bf16.msra.mxu0 %v4756_v27 }
 0x9c1   : > { %5298 = vmatpush1.bf16.msra.mxu1 %v4884_v31  ;;  %5258 = vmatprep.subr.bf16.mxu0 %v4749_v38  ;;  %v5381_v38 = vrot.slane %v7691_v25, %v5330_v17 }
 0x9c2   : > { %5299 = vmatprep.subr.bf16.mxu1 %v4877_v15  ;;  %v5335_v15 = vrot.slane %v7685_v23, %v5334_v24 }
 0x9c4   : > { %5259 = vmatpush1.bf16.msra.mxu0 %v4748_v34 }
 0x9c5   : > { %5300 = vmatpush1.bf16.msra.mxu1 %v4876_v48  ;;  %5260 = vmatprep.subr.bf16.mxu0 %v4869_v46  ;;  %v5385_v46 = vrot.slane %v7691_v25, %v5334_v24 }
 0x9c6   : > { %5301 = vmatprep.subr.bf16.mxu1 %v4997_v37 }
 0x9c8   : > { %5261 = vmatpush2.bf16.msra.mxu0 %v4868_v39 }
 0x9c9   : > { %5302 = vmatpush2.bf16.msra.mxu1 %v4996_v21  ;;  %5262 = vmatprep.subr.bf16.mxu0 %v4861_v36 }
 0x9ca   : > { %5303 = vmatprep.subr.bf16.mxu1 %v4989_v47 }
 0x9cc   : > { %5263 = vmatpush2.bf16.msra.mxu0 %v4860_v44 }
 0x9cd   : > { %5304 = vmatpush2.bf16.msra.mxu1 %v4988_v30  ;;  %5264 = vmatprep.subr.bf16.mxu0 %v4853_v52 }
 0x9ce   : > { %5305 = vmatprep.subr.bf16.mxu1 %v4981_v53 }
 0x9d0   : > { %5265 = vmatpush2.bf16.msra.mxu0 %v4852_v58 }
 0x9d1   : > { %5306 = vmatpush2.bf16.msra.mxu1 %v4980_v57  ;;  %5266 = vmatprep.subr.bf16.mxu0 %v4845_v50 }
 0x9d2   : > { %5307 = vmatprep.subr.bf16.mxu1 %v4973_v22  ;;  %v5393_v22 = vrot.slane %v7691_v25, %v5342_v35 }
 0x9d4   : > { %5267 = vmatpush2.bf16.msra.mxu0 %v4844_v62 }
 0x9d5   : > { %5308 = vmatpush2.bf16.msra.mxu1 %v4972_v11  ;;  %5268 = vmatprep.subr.bf16.mxu0 %v4837_v63 }
 0x9d6   : > { %5309 = vmatprep.subr.bf16.mxu1 %v4965_v2 }
 0x9d8   : > { %5269 = vmatpush2.bf16.msra.mxu0 %v4836_v42 }
 0x9d9   : > { %5310 = vmatpush2.bf16.msra.mxu1 %v4964_v4  ;;  %5270 = vmatprep.subr.bf16.mxu0 %v4829_v26 }
 0x9da   : > { %5311 = vmatprep.subr.bf16.mxu1 %v4957_v5  ;;  %v5346_v5 = vsub.s32 4, %v7292_v9 }
 0x9dc   : > { %5271 = vmatpush2.bf16.msra.mxu0 %v4828_v10  ;;  %v5347_v6 = vrot.slane %v7685_v23, %v5346_v5 }
 0x9dd   : > { %5312 = vmatpush2.bf16.msra.mxu1 %v4956_v16  ;;  %5272 = vmatprep.subr.bf16.mxu0 %v4821_v12 }
 0x9de   : > { %5313 = vmatprep.subr.bf16.mxu1 %v4949_v7  ;;  %v5397_v7 = vrot.slane %v7691_v25, %v5346_v5 }
 0x9e0   : > { %5273 = vmatpush2.bf16.msra.mxu0 %v4820_v18 }
 0x9e1   : > { %5314 = vmatpush2.bf16.msra.mxu1 %v4948_v19  ;;  %5274 = vmatprep.subr.bf16.mxu0 %v4813_v20 }
 0x9e2   : > { %5315 = vmatprep.subr.bf16.mxu1 %v4941_v0  ;;  %v5401_v0 = vrot.slane %v7691_v25, %v5350_v29 }
 0x9e4   : > { %5275 = vmatpush2.bf16.msra.mxu0 %v4812_v1 }
 0x9e5   : > { %5316 = vmatpush2.bf16.msra.mxu1 %v4940_v56 }
 0x9e7   : > { %v5032_v59 = vpop.f32.mrf.mxu0  ;;  %5277 = vmatmul.mubr.bf16.vlgmr.msra.gmra.mxu0 %v7387_v33 }
 0x9e8   : > { %v5073_v27 = vpop.f32.mrf.mxu1  ;;  %5318 = vmatmul.mubr.bf16.vlgmr.msra.gmra.mxu1 %v7391_v45  ;;  %v5338_v45 = vsub.s32 2, %v7292_v9 }
 0x9e9   : > { %v5074_v31 = vadd.f32 %v5073_v27, %v5032_v59  ;;  %v5034_v32 = vpop.f32.mrf.mxu0 }
 0x9ea   : > { %v5075_v49 = vpop.f32.mrf.mxu1  ;;  %v5339_v51 = vrot.slane %v7685_v23, %v5338_v45  ;;  %v5389_v53 = vrot.slane %v7691_v25, %v5338_v45 }
 0x9eb   : > { %v5368_v34 = vmul.f32 %v5331_v43, %v5074_v31  ;;  %v5076_v48 = vadd.f32 %v5075_v49, %v5034_v32  ;;  %v5036_v37 = vpop.f32.mrf.mxu0 }
 0x9ec   : > { %v5077_v40 = vpop.f32.mrf.mxu1 }
 0x9ed   : > { %v5418_v28 = vadd.f32 %v5381_v38, %v5368_v34  ;;  %v5369_v39 = vmul.f32 %v5335_v15, %v5076_v48  ;;  %v5037_v21 = vpop.f32.mrf.mxu0  ;;  %v5354_v38 = vsub.s32 6, %v7292_v9  ;;  %v5358_v15 = vsub.s32 7, %v7292_v9 }
 0x9ee   : > { %v5078_v36 = vpop.f32.mrf.mxu1 }
 0x9ef   : > { %v5419_v33 = vadd.f32 %v5385_v46, %v5369_v39  ;;  %v5355_v32 = vrot.slane %v7685_v23, %v5354_v38  ;;  %v5359_v46 = vrot.slane %v7685_v23, %v5358_v15  ;;  %v5405_v39 = vrot.slane %v7691_v25, %v5354_v38 }
 0x9f0   : > { %v5409_v36 = vrot.slane %v7691_v25, %v5358_v15 }
 0x9f1   : > { %v5434_v47 = vcombine.low %v5418_v28, %v5419_v33 }
 0x9f3   : > { %v5442_v42 = vrot.slane %v5434_v47, %v7307_v14 }
 0xa27   : > { %v5114_v44 = vpop.f32.mrf.mxu0 }
 0xa28   : > { %v5155_v30 = vpop.f32.mrf.mxu1 }
 0xa29   : > { %v5156_v52 = vadd.f32 %v5155_v30, %v5114_v44  ;;  %v5116_v55 = vpop.f32.mrf.mxu0 }
 0xa2a   : > { %v5157_v58 = vpop.f32.mrf.mxu1 }
 0xa2b   : > { %v5370_v57 = vmul.f32 %v5339_v51, %v5156_v52  ;;  %v5158_v50 = vadd.f32 %v5157_v58, %v5116_v55  ;;  %v5118_v60 = vpop.f32.mrf.mxu0 }
 0xa2c   : > { %v5159_v61 = vpop.f32.mrf.mxu1 }
 0xa2d   : > { %v5420_v62 = vadd.f32 %v5389_v53, %v5370_v57  ;;  %v5371_v11 = vmul.f32 %v5343_v54, %v5158_v50  ;;  %v5119_v63 = vpop.f32.mrf.mxu0 }
 0xa2e   : > { %v5160_v2 = vpop.f32.mrf.mxu1 }
 0xa2f   : > { %v5421_v41 = vadd.f32 %v5393_v22, %v5371_v11 }
 0xa31   : > { %v5435_v3 = vcombine.low %v5420_v62, %v5421_v41 }
 0xa33   : > { %v5449_v4 = vrot.slane %v5435_v3, %v7307_v14 }
 0xa35   : > { %v5450_v26 = vcombine.low %v5442_v42, %v5449_v4 }
 0xa37   : > { %5470 = vst [vmem:[#allocation4] sm:$0xff] %v5450_v26 }
 0xa67   : > { %v5196_v10 = vpop.f32.mrf.mxu0 }
 0xa68   : > { %v5237_v16 = vpop.f32.mrf.mxu1 }
 0xa69   : > { %v5238_v12 = vadd.f32 %v5237_v16, %v5196_v10  ;;  %v5198_v13 = vpop.f32.mrf.mxu0 }
 0xa6a   : > { %v5239_v18 = vpop.f32.mrf.mxu1 }
 0xa6b   : > { %v5372_v19 = vmul.f32 %v5347_v6, %v5238_v12  ;;  %v5240_v20 = vadd.f32 %v5239_v18, %v5198_v13  ;;  %v5200_v1 = vpop.f32.mrf.mxu0 }
 0xa6c   : > { %v5241_v56 = vpop.f32.mrf.mxu1 }
 0xa6d   : > { %v5422_v17 = vadd.f32 %v5397_v7, %v5372_v19  ;;  %v5373_v24 = vmul.f32 %v5351_v8, %v5240_v20  ;;  %v5201_v43 = vpop.f32.mrf.mxu0 }
 0xa6e   : > { %v5242_v59 = vpop.f32.mrf.mxu1 }
 0xa6f   : > { %v5423_v27 = vadd.f32 %v5401_v0, %v5373_v24 }
 0xa71   : > { %v5451_v31 = vcombine.low %v5422_v17, %v5423_v27 }
 0xa73   : > { %v5459_v52 = vrot.slane %v5451_v31, %v7307_v14 }
 0xaa7   : > { %v5278_v49 = vpop.f32.mrf.mxu0 }
 0xaa8   : > { %v5319_v34 = vpop.f32.mrf.mxu1 }
 0xaa9   : > { %v5320_v48 = vadd.f32 %v5319_v34, %v5278_v49  ;;  %v5280_v37 = vpop.f32.mrf.mxu0 }
 0xaaa   : > { %v5321_v40 = vpop.f32.mrf.mxu1 }
 0xaab   : > { %v5374_v28 = vmul.f32 %v5355_v32, %v5320_v48  ;;  %v5322_v21 = vadd.f32 %v5321_v40, %v5280_v37  ;;  %v5282_v33 = vpop.f32.mrf.mxu0 }
 0xaac   : > { %v5323_v47 = vpop.f32.mrf.mxu1 }
 0xaad   : > { %v5375_v45 = vmul.f32 %v5359_v46, %v5322_v21  ;;  %v5283_v35 = vpop.f32.mrf.mxu0  ;;  %v5424_v51 = vadd.f32 %v5405_v39, %v5374_v28 }
 0xaae   : > { %v5324_v9 = vpop.f32.mrf.mxu1 }
 0xaaf   : > { %v5425_v44 = vadd.f32 %v5409_v36, %v5375_v45 }
 0xab1   : > { %v5452_v30 = vcombine.low %v5424_v51, %v5425_v44 }
 0xab3   : > { %v5466_v23 = vrot.slane %v5452_v30, %v7307_v14 }
 0xab5   : > { %v5467_v53 = vcombine.low %v5459_v52, %v5466_v23 }
 0xab7   : > { %5471 = vst [vmem:[#allocation4 + $0x8] sm:$0xff] %v5467_v53 }
 0xab8 PF: > { %s7837_s0 = sld [smem:[#allocation8_spill]]  ;;  %s6188_s8 = smov [#allocation4]  }
 0xab9   : > { %s5479_s4 = sshll.u32 %s6188_s8, 4  ;;  %s5480_s4 = int_to_ptr.vmem [resolvable:$true] %s5479_s4 }
 0xaba   : > { %s6144_s29 = scalar_lea.vmem %s5480_s4, 256  ;;  %p6151_p3 = scmp.lt.s32.totalorder %s5480_s4, %s5480_s4 }
 0xabb   : > { %p6145_p0 = scmp.ne.s32.totalorder %s5480_s4, %s6144_s29  ;;  %p6152_p4 = scmp.lt.s32.totalorder %s6144_s29, %s6144_s29 }
 0xabd   : > { %p6153_p5 = por %p6152_p4, %p6151_p3 }
 0xabe   : > { %p6051_p13 = scmp.eq.s32.totalorder %s7837_s0, 7 }
 0xac0   : > { %p6146_p1 = pnand %p6145_p0, %p6051_p13 }
 0xac2   : > { %p6147_p2 = pneg %p6146_p1 }
 0xac4   : > { %p6154_p6 = pnand %p6153_p5, %p6147_p2 }
 0xac6   : > { %6157 = shalt.err (!%p6154_p6)
}
 0xac7   : > { %s7838_s24 = sld [smem:[#allocation30_spill]] }
 0xacd   : > { %6048 = dma.vmem_to_hbm [thread:$0]  (%p6051_p13), %s5480_s4, 256, %s7838_s24, [#allocation5]  }
 0xace   : > { %6173 = dma.done.wait (%p6051_p13), [#allocation5], 256  }
 0xacf   : > { %6175 = vsyncadd (%p6051_p13), [#allocation5], 4294967040 }
 0xad0 PF: > { %s7839_s14 = sld [smem:[#allocation7_spill]] }
 0xad6   : > { %s36_s29 = sadd.s32 1, %s7839_s14  }
 0xad7   : > { %p33_p7 = scmp.ge.s32.totalorder %s36_s29, 10  }
 0xad9   :  { %35 = sbr.rel (!%p33_p7) target bundleno = 21 (0x15), region = 215 }
 0xade   :  { %5492 = vsyncpa [#allocation5], 1 }
 0xadf   :  { %5494 = vsyncpa [#allocation5 + $0x1], 1 }

</bundles_post_ra>
